<compile_context>
chip_gen: v7x
topology: tpu7x:2x2x1
jax: 0.10.0
libtpu: 0.0.40
codegen_flags: <defaults>
</compile_context>

<pallas_src>
import math
import functools

import jax
import jax.numpy as jnp
from jax.experimental import pallas as pl
from jax.experimental.pallas import tpu as pltpu


# Set to jnp.bfloat16 on v6e/v7x to reach full MXU throughput (accumulation and
# LayerNorm statistics stay f32 either way).  Kept f32 here to match the PyTorch
# f32 reference numerics.
COMPUTE_DTYPE = jnp.float32
VMEM_LIMIT_BYTES = 32 * 1024 * 1024


def _mm(a, b):
    return jnp.dot(a.astype(COMPUTE_DTYPE), b.astype(COMPUTE_DTYPE),
                   preferred_element_type=jnp.float32)


def _ln(x, gamma, beta):
    # PyTorch LayerNorm: biased variance, eps=1e-5.
    mean = jnp.mean(x, axis=-1, keepdims=True)
    var = jnp.mean(jnp.square(x - mean), axis=-1, keepdims=True)
    return (x - mean) * jax.lax.rsqrt(var + 1e-5) * gamma + beta


# ---------------------------------------------------------------------------
# Kernels
# ---------------------------------------------------------------------------

def _matmul_kernel(x_ref, w_ref, b_ref, o_ref, acc_ref, *, activation):
    # Tiled y = x @ w + b with K reduction on the last grid axis.
    @pl.when(pl.program_id(2) == 0)
    def _init():
        acc_ref[...] = jnp.zeros_like(acc_ref)

    acc_ref[...] += _mm(x_ref[...], w_ref[...])

    @pl.when(pl.program_id(2) == pl.num_programs(2) - 1)
    def _finish():
        y = acc_ref[...] + b_ref[...]
        if activation == "relu":
            y = jnp.maximum(y, 0.0)
        o_ref[...] = y


def _one_head_attention(q_h, k_h, v_h, bias, inv_scale):
    # q_h (Tq, hd), k_h/v_h (Tk, hd), bias (Tq, Tk) additive (0 / -1e10).
    energy = jnp.dot(q_h * inv_scale, k_h.T, preferred_element_type=jnp.float32)
    energy = energy + bias
    m = jnp.max(energy, axis=-1, keepdims=True)
    e = jnp.exp(energy - m)
    attn = e * pl.reciprocal(jnp.sum(e, axis=-1, keepdims=True), approx=True)
    ctx = jnp.dot(attn, v_h, preferred_element_type=jnp.float32)
    return ctx, attn


def _self_attn_kernel(qkv_ref, bias_ref, o_ref, *, n_heads, inv_scale):
    # qkv_ref: (1, T, 3H) lane-dense fused QKV, bias_ref: (1, 1, T, T),
    # o_ref: (1, T, H).  All heads handled inside one grid step (grid=(B,)).
    H = o_ref.shape[-1]
    hd = H // n_heads
    bias = bias_ref[0, 0]
    for h in range(n_heads):
        q_h = qkv_ref[0, :, h * hd:(h + 1) * hd]
        k_h = qkv_ref[0, :, H + h * hd:H + (h + 1) * hd]
        v_h = qkv_ref[0, :, 2 * H + h * hd:2 * H + (h + 1) * hd]
        ctx_h, _ = _one_head_attention(q_h, k_h, v_h, bias, inv_scale)
        o_ref[0, :, h * hd:(h + 1) * hd] = ctx_h


def _cross_attn_body(q_ref, kv_ref, bias_ref, o_ref, a_ref, n_heads, inv_scale):
    H = q_ref.shape[-1]
    hd = H // n_heads
    bias = bias_ref[0, 0]
    for h in range(n_heads):
        q_h = q_ref[0, :, h * hd:(h + 1) * hd]
        k_h = kv_ref[0, :, h * hd:(h + 1) * hd]
        v_h = kv_ref[0, :, H + h * hd:H + (h + 1) * hd]
        ctx_h, attn_h = _one_head_attention(q_h, k_h, v_h, bias, inv_scale)
        o_ref[0, :, h * hd:(h + 1) * hd] = ctx_h
        if a_ref is not None:
            a_ref[0, h] = attn_h


def _cross_attn_kernel(q_ref, kv_ref, bias_ref, o_ref, *, n_heads, inv_scale):
    _cross_attn_body(q_ref, kv_ref, bias_ref, o_ref, None, n_heads, inv_scale)


def _cross_attn_kernel_with_probs(q_ref, kv_ref, bias_ref, o_ref, a_ref, *,
                                  n_heads, inv_scale):
    _cross_attn_body(q_ref, kv_ref, bias_ref, o_ref, a_ref, n_heads, inv_scale)


def _proj_add_ln_kernel(ctx_ref, wo_ref, bo_ref, res_ref, g_ref, b_ref, o_ref):
    # LN(residual + ctx @ wo + bo) fused in one pass.
    y = _mm(ctx_ref[...], wo_ref[...]) + bo_ref[...]
    o_ref[...] = _ln(res_ref[...] + y, g_ref[...], b_ref[...])


def _ffn_add_ln_kernel(x_ref, w1_ref, b1_ref, w2_ref, b2_ref, g_ref, b_ref, o_ref):
    # LN(x + fc2(relu(fc1(x)))) fused in one pass; fc1 activation stays in VMEM.
    x = x_ref[...]
    h = jnp.maximum(_mm(x, w1_ref[...]) + b1_ref[...], 0.0)
    y = _mm(h, w2_ref[...]) + b2_ref[...]
    o_ref[...] = _ln(x + y, g_ref[...], b_ref[...])


# ---------------------------------------------------------------------------
# Wrappers
# ---------------------------------------------------------------------------

def linear(x, w, b, activation=None, tm=256, tn=256, tk=512):
    """y = x @ w + b with an (M, N, K) grid and an f32 VMEM accumulator."""
    orig_shape = x.shape
    K = orig_shape[-1]
    M = math.prod(orig_shape[:-1])
    N = w.shape[1]
    x2 = x.reshape(M, K)
    b2 = b.reshape(1, N)

    tm = M if M <= tm else tm                      # 256 is a multiple of 8
    tn = N if N <= tn else tn                      # 256 is a multiple of 128
    # Only tile K when it divides exactly: a padded partial reduction block
    # would pollute the accumulator.
    tk = tk if (K > tk and K % tk == 0) else K

    y = pl.pallas_call(
        functools.partial(_matmul_kernel, activation=activation),
        grid=(pl.cdiv(M, tm), pl.cdiv(N, tn), pl.cdiv(K, tk)),
        in_specs=[
            pl.BlockSpec((tm, tk), lambda i, j, k: (i, k)),
            pl.BlockSpec((tk, tn), lambda i, j, k: (k, j)),
            pl.BlockSpec((1, tn), lambda i, j, k: (0, j)),
        ],
        out_specs=pl.BlockSpec((tm, tn), lambda i, j, k: (i, j)),
        out_shape=jax.ShapeDtypeStruct((M, N), jnp.float32),
        scratch_shapes=[pltpu.VMEM((tm, tn), jnp.float32)],
        compiler_params=pltpu.CompilerParams(
            dimension_semantics=("parallel", "parallel", "arbitrary"),
            vmem_limit_bytes=VMEM_LIMIT_BYTES),
    )(x2, w, b2)
    return y.reshape(orig_shape[:-1] + (N,))


def _row_tile(M, tm=256):
    return M if M <= tm else tm


def proj_add_layernorm(ctx, residual, wo, bo, gamma, beta):
    B, T, H = ctx.shape
    M = B * T
    tm = _row_tile(M)
    y = pl.pallas_call(
        _proj_add_ln_kernel,
        grid=(pl.cdiv(M, tm),),
        in_specs=[
            pl.BlockSpec((tm, H), lambda i: (i, 0)),
            pl.BlockSpec((H, H), lambda i: (0, 0)),
            pl.BlockSpec((1, H), lambda i: (0, 0)),
            pl.BlockSpec((tm, H), lambda i: (i, 0)),
            pl.BlockSpec((1, H), lambda i: (0, 0)),
            pl.BlockSpec((1, H), lambda i: (0, 0)),
        ],
        out_specs=pl.BlockSpec((tm, H), lambda i: (i, 0)),
        out_shape=jax.ShapeDtypeStruct((M, H), jnp.float32),
        compiler_params=pltpu.CompilerParams(
            dimension_semantics=("parallel",),
            vmem_limit_bytes=VMEM_LIMIT_BYTES),
    )(ctx.reshape(M, H), wo, bo.reshape(1, H), residual.reshape(M, H),
      gamma.reshape(1, H), beta.reshape(1, H))
    return y.reshape(B, T, H)


def ffn_add_layernorm(x, w1, b1, w2, b2, gamma, beta):
    B, T, H = x.shape
    P = w1.shape[1]
    M = B * T
    tm = _row_tile(M)
    # TODO(synk): for very large pf_dim the whole (H,P)/(P,H) weights may not fit
    # VMEM; in that regime tile P with an accumulator as in linear().
    y = pl.pallas_call(
        _ffn_add_ln_kernel,
        grid=(pl.cdiv(M, tm),),
        in_specs=[
            pl.BlockSpec((tm, H), lambda i: (i, 0)),
            pl.BlockSpec((H, P), lambda i: (0, 0)),
            pl.BlockSpec((1, P), lambda i: (0, 0)),
            pl.BlockSpec((P, H), lambda i: (0, 0)),
            pl.BlockSpec((1, H), lambda i: (0, 0)),
            pl.BlockSpec((1, H), lambda i: (0, 0)),
            pl.BlockSpec((1, H), lambda i: (0, 0)),
        ],
        out_specs=pl.BlockSpec((tm, H), lambda i: (i, 0)),
        out_shape=jax.ShapeDtypeStruct((M, H), jnp.float32),
        compiler_params=pltpu.CompilerParams(
            dimension_semantics=("parallel",),
            vmem_limit_bytes=VMEM_LIMIT_BYTES),
    )(x.reshape(M, H), w1, b1.reshape(1, P), w2, b2.reshape(1, H),
      gamma.reshape(1, H), beta.reshape(1, H))
    return y.reshape(B, T, H)


def self_attention(x, p, bias, n_heads):
    """Fused-QKV multi-head self attention; returns context (B, T, H)."""
    B, T, H = x.shape
    hd = H // n_heads
    qkv = linear(x, p["w_qkv"], p["b_qkv"])          # single (H, 3H) matmul
    ctx = pl.pallas_call(
        functools.partial(_self_attn_kernel, n_heads=n_heads,
                          inv_scale=1.0 / math.sqrt(hd)),
        grid=(B,),
        in_specs=[
            pl.BlockSpec((1, T, 3 * H), lambda b: (b, 0, 0)),
            pl.BlockSpec((1, 1, T, T), lambda b: (b, 0, 0, 0)),
        ],
        out_specs=pl.BlockSpec((1, T, H), lambda b: (b, 0, 0)),
        out_shape=jax.ShapeDtypeStruct((B, T, H), jnp.float32),
        compiler_params=pltpu.CompilerParams(
            dimension_semantics=("parallel",),
            vmem_limit_bytes=VMEM_LIMIT_BYTES),
    )(qkv, bias)
    return ctx


def cross_attention(x, enc_src, p, bias, n_heads, want_probs):
    """Cross attention with fused KV projection.  Attention probabilities are
    materialized only when want_probs=True (final layer)."""
    B, Tq, H = x.shape
    Tk = enc_src.shape[1]
    hd = H // n_heads
    q = linear(x, p["wq"], p["bq"])
    kv = linear(enc_src, p["w_kv"], p["b_kv"])       # single (H, 2H) matmul
    common = dict(
        grid=(B,),
        compiler_params=pltpu.CompilerParams(
            dimension_semantics=("parallel",),
            vmem_limit_bytes=VMEM_LIMIT_BYTES),
    )
    in_specs = [
        pl.BlockSpec((1, Tq, H), lambda b: (b, 0, 0)),
        pl.BlockSpec((1, Tk, 2 * H), lambda b: (b, 0, 0)),
        pl.BlockSpec((1, 1, Tq, Tk), lambda b: (b, 0, 0, 0)),
    ]
    if want_probs:
        ctx, attn = pl.pallas_call(
            functools.partial(_cross_attn_kernel_with_probs, n_heads=n_heads,
                              inv_scale=1.0 / math.sqrt(hd)),
            in_specs=in_specs,
            out_specs=(pl.BlockSpec((1, Tq, H), lambda b: (b, 0, 0)),
                       pl.BlockSpec((1, n_heads, Tq, Tk),
                                    lambda b: (b, 0, 0, 0))),
            out_shape=(jax.ShapeDtypeStruct((B, Tq, H), jnp.float32),
                       jax.ShapeDtypeStruct((B, n_heads, Tq, Tk), jnp.float32)),
            **common,
        )(q, kv, bias)
        return ctx, attn
    ctx = pl.pallas_call(
        functools.partial(_cross_attn_kernel, n_heads=n_heads,
                          inv_scale=1.0 / math.sqrt(hd)),
        in_specs=in_specs,
        out_specs=pl.BlockSpec((1, Tq, H), lambda b: (b, 0, 0)),
        out_shape=jax.ShapeDtypeStruct((B, Tq, H), jnp.float32),
        **common,
    )(q, kv, bias)
    return ctx, None


# ---------------------------------------------------------------------------
# Parameter init (deterministic, in-script) and full forward
# ---------------------------------------------------------------------------

def _init_linear(key, in_dim, out_dim):
    k1, k2 = jax.random.split(key)
    bound = 1.0 / math.sqrt(in_dim)
    w = jax.random.uniform(k1, (in_dim, out_dim), jnp.float32, -bound, bound)
    b = jax.random.uniform(k2, (out_dim,), jnp.float32, -bound, bound)
    return w, b


def init_decoder_params(key, input_dim, output_dim, hid_dim, n_layers,
                        pf_dim, max_length=200):
    keys = jax.random.split(key, 3 + n_layers)
    params = {
        "pos_embedding": 0.02 * jax.random.normal(
            keys[0], (max_length, input_dim), jnp.float32),
        "linear": _init_linear(keys[1], input_dim, hid_dim),
        "fc_out": _init_linear(keys[2], hid_dim, output_dim),
        "layers": [],
    }
    ones = jnp.ones((hid_dim,), jnp.float32)
    zeros = jnp.zeros((hid_dim,), jnp.float32)
    for li in range(n_layers):
        lk = jax.random.split(keys[3 + li], 7)
        w_qkv, b_qkv = _init_linear(lk[0], hid_dim, 3 * hid_dim)
        wo_s, bo_s = _init_linear(lk[1], hid_dim, hid_dim)
        wq, bq = _init_linear(lk[2], hid_dim, hid_dim)
        w_kv, b_kv = _init_linear(lk[3], hid_dim, 2 * hid_dim)
        wo_c, bo_c = _init_linear(lk[4], hid_dim, hid_dim)
        layer = {
            "self_attn": {"w_qkv": w_qkv, "b_qkv": b_qkv, "wo": wo_s, "bo": bo_s},
            "enc_attn": {"wq": wq, "bq": bq, "w_kv": w_kv, "b_kv": b_kv,
                         "wo": wo_c, "bo": bo_c},
            "fc1": _init_linear(lk[5], hid_dim, pf_dim),
            "fc2": _init_linear(lk[6], pf_dim, hid_dim),
            "ln1": (ones, zeros),
            "ln2": (ones, zeros),
            "ln3": (ones, zeros),
        }
        params["layers"].append(layer)
    return params


def decoder_forward(params, trg, enc_src, trg_mask, src_mask, hid_dim, n_heads):
    B, T, _ = trg.shape
    S = enc_src.shape[1]
    scale = math.sqrt(hid_dim)                       # Decoder.scale = sqrt(hid_dim)
    pos_emb = params["pos_embedding"][:T]            # pos = arange(T)
    x = trg * scale + pos_emb[None, :, :]            # dropout == identity
    x = linear(x, *params["linear"])

    # Additive attention biases (0 where kept, -1e10 where masked), computed
    # once per forward and re-used by every layer (DMA'd once per batch).
    self_bias = (jnp.broadcast_to(trg_mask, (B, 1, T, T)).astype(jnp.float32)
                 - 1.0) * 1e10
    cross_bias = (jnp.broadcast_to(src_mask, (B, 1, T, S)).astype(jnp.float32)
                  - 1.0) * 1e10

    attention = None
    n_layers = len(params["layers"])
    for li, lp in enumerate(params["layers"]):
        # self attention -> fused out-proj + residual + LN
        ctx = self_attention(x, lp["self_attn"], self_bias, n_heads)
        x = proj_add_layernorm(ctx, x, lp["self_attn"]["wo"],
                               lp["self_attn"]["bo"], *lp["ln1"])
        # cross attention (probs only materialized for the final layer)
        ctx, attn = cross_attention(x, enc_src, lp["enc_attn"], cross_bias,
                                    n_heads, want_probs=(li == n_layers - 1))
        if attn is not None:
            attention = attn
        x = proj_add_layernorm(ctx, x, lp["enc_attn"]["wo"],
                               lp["enc_attn"]["bo"], *lp["ln2"])
        # fully fused position-wise FFN + residual + LN
        x = ffn_add_layernorm(x, *lp["fc1"], *lp["fc2"], *lp["ln3"])

    output = linear(x, *params["fc_out"])
    return output, attention


# ---------------------------------------------------------------------------
# Demo
# ---------------------------------------------------------------------------

if __name__ == "__main__":
    input_dim, output_dim = 16, 12
    hid_dim, n_layers, n_heads, pf_dim = 32, 2, 4, 64
    B, trg_len, src_len = 2, 8, 16

    root = jax.random.PRNGKey(0)
    k_trg, k_enc, k_par = jax.random.split(root, 3)

    trg = jax.random.normal(k_trg, (B, trg_len, input_dim), jnp.float32)
    enc_src = jax.random.normal(k_enc, (B, src_len, hid_dim), jnp.float32)
    # causal target mask [B, 1, Tq, Tq]; all-ones source mask [B, 1, 1, S]
    trg_mask = jnp.broadcast_to(
        jnp.tril(jnp.ones((trg_len, trg_len), jnp.float32))[None, None],
        (B, 1, trg_len, trg_len))
    src_mask = jnp.ones((B, 1, 1, src_len), jnp.float32)

    params = init_decoder_params(k_par, input_dim, output_dim, hid_dim,
                                 n_layers, pf_dim)

    fwd = jax.jit(functools.partial(decoder_forward,
                                    hid_dim=hid_dim, n_heads=n_heads))
    output, attention = fwd(params, trg, enc_src, trg_mask, src_mask)
    jax.block_until_ready((output, attention))

    assert output.shape == (B, trg_len, output_dim)
    assert attention.shape == (B, n_heads, trg_len, src_len)
    assert bool(jnp.all(jnp.isfinite(output)))
    assert bool(jnp.all(jnp.isfinite(attention)))
    print("KERNEL_OK")
</pallas_src>

<mosaic_0001>
module attributes {stable_mosaic.version = 11 : i64} {
  func.func @_matmul_kernel(%arg0: i32, %arg1: i32, %arg2: i32, %arg3: memref<16x32xf32, #tpu.memory_space<vmem>>, %arg4: memref<32x96xf32, #tpu.memory_space<vmem>>, %arg5: memref<1x96xf32, #tpu.memory_space<vmem>>, %arg6: memref<16x96xf32, #tpu.memory_space<vmem>>, %arg7: memref<16x96xf32, #tpu.memory_space<vmem>>) attributes {dimension_semantics = [#tpu.dimension_semantics<parallel>, #tpu.dimension_semantics<parallel>, #tpu.dimension_semantics<arbitrary>], iteration_bounds = array<i64: 1, 1, 1>, scalar_prefetch = 0 : i64, scratch_operands = 1 : i64, tpu.core_type = #tpu.core_type<tc>, window_params = [{transform_indices = @transform_0, window_bounds = array<i64: 16, 32>}, {transform_indices = @transform_1, window_bounds = array<i64: 32, 96>}, {transform_indices = @transform_2, window_bounds = array<i64: 1, 96>}, {transform_indices = @transform_3, window_bounds = array<i64: 16, 96>}]} {
    %c0_i32 = arith.constant 0 : i32
    %0 = arith.cmpi eq, %arg2, %c0_i32 : i32
    %1 = arith.extui %0 : i1 to i32
    %c0_i32_0 = arith.constant 0 : i32
    %2 = arith.cmpi ne, %1, %c0_i32_0 : i32
    scf.if %2 {
      %cst_10 = arith.constant 0.000000e+00 : f32
      %12 = vector.broadcast %cst_10 : f32 to vector<16x96xf32>
      %c0_11 = arith.constant 0 : index
      %c0_12 = arith.constant 0 : index
      %13 = vector.load %arg7[%c0_11, %c0_12] : memref<16x96xf32, #tpu.memory_space<vmem>>, vector<16x96xf32>
      tpu.vector_store %arg7[%c0_11, %c0_12], %12 {strides = array<i32>} : memref<16x96xf32, #tpu.memory_space<vmem>>, vector<16x96xf32>,
    } else {
    }
    %c0 = arith.constant 0 : index
    %c0_1 = arith.constant 0 : index
    %3 = vector.load %arg7[%c0, %c0_1] : memref<16x96xf32, #tpu.memory_space<vmem>>, vector<16x96xf32>
    %c0_2 = arith.constant 0 : index
    %c0_3 = arith.constant 0 : index
    %4 = vector.load %arg3[%c0_2, %c0_3] : memref<16x32xf32, #tpu.memory_space<vmem>>, vector<16x32xf32>
    %c0_4 = arith.constant 0 : index
    %c0_5 = arith.constant 0 : index
    %5 = vector.load %arg4[%c0_4, %c0_5] : memref<32x96xf32, #tpu.memory_space<vmem>>, vector<32x96xf32>
    %cst = arith.constant dense<0.000000e+00> : vector<16x96xf32>
    %6 = tpu.matmul %4, %5, %cst {dimension_numbers = #tpu.dot_dimension_numbers<[1], [0], [0], [1], [0, 0, 1, 1], [], []>} : vector<16x32xf32>, vector<32x96xf32>, vector<16x96xf32> -> vector<16x96xf32>
    %7 = arith.addf %3, %6 : vector<16x96xf32>
    %c0_6 = arith.constant 0 : index
    %c0_7 = arith.constant 0 : index
    %8 = vector.load %arg7[%c0_6, %c0_7] : memref<16x96xf32, #tpu.memory_space<vmem>>, vector<16x96xf32>
    tpu.vector_store %arg7[%c0_6, %c0_7], %7 {strides = array<i32>} : memref<16x96xf32, #tpu.memory_space<vmem>>, vector<16x96xf32>,
    %c0_i32_8 = arith.constant 0 : i32
    %9 = arith.cmpi eq, %arg2, %c0_i32_8 : i32
    %10 = arith.extui %9 : i1 to i32
    %c0_i32_9 = arith.constant 0 : i32
    %11 = arith.cmpi ne, %10, %c0_i32_9 : i32
    scf.if %11 {
      %c0_10 = arith.constant 0 : index
      %c0_11 = arith.constant 0 : index
      %12 = vector.load %arg7[%c0_10, %c0_11] : memref<16x96xf32, #tpu.memory_space<vmem>>, vector<16x96xf32>
      %c0_12 = arith.constant 0 : index
      %c0_13 = arith.constant 0 : index
      %13 = vector.load %arg5[%c0_12, %c0_13] : memref<1x96xf32, #tpu.memory_space<vmem>>, vector<1x96xf32>
      %14 = vector.broadcast %13 : vector<1x96xf32> to vector<16x96xf32>
      %15 = arith.addf %12, %14 : vector<16x96xf32>
      %c0_14 = arith.constant 0 : index
      %c0_15 = arith.constant 0 : index
      %16 = vector.load %arg6[%c0_14, %c0_15] : memref<16x96xf32, #tpu.memory_space<vmem>>, vector<16x96xf32>
      tpu.vector_store %arg6[%c0_14, %c0_15], %15 {strides = array<i32>} : memref<16x96xf32, #tpu.memory_space<vmem>>, vector<16x96xf32>,
    } else {
    }
    return
  }
  func.func @transform_0(%arg0: i32, %arg1: i32, %arg2: i32) -> (i32, i32) {
    %c0_i32 = arith.constant 0 : i32
    return %arg0, %arg2 : i32, i32
  }
  func.func @transform_1(%arg0: i32, %arg1: i32, %arg2: i32) -> (i32, i32) {
    %c0_i32 = arith.constant 0 : i32
    return %arg2, %arg1 : i32, i32
  }
  func.func @transform_2(%arg0: i32, %arg1: i32, %arg2: i32) -> (i32, i32) {
    %c0_i32 = arith.constant 0 : i32
    %c0_i32_0 = arith.constant 0 : i32
    return %c0_i32, %arg1 : i32, i32
  }
  func.func @transform_3(%arg0: i32, %arg1: i32, %arg2: i32) -> (i32, i32) {
    %c0_i32 = arith.constant 0 : i32
    return %arg0, %arg1 : i32, i32
  }
}

module attributes {stable_mosaic.version = 11 : i64} {
  func.func @_matmul_kernel(%arg0: i32, %arg1: i32, %arg2: i32, %arg3: memref<16x16xf32, #tpu.memory_space<vmem>>, %arg4: memref<16x32xf32, #tpu.memory_space<vmem>>, %arg5: memref<1x32xf32, #tpu.memory_space<vmem>>, %arg6: memref<16x32xf32, #tpu.memory_space<vmem>>, %arg7: memref<16x32xf32, #tpu.memory_space<vmem>>) attributes {dimension_semantics = [#tpu.dimension_semantics<parallel>, #tpu.dimension_semantics<parallel>, #tpu.dimension_semantics<arbitrary>], iteration_bounds = array<i64: 1, 1, 1>, scalar_prefetch = 0 : i64, scratch_operands = 1 : i64, tpu.core_type = #tpu.core_type<tc>, window_params = [{transform_indices = @transform_0, window_bounds = array<i64: 16, 16>}, {transform_indices = @transform_1, window_bounds = array<i64: 16, 32>}, {transform_indices = @transform_2, window_bounds = array<i64: 1, 32>}, {transform_indices = @transform_3, window_bounds = array<i64: 16, 32>}]} {
    %c0_i32 = arith.constant 0 : i32
    %0 = arith.cmpi eq, %arg2, %c0_i32 : i32
    %1 = arith.extui %0 : i1 to i32
    %c0_i32_0 = arith.constant 0 : i32
    %2 = arith.cmpi ne, %1, %c0_i32_0 : i32
    scf.if %2 {
      %cst_10 = arith.constant 0.000000e+00 : f32
      %12 = vector.broadcast %cst_10 : f32 to vector<16x32xf32>
      %c0_11 = arith.constant 0 : index
      %c0_12 = arith.constant 0 : index
      %13 = vector.load %arg7[%c0_11, %c0_12] : memref<16x32xf32, #tpu.memory_space<vmem>>, vector<16x32xf32>
      tpu.vector_store %arg7[%c0_11, %c0_12], %12 {strides = array<i32>} : memref<16x32xf32, #tpu.memory_space<vmem>>, vector<16x32xf32>,
    } else {
    }
    %c0 = arith.constant 0 : index
    %c0_1 = arith.constant 0 : index
    %3 = vector.load %arg7[%c0, %c0_1] : memref<16x32xf32, #tpu.memory_space<vmem>>, vector<16x32xf32>
    %c0_2 = arith.constant 0 : index
    %c0_3 = arith.constant 0 : index
    %4 = vector.load %arg3[%c0_2, %c0_3] : memref<16x16xf32, #tpu.memory_space<vmem>>, vector<16x16xf32>
    %c0_4 = arith.constant 0 : index
    %c0_5 = arith.constant 0 : index
    %5 = vector.load %arg4[%c0_4, %c0_5] : memref<16x32xf32, #tpu.memory_space<vmem>>, vector<16x32xf32>
    %cst = arith.constant dense<0.000000e+00> : vector<16x32xf32>
    %6 = tpu.matmul %4, %5, %cst {dimension_numbers = #tpu.dot_dimension_numbers<[1], [0], [0], [1], [0, 0, 1, 1], [], []>} : vector<16x16xf32>, vector<16x32xf32>, vector<16x32xf32> -> vector<16x32xf32>
    %7 = arith.addf %3, %6 : vector<16x32xf32>
    %c0_6 = arith.constant 0 : index
    %c0_7 = arith.constant 0 : index
    %8 = vector.load %arg7[%c0_6, %c0_7] : memref<16x32xf32, #tpu.memory_space<vmem>>, vector<16x32xf32>
    tpu.vector_store %arg7[%c0_6, %c0_7], %7 {strides = array<i32>} : memref<16x32xf32, #tpu.memory_space<vmem>>, vector<16x32xf32>,
    %c0_i32_8 = arith.constant 0 : i32
    %9 = arith.cmpi eq, %arg2, %c0_i32_8 : i32
    %10 = arith.extui %9 : i1 to i32
    %c0_i32_9 = arith.constant 0 : i32
    %11 = arith.cmpi ne, %10, %c0_i32_9 : i32
    scf.if %11 {
      %c0_10 = arith.constant 0 : index
      %c0_11 = arith.constant 0 : index
      %12 = vector.load %arg7[%c0_10, %c0_11] : memref<16x32xf32, #tpu.memory_space<vmem>>, vector<16x32xf32>
      %c0_12 = arith.constant 0 : index
      %c0_13 = arith.constant 0 : index
      %13 = vector.load %arg5[%c0_12, %c0_13] : memref<1x32xf32, #tpu.memory_space<vmem>>, vector<1x32xf32>
      %14 = vector.broadcast %13 : vector<1x32xf32> to vector<16x32xf32>
      %15 = arith.addf %12, %14 : vector<16x32xf32>
      %c0_14 = arith.constant 0 : index
      %c0_15 = arith.constant 0 : index
      %16 = vector.load %arg6[%c0_14, %c0_15] : memref<16x32xf32, #tpu.memory_space<vmem>>, vector<16x32xf32>
      tpu.vector_store %arg6[%c0_14, %c0_15], %15 {strides = array<i32>} : memref<16x32xf32, #tpu.memory_space<vmem>>, vector<16x32xf32>,
    } else {
    }
    return
  }
  func.func @transform_0(%arg0: i32, %arg1: i32, %arg2: i32) -> (i32, i32) {
    %c0_i32 = arith.constant 0 : i32
    return %arg0, %arg2 : i32, i32
  }
  func.func @transform_1(%arg0: i32, %arg1: i32, %arg2: i32) -> (i32, i32) {
    %c0_i32 = arith.constant 0 : i32
    return %arg2, %arg1 : i32, i32
  }
  func.func @transform_2(%arg0: i32, %arg1: i32, %arg2: i32) -> (i32, i32) {
    %c0_i32 = arith.constant 0 : i32
    %c0_i32_0 = arith.constant 0 : i32
    return %c0_i32, %arg1 : i32, i32
  }
  func.func @transform_3(%arg0: i32, %arg1: i32, %arg2: i32) -> (i32, i32) {
    %c0_i32 = arith.constant 0 : i32
    return %arg0, %arg1 : i32, i32
  }
}

module attributes {stable_mosaic.version = 11 : i64} {
  func.func @_self_attn_kernel(%arg0: i32, %arg1: memref<1x8x96xf32, #tpu.memory_space<vmem>>, %arg2: memref<1x1x8x8xf32, #tpu.memory_space<vmem>>, %arg3: memref<1x8x32xf32, #tpu.memory_space<vmem>>) attributes {dimension_semantics = [#tpu.dimension_semantics<parallel>], iteration_bounds = array<i64: 2>, scalar_prefetch = 0 : i64, scratch_operands = 0 : i64, tpu.core_type = #tpu.core_type<tc>, window_params = [{transform_indices = @transform_0, window_bounds = array<i64: 1, 8, 96>}, {transform_indices = @transform_1, window_bounds = array<i64: 1, 1, 8, 8>}, {transform_indices = @transform_2, window_bounds = array<i64: 1, 8, 32>}]} {
    %c0 = arith.constant 0 : index
    %c0_0 = arith.constant 0 : index
    %c0_1 = arith.constant 0 : index
    %c0_2 = arith.constant 0 : index
    %0 = vector.load %arg2[%c0, %c0_0, %c0_1, %c0_2] : memref<1x1x8x8xf32, #tpu.memory_space<vmem>>, vector<1x1x8x8xf32>
    %1 = vector.shape_cast %0 : vector<1x1x8x8xf32> to vector<8x8xf32>
    %c0_3 = arith.constant 0 : index
    %c0_4 = arith.constant 0 : index
    %c0_5 = arith.constant 0 : index
    %2 = vector.load %arg1[%c0_3, %c0_4, %c0_5] : memref<1x8x96xf32, #tpu.memory_space<vmem>>, vector<1x8x8xf32>
    %3 = vector.shape_cast %2 : vector<1x8x8xf32> to vector<8x8xf32>
    %c0_6 = arith.constant 0 : index
    %c0_7 = arith.constant 0 : index
    %c32 = arith.constant 32 : index
    %4 = vector.load %arg1[%c0_6, %c0_7, %c32] : memref<1x8x96xf32, #tpu.memory_space<vmem>>, vector<1x8x8xf32>
    %5 = vector.shape_cast %4 : vector<1x8x8xf32> to vector<8x8xf32>
    %c0_8 = arith.constant 0 : index
    %c0_9 = arith.constant 0 : index
    %c64 = arith.constant 64 : index
    %6 = vector.load %arg1[%c0_8, %c0_9, %c64] : memref<1x8x96xf32, #tpu.memory_space<vmem>>, vector<1x8x8xf32>
    %7 = vector.shape_cast %6 : vector<1x8x8xf32> to vector<8x8xf32>
    %cst = arith.constant 0.353553385 : f32
    %8 = vector.broadcast %cst : f32 to vector<8x8xf32>
    %9 = arith.mulf %3, %8 : vector<8x8xf32>
    %10 = tpu.transpose %5, [1, 0] : vector<8x8xf32> -> vector<8x8xf32>
    %cst_10 = arith.constant dense<0.000000e+00> : vector<8x8xf32>
    %11 = tpu.matmul %9, %10, %cst_10 {dimension_numbers = #tpu.dot_dimension_numbers<[1], [0], [0], [1], [0, 0, 1, 1], [], []>} : vector<8x8xf32>, vector<8x8xf32>, vector<8x8xf32> -> vector<8x8xf32>
    %12 = arith.addf %11, %1 : vector<8x8xf32>
    %cst_11 = arith.constant dense<0xFF800000> : vector<8xf32>
    %13 = vector.multi_reduction <maximumf>, %12, %cst_11 [1] : vector<8x8xf32> to vector<8xf32>
    %14 = vector.shape_cast %13 : vector<8xf32> to vector<8x1xf32>
    %15 = vector.broadcast %14 : vector<8x1xf32> to vector<8x8xf32>
    %16 = arith.subf %12, %15 : vector<8x8xf32>
    %17 = math.exp %16 : vector<8x8xf32>
    %cst_12 = arith.constant dense<0.000000e+00> : vector<8xf32>
    %18 = vector.multi_reduction <add>, %17, %cst_12 [1] : vector<8x8xf32> to vector<8xf32>
    %19 = vector.shape_cast %18 : vector<8xf32> to vector<8x1xf32>
    %20 = tpu.reciprocal %19 {approx = true} : vector<8x1xf32> -> vector<8x1xf32>
    %21 = vector.broadcast %20 : vector<8x1xf32> to vector<8x8xf32>
    %22 = arith.mulf %17, %21 : vector<8x8xf32>
    %cst_13 = arith.constant dense<0.000000e+00> : vector<8x8xf32>
    %23 = tpu.matmul %22, %7, %cst_13 {dimension_numbers = #tpu.dot_dimension_numbers<[1], [0], [0], [1], [0, 0, 1, 1], [], []>} : vector<8x8xf32>, vector<8x8xf32>, vector<8x8xf32> -> vector<8x8xf32>
    %c0_14 = arith.constant 0 : index
    %c0_15 = arith.constant 0 : index
    %c0_16 = arith.constant 0 : index
    %24 = vector.load %arg3[%c0_14, %c0_15, %c0_16] : memref<1x8x32xf32, #tpu.memory_space<vmem>>, vector<1x8x8xf32>
    %25 = vector.shape_cast %24 : vector<1x8x8xf32> to vector<8x8xf32>
    %26 = vector.shape_cast %23 : vector<8x8xf32> to vector<1x8x8xf32>
    tpu.vector_store %arg3[%c0_14, %c0_15, %c0_16], %26 {strides = array<i32>} : memref<1x8x32xf32, #tpu.memory_space<vmem>>, vector<1x8x8xf32>,
    %c0_17 = arith.constant 0 : index
    %c0_18 = arith.constant 0 : index
    %c8 = arith.constant 8 : index
    %27 = vector.load %arg1[%c0_17, %c0_18, %c8] : memref<1x8x96xf32, #tpu.memory_space<vmem>>, vector<1x8x8xf32>
    %28 = vector.shape_cast %27 : vector<1x8x8xf32> to vector<8x8xf32>
    %c0_19 = arith.constant 0 : index
    %c0_20 = arith.constant 0 : index
    %c40 = arith.constant 40 : index
    %29 = vector.load %arg1[%c0_19, %c0_20, %c40] : memref<1x8x96xf32, #tpu.memory_space<vmem>>, vector<1x8x8xf32>
    %30 = vector.shape_cast %29 : vector<1x8x8xf32> to vector<8x8xf32>
    %c0_21 = arith.constant 0 : index
    %c0_22 = arith.constant 0 : index
    %c72 = arith.constant 72 : index
    %31 = vector.load %arg1[%c0_21, %c0_22, %c72] : memref<1x8x96xf32, #tpu.memory_space<vmem>>, vector<1x8x8xf32>
    %32 = vector.shape_cast %31 : vector<1x8x8xf32> to vector<8x8xf32>
    %cst_23 = arith.constant 0.353553385 : f32
    %33 = vector.broadcast %cst_23 : f32 to vector<8x8xf32>
    %34 = arith.mulf %28, %33 : vector<8x8xf32>
    %35 = tpu.transpose %30, [1, 0] : vector<8x8xf32> -> vector<8x8xf32>
    %cst_24 = arith.constant dense<0.000000e+00> : vector<8x8xf32>
    %36 = tpu.matmul %34, %35, %cst_24 {dimension_numbers = #tpu.dot_dimension_numbers<[1], [0], [0], [1], [0, 0, 1, 1], [], []>} : vector<8x8xf32>, vector<8x8xf32>, vector<8x8xf32> -> vector<8x8xf32>
    %37 = arith.addf %36, %1 : vector<8x8xf32>
    %cst_25 = arith.constant dense<0xFF800000> : vector<8xf32>
    %38 = vector.multi_reduction <maximumf>, %37, %cst_25 [1] : vector<8x8xf32> to vector<8xf32>
    %39 = vector.shape_cast %38 : vector<8xf32> to vector<8x1xf32>
    %40 = vector.broadcast %39 : vector<8x1xf32> to vector<8x8xf32>
    %41 = arith.subf %37, %40 : vector<8x8xf32>
    %42 = math.exp %41 : vector<8x8xf32>
    %cst_26 = arith.constant dense<0.000000e+00> : vector<8xf32>
    %43 = vector.multi_reduction <add>, %42, %cst_26 [1] : vector<8x8xf32> to vector<8xf32>
    %44 = vector.shape_cast %43 : vector<8xf32> to vector<8x1xf32>
    %45 = tpu.reciprocal %44 {approx = true} : vector<8x1xf32> -> vector<8x1xf32>
    %46 = vector.broadcast %45 : vector<8x1xf32> to vector<8x8xf32>
    %47 = arith.mulf %42, %46 : vector<8x8xf32>
    %cst_27 = arith.constant dense<0.000000e+00> : vector<8x8xf32>
    %48 = tpu.matmul %47, %32, %cst_27 {dimension_numbers = #tpu.dot_dimension_numbers<[1], [0], [0], [1], [0, 0, 1, 1], [], []>} : vector<8x8xf32>, vector<8x8xf32>, vector<8x8xf32> -> vector<8x8xf32>
    %c0_28 = arith.constant 0 : index
    %c0_29 = arith.constant 0 : index
    %c8_30 = arith.constant 8 : index
    %49 = vector.load %arg3[%c0_28, %c0_29, %c8_30] : memref<1x8x32xf32, #tpu.memory_space<vmem>>, vector<1x8x8xf32>
    %50 = vector.shape_cast %49 : vector<1x8x8xf32> to vector<8x8xf32>
    %51 = vector.shape_cast %48 : vector<8x8xf32> to vector<1x8x8xf32>
    tpu.vector_store %arg3[%c0_28, %c0_29, %c8_30], %51 {strides = array<i32>} : memref<1x8x32xf32, #tpu.memory_space<vmem>>, vector<1x8x8xf32>,
    %c0_31 = arith.constant 0 : index
    %c0_32 = arith.constant 0 : index
    %c16 = arith.constant 16 : index
    %52 = vector.load %arg1[%c0_31, %c0_32, %c16] : memref<1x8x96xf32, #tpu.memory_space<vmem>>, vector<1x8x8xf32>
    %53 = vector.shape_cast %52 : vector<1x8x8xf32> to vector<8x8xf32>
    %c0_33 = arith.constant 0 : index
    %c0_34 = arith.constant 0 : index
    %c48 = arith.constant 48 : index
    %54 = vector.load %arg1[%c0_33, %c0_34, %c48] : memref<1x8x96xf32, #tpu.memory_space<vmem>>, vector<1x8x8xf32>
    %55 = vector.shape_cast %54 : vector<1x8x8xf32> to vector<8x8xf32>
    %c0_35 = arith.constant 0 : index
    %c0_36 = arith.constant 0 : index
    %c80 = arith.constant 80 : index
    %56 = vector.load %arg1[%c0_35, %c0_36, %c80] : memref<1x8x96xf32, #tpu.memory_space<vmem>>, vector<1x8x8xf32>
    %57 = vector.shape_cast %56 : vector<1x8x8xf32> to vector<8x8xf32>
    %cst_37 = arith.constant 0.353553385 : f32
    %58 = vector.broadcast %cst_37 : f32 to vector<8x8xf32>
    %59 = arith.mulf %53, %58 : vector<8x8xf32>
    %60 = tpu.transpose %55, [1, 0] : vector<8x8xf32> -> vector<8x8xf32>
    %cst_38 = arith.constant dense<0.000000e+00> : vector<8x8xf32>
    %61 = tpu.matmul %59, %60, %cst_38 {dimension_numbers = #tpu.dot_dimension_numbers<[1], [0], [0], [1], [0, 0, 1, 1], [], []>} : vector<8x8xf32>, vector<8x8xf32>, vector<8x8xf32> -> vector<8x8xf32>
    %62 = arith.addf %61, %1 : vector<8x8xf32>
    %cst_39 = arith.constant dense<0xFF800000> : vector<8xf32>
    %63 = vector.multi_reduction <maximumf>, %62, %cst_39 [1] : vector<8x8xf32> to vector<8xf32>
    %64 = vector.shape_cast %63 : vector<8xf32> to vector<8x1xf32>
    %65 = vector.broadcast %64 : vector<8x1xf32> to vector<8x8xf32>
    %66 = arith.subf %62, %65 : vector<8x8xf32>
    %67 = math.exp %66 : vector<8x8xf32>
    %cst_40 = arith.constant dense<0.000000e+00> : vector<8xf32>
    %68 = vector.multi_reduction <add>, %67, %cst_40 [1] : vector<8x8xf32> to vector<8xf32>
    %69 = vector.shape_cast %68 : vector<8xf32> to vector<8x1xf32>
    %70 = tpu.reciprocal %69 {approx = true} : vector<8x1xf32> -> vector<8x1xf32>
    %71 = vector.broadcast %70 : vector<8x1xf32> to vector<8x8xf32>
    %72 = arith.mulf %67, %71 : vector<8x8xf32>
    %cst_41 = arith.constant dense<0.000000e+00> : vector<8x8xf32>
    %73 = tpu.matmul %72, %57, %cst_41 {dimension_numbers = #tpu.dot_dimension_numbers<[1], [0], [0], [1], [0, 0, 1, 1], [], []>} : vector<8x8xf32>, vector<8x8xf32>, vector<8x8xf32> -> vector<8x8xf32>
    %c0_42 = arith.constant 0 : index
    %c0_43 = arith.constant 0 : index
    %c16_44 = arith.constant 16 : index
    %74 = vector.load %arg3[%c0_42, %c0_43, %c16_44] : memref<1x8x32xf32, #tpu.memory_space<vmem>>, vector<1x8x8xf32>
    %75 = vector.shape_cast %74 : vector<1x8x8xf32> to vector<8x8xf32>
    %76 = vector.shape_cast %73 : vector<8x8xf32> to vector<1x8x8xf32>
    tpu.vector_store %arg3[%c0_42, %c0_43, %c16_44], %76 {strides = array<i32>} : memref<1x8x32xf32, #tpu.memory_space<vmem>>, vector<1x8x8xf32>,
    %c0_45 = arith.constant 0 : index
    %c0_46 = arith.constant 0 : index
    %c24 = arith.constant 24 : index
    %77 = vector.load %arg1[%c0_45, %c0_46, %c24] : memref<1x8x96xf32, #tpu.memory_space<vmem>>, vector<1x8x8xf32>
    %78 = vector.shape_cast %77 : vector<1x8x8xf32> to vector<8x8xf32>
    %c0_47 = arith.constant 0 : index
    %c0_48 = arith.constant 0 : index
    %c56 = arith.constant 56 : index
    %79 = vector.load %arg1[%c0_47, %c0_48, %c56] : memref<1x8x96xf32, #tpu.memory_space<vmem>>, vector<1x8x8xf32>
    %80 = vector.shape_cast %79 : vector<1x8x8xf32> to vector<8x8xf32>
    %c0_49 = arith.constant 0 : index
    %c0_50 = arith.constant 0 : index
    %c88 = arith.constant 88 : index
    %81 = vector.load %arg1[%c0_49, %c0_50, %c88] : memref<1x8x96xf32, #tpu.memory_space<vmem>>, vector<1x8x8xf32>
    %82 = vector.shape_cast %81 : vector<1x8x8xf32> to vector<8x8xf32>
    %cst_51 = arith.constant 0.353553385 : f32
    %83 = vector.broadcast %cst_51 : f32 to vector<8x8xf32>
    %84 = arith.mulf %78, %83 : vector<8x8xf32>
    %85 = tpu.transpose %80, [1, 0] : vector<8x8xf32> -> vector<8x8xf32>
    %cst_52 = arith.constant dense<0.000000e+00> : vector<8x8xf32>
    %86 = tpu.matmul %84, %85, %cst_52 {dimension_numbers = #tpu.dot_dimension_numbers<[1], [0], [0], [1], [0, 0, 1, 1], [], []>} : vector<8x8xf32>, vector<8x8xf32>, vector<8x8xf32> -> vector<8x8xf32>
    %87 = arith.addf %86, %1 : vector<8x8xf32>
    %cst_53 = arith.constant dense<0xFF800000> : vector<8xf32>
    %88 = vector.multi_reduction <maximumf>, %87, %cst_53 [1] : vector<8x8xf32> to vector<8xf32>
    %89 = vector.shape_cast %88 : vector<8xf32> to vector<8x1xf32>
    %90 = vector.broadcast %89 : vector<8x1xf32> to vector<8x8xf32>
    %91 = arith.subf %87, %90 : vector<8x8xf32>
    %92 = math.exp %91 : vector<8x8xf32>
    %cst_54 = arith.constant dense<0.000000e+00> : vector<8xf32>
    %93 = vector.multi_reduction <add>, %92, %cst_54 [1] : vector<8x8xf32> to vector<8xf32>
    %94 = vector.shape_cast %93 : vector<8xf32> to vector<8x1xf32>
    %95 = tpu.reciprocal %94 {approx = true} : vector<8x1xf32> -> vector<8x1xf32>
    %96 = vector.broadcast %95 : vector<8x1xf32> to vector<8x8xf32>
    %97 = arith.mulf %92, %96 : vector<8x8xf32>
    %cst_55 = arith.constant dense<0.000000e+00> : vector<8x8xf32>
    %98 = tpu.matmul %97, %82, %cst_55 {dimension_numbers = #tpu.dot_dimension_numbers<[1], [0], [0], [1], [0, 0, 1, 1], [], []>} : vector<8x8xf32>, vector<8x8xf32>, vector<8x8xf32> -> vector<8x8xf32>
    %c0_56 = arith.constant 0 : index
    %c0_57 = arith.constant 0 : index
    %c24_58 = arith.constant 24 : index
    %99 = vector.load %arg3[%c0_56, %c0_57, %c24_58] : memref<1x8x32xf32, #tpu.memory_space<vmem>>, vector<1x8x8xf32>
    %100 = vector.shape_cast %99 : vector<1x8x8xf32> to vector<8x8xf32>
    %101 = vector.shape_cast %98 : vector<8x8xf32> to vector<1x8x8xf32>
    tpu.vector_store %arg3[%c0_56, %c0_57, %c24_58], %101 {strides = array<i32>} : memref<1x8x32xf32, #tpu.memory_space<vmem>>, vector<1x8x8xf32>,
    return
  }
  func.func @transform_0(%arg0: i32) -> (i32, i32, i32) {
    %c0_i32 = arith.constant 0 : i32
    %c0_i32_0 = arith.constant 0 : i32
    %c0_i32_1 = arith.constant 0 : i32
    return %arg0, %c0_i32, %c0_i32_0 : i32, i32, i32
  }
  func.func @transform_1(%arg0: i32) -> (i32, i32, i32, i32) {
    %c0_i32 = arith.constant 0 : i32
    %c0_i32_0 = arith.constant 0 : i32
    %c0_i32_1 = arith.constant 0 : i32
    %c0_i32_2 = arith.constant 0 : i32
    return %arg0, %c0_i32, %c0_i32_0, %c0_i32_1 : i32, i32, i32, i32
  }
  func.func @transform_2(%arg0: i32) -> (i32, i32, i32) {
    %c0_i32 = arith.constant 0 : i32
    %c0_i32_0 = arith.constant 0 : i32
    %c0_i32_1 = arith.constant 0 : i32
    return %arg0, %c0_i32, %c0_i32_0 : i32, i32, i32
  }
}

module attributes {stable_mosaic.version = 11 : i64} {
  func.func @_proj_add_ln_kernel(%arg0: i32, %arg1: memref<16x32xf32, #tpu.memory_space<vmem>>, %arg2: memref<32x32xf32, #tpu.memory_space<vmem>>, %arg3: memref<1x32xf32, #tpu.memory_space<vmem>>, %arg4: memref<16x32xf32, #tpu.memory_space<vmem>>, %arg5: memref<1x32xf32, #tpu.memory_space<vmem>>, %arg6: memref<1x32xf32, #tpu.memory_space<vmem>>, %arg7: memref<16x32xf32, #tpu.memory_space<vmem>>) attributes {dimension_semantics = [#tpu.dimension_semantics<parallel>], iteration_bounds = array<i64: 1>, scalar_prefetch = 0 : i64, scratch_operands = 0 : i64, tpu.core_type = #tpu.core_type<tc>, window_params = [{transform_indices = @transform_0, window_bounds = array<i64: 16, 32>}, {pipeline_mode = #tpu.pipeline_mode<synchronous>, transform_indices = @transform_1, window_bounds = array<i64: 32, 32>}, {pipeline_mode = #tpu.pipeline_mode<synchronous>, transform_indices = @transform_2, window_bounds = array<i64: 1, 32>}, {transform_indices = @transform_3, window_bounds = array<i64: 16, 32>}, {pipeline_mode = #tpu.pipeline_mode<synchronous>, transform_indices = @transform_4, window_bounds = array<i64: 1, 32>}, {pipeline_mode = #tpu.pipeline_mode<synchronous>, transform_indices = @transform_5, window_bounds = array<i64: 1, 32>}, {transform_indices = @transform_6, window_bounds = array<i64: 16, 32>}]} {
    %c0 = arith.constant 0 : index
    %c0_0 = arith.constant 0 : index
    %0 = vector.load %arg1[%c0, %c0_0] : memref<16x32xf32, #tpu.memory_space<vmem>>, vector<16x32xf32>
    %c0_1 = arith.constant 0 : index
    %c0_2 = arith.constant 0 : index
    %1 = vector.load %arg2[%c0_1, %c0_2] : memref<32x32xf32, #tpu.memory_space<vmem>>, vector<32x32xf32>
    %cst = arith.constant dense<0.000000e+00> : vector<16x32xf32>
    %2 = tpu.matmul %0, %1, %cst {dimension_numbers = #tpu.dot_dimension_numbers<[1], [0], [0], [1], [0, 0, 1, 1], [], []>} : vector<16x32xf32>, vector<32x32xf32>, vector<16x32xf32> -> vector<16x32xf32>
    %c0_3 = arith.constant 0 : index
    %c0_4 = arith.constant 0 : index
    %3 = vector.load %arg3[%c0_3, %c0_4] : memref<1x32xf32, #tpu.memory_space<vmem>>, vector<1x32xf32>
    %4 = vector.broadcast %3 : vector<1x32xf32> to vector<16x32xf32>
    %5 = arith.addf %2, %4 : vector<16x32xf32>
    %c0_5 = arith.constant 0 : index
    %c0_6 = arith.constant 0 : index
    %6 = vector.load %arg4[%c0_5, %c0_6] : memref<16x32xf32, #tpu.memory_space<vmem>>, vector<16x32xf32>
    %7 = arith.addf %6, %5 : vector<16x32xf32>
    %c0_7 = arith.constant 0 : index
    %c0_8 = arith.constant 0 : index
    %8 = vector.load %arg5[%c0_7, %c0_8] : memref<1x32xf32, #tpu.memory_space<vmem>>, vector<1x32xf32>
    %c0_9 = arith.constant 0 : index
    %c0_10 = arith.constant 0 : index
    %9 = vector.load %arg6[%c0_9, %c0_10] : memref<1x32xf32, #tpu.memory_space<vmem>>, vector<1x32xf32>
    %cst_11 = arith.constant dense<0.000000e+00> : vector<16xf32>
    %10 = vector.multi_reduction <add>, %7, %cst_11 [1] : vector<16x32xf32> to vector<16xf32>
    %11 = vector.shape_cast %10 : vector<16xf32> to vector<16x1xf32>
    %cst_12 = arith.constant 3.200000e+01 : f32
    %12 = vector.broadcast %cst_12 : f32 to vector<16x1xf32>
    %13 = arith.divf %11, %12 : vector<16x1xf32>
    %14 = vector.broadcast %13 : vector<16x1xf32> to vector<16x32xf32>
    %15 = arith.subf %7, %14 : vector<16x32xf32>
    %16 = arith.mulf %15, %15 : vector<16x32xf32>
    %cst_13 = arith.constant dense<0.000000e+00> : vector<16xf32>
    %17 = vector.multi_reduction <add>, %16, %cst_13 [1] : vector<16x32xf32> to vector<16xf32>
    %18 = vector.shape_cast %17 : vector<16xf32> to vector<16x1xf32>
    %cst_14 = arith.constant 3.200000e+01 : f32
    %19 = vector.broadcast %cst_14 : f32 to vector<16x1xf32>
    %20 = arith.divf %18, %19 : vector<16x1xf32>
    %21 = vector.broadcast %13 : vector<16x1xf32> to vector<16x32xf32>
    %22 = arith.subf %7, %21 : vector<16x32xf32>
    %cst_15 = arith.constant 9.99999974E-6 : f32
    %23 = vector.broadcast %cst_15 : f32 to vector<16x1xf32>
    %24 = arith.addf %20, %23 : vector<16x1xf32>
    %25 = math.rsqrt %24 : vector<16x1xf32>
    %26 = vector.broadcast %25 : vector<16x1xf32> to vector<16x32xf32>
    %27 = arith.mulf %22, %26 : vector<16x32xf32>
    %28 = vector.broadcast %8 : vector<1x32xf32> to vector<16x32xf32>
    %29 = arith.mulf %27, %28 : vector<16x32xf32>
    %30 = vector.broadcast %9 : vector<1x32xf32> to vector<16x32xf32>
    %31 = arith.addf %29, %30 : vector<16x32xf32>
    %c0_16 = arith.constant 0 : index
    %c0_17 = arith.constant 0 : index
    %32 = vector.load %arg7[%c0_16, %c0_17] : memref<16x32xf32, #tpu.memory_space<vmem>>, vector<16x32xf32>
    tpu.vector_store %arg7[%c0_16, %c0_17], %31 {strides = array<i32>} : memref<16x32xf32, #tpu.memory_space<vmem>>, vector<16x32xf32>,
    return
  }
  func.func @transform_0(%arg0: i32) -> (i32, i32) {
    %c0_i32 = arith.constant 0 : i32
    %c0_i32_0 = arith.constant 0 : i32
    return %arg0, %c0_i32 : i32, i32
  }
  func.func @transform_1(%arg0: i32) -> (i32, i32) {
    %c0_i32 = arith.constant 0 : i32
    %c0_i32_0 = arith.constant 0 : i32
    %c0_i32_1 = arith.constant 0 : i32
    return %c0_i32, %c0_i32_0 : i32, i32
  }
  func.func @transform_2(%arg0: i32) -> (i32, i32) {
    %c0_i32 = arith.constant 0 : i32
    %c0_i32_0 = arith.constant 0 : i32
    %c0_i32_1 = arith.constant 0 : i32
    return %c0_i32, %c0_i32_0 : i32, i32
  }
  func.func @transform_3(%arg0: i32) -> (i32, i32) {
    %c0_i32 = arith.constant 0 : i32
    %c0_i32_0 = arith.constant 0 : i32
    return %arg0, %c0_i32 : i32, i32
  }
  func.func @transform_4(%arg0: i32) -> (i32, i32) {
    %c0_i32 = arith.constant 0 : i32
    %c0_i32_0 = arith.constant 0 : i32
    %c0_i32_1 = arith.constant 0 : i32
    return %c0_i32, %c0_i32_0 : i32, i32
  }
  func.func @transform_5(%arg0: i32) -> (i32, i32) {
    %c0_i32 = arith.constant 0 : i32
    %c0_i32_0 = arith.constant 0 : i32
    %c0_i32_1 = arith.constant 0 : i32
    return %c0_i32, %c0_i32_0 : i32, i32
  }
  func.func @transform_6(%arg0: i32) -> (i32, i32) {
    %c0_i32 = arith.constant 0 : i32
    %c0_i32_0 = arith.constant 0 : i32
    return %arg0, %c0_i32 : i32, i32
  }
}

module attributes {stable_mosaic.version = 11 : i64} {
  func.func @_matmul_kernel(%arg0: i32, %arg1: i32, %arg2: i32, %arg3: memref<16x32xf32, #tpu.memory_space<vmem>>, %arg4: memref<32x32xf32, #tpu.memory_space<vmem>>, %arg5: memref<1x32xf32, #tpu.memory_space<vmem>>, %arg6: memref<16x32xf32, #tpu.memory_space<vmem>>, %arg7: memref<16x32xf32, #tpu.memory_space<vmem>>) attributes {dimension_semantics = [#tpu.dimension_semantics<parallel>, #tpu.dimension_semantics<parallel>, #tpu.dimension_semantics<arbitrary>], iteration_bounds = array<i64: 1, 1, 1>, scalar_prefetch = 0 : i64, scratch_operands = 1 : i64, tpu.core_type = #tpu.core_type<tc>, window_params = [{transform_indices = @transform_0, window_bounds = array<i64: 16, 32>}, {transform_indices = @transform_1, window_bounds = array<i64: 32, 32>}, {transform_indices = @transform_2, window_bounds = array<i64: 1, 32>}, {transform_indices = @transform_3, window_bounds = array<i64: 16, 32>}]} {
    %c0_i32 = arith.constant 0 : i32
    %0 = arith.cmpi eq, %arg2, %c0_i32 : i32
    %1 = arith.extui %0 : i1 to i32
    %c0_i32_0 = arith.constant 0 : i32
    %2 = arith.cmpi ne, %1, %c0_i32_0 : i32
    scf.if %2 {
      %cst_10 = arith.constant 0.000000e+00 : f32
      %12 = vector.broadcast %cst_10 : f32 to vector<16x32xf32>
      %c0_11 = arith.constant 0 : index
      %c0_12 = arith.constant 0 : index
      %13 = vector.load %arg7[%c0_11, %c0_12] : memref<16x32xf32, #tpu.memory_space<vmem>>, vector<16x32xf32>
      tpu.vector_store %arg7[%c0_11, %c0_12], %12 {strides = array<i32>} : memref<16x32xf32, #tpu.memory_space<vmem>>, vector<16x32xf32>,
    } else {
    }
    %c0 = arith.constant 0 : index
    %c0_1 = arith.constant 0 : index
    %3 = vector.load %arg7[%c0, %c0_1] : memref<16x32xf32, #tpu.memory_space<vmem>>, vector<16x32xf32>
    %c0_2 = arith.constant 0 : index
    %c0_3 = arith.constant 0 : index
    %4 = vector.load %arg3[%c0_2, %c0_3] : memref<16x32xf32, #tpu.memory_space<vmem>>, vector<16x32xf32>
    %c0_4 = arith.constant 0 : index
    %c0_5 = arith.constant 0 : index
    %5 = vector.load %arg4[%c0_4, %c0_5] : memref<32x32xf32, #tpu.memory_space<vmem>>, vector<32x32xf32>
    %cst = arith.constant dense<0.000000e+00> : vector<16x32xf32>
    %6 = tpu.matmul %4, %5, %cst {dimension_numbers = #tpu.dot_dimension_numbers<[1], [0], [0], [1], [0, 0, 1, 1], [], []>} : vector<16x32xf32>, vector<32x32xf32>, vector<16x32xf32> -> vector<16x32xf32>
    %7 = arith.addf %3, %6 : vector<16x32xf32>
    %c0_6 = arith.constant 0 : index
    %c0_7 = arith.constant 0 : index
    %8 = vector.load %arg7[%c0_6, %c0_7] : memref<16x32xf32, #tpu.memory_space<vmem>>, vector<16x32xf32>
    tpu.vector_store %arg7[%c0_6, %c0_7], %7 {strides = array<i32>} : memref<16x32xf32, #tpu.memory_space<vmem>>, vector<16x32xf32>,
    %c0_i32_8 = arith.constant 0 : i32
    %9 = arith.cmpi eq, %arg2, %c0_i32_8 : i32
    %10 = arith.extui %9 : i1 to i32
    %c0_i32_9 = arith.constant 0 : i32
    %11 = arith.cmpi ne, %10, %c0_i32_9 : i32
    scf.if %11 {
      %c0_10 = arith.constant 0 : index
      %c0_11 = arith.constant 0 : index
      %12 = vector.load %arg7[%c0_10, %c0_11] : memref<16x32xf32, #tpu.memory_space<vmem>>, vector<16x32xf32>
      %c0_12 = arith.constant 0 : index
      %c0_13 = arith.constant 0 : index
      %13 = vector.load %arg5[%c0_12, %c0_13] : memref<1x32xf32, #tpu.memory_space<vmem>>, vector<1x32xf32>
      %14 = vector.broadcast %13 : vector<1x32xf32> to vector<16x32xf32>
      %15 = arith.addf %12, %14 : vector<16x32xf32>
      %c0_14 = arith.constant 0 : index
      %c0_15 = arith.constant 0 : index
      %16 = vector.load %arg6[%c0_14, %c0_15] : memref<16x32xf32, #tpu.memory_space<vmem>>, vector<16x32xf32>
      tpu.vector_store %arg6[%c0_14, %c0_15], %15 {strides = array<i32>} : memref<16x32xf32, #tpu.memory_space<vmem>>, vector<16x32xf32>,
    } else {
    }
    return
  }
  func.func @transform_0(%arg0: i32, %arg1: i32, %arg2: i32) -> (i32, i32) {
    %c0_i32 = arith.constant 0 : i32
    return %arg0, %arg2 : i32, i32
  }
  func.func @transform_1(%arg0: i32, %arg1: i32, %arg2: i32) -> (i32, i32) {
    %c0_i32 = arith.constant 0 : i32
    return %arg2, %arg1 : i32, i32
  }
  func.func @transform_2(%arg0: i32, %arg1: i32, %arg2: i32) -> (i32, i32) {
    %c0_i32 = arith.constant 0 : i32
    %c0_i32_0 = arith.constant 0 : i32
    return %c0_i32, %arg1 : i32, i32
  }
  func.func @transform_3(%arg0: i32, %arg1: i32, %arg2: i32) -> (i32, i32) {
    %c0_i32 = arith.constant 0 : i32
    return %arg0, %arg1 : i32, i32
  }
}

module attributes {stable_mosaic.version = 11 : i64} {
  func.func @_matmul_kernel(%arg0: i32, %arg1: i32, %arg2: i32, %arg3: memref<32x32xf32, #tpu.memory_space<vmem>>, %arg4: memref<32x64xf32, #tpu.memory_space<vmem>>, %arg5: memref<1x64xf32, #tpu.memory_space<vmem>>, %arg6: memref<32x64xf32, #tpu.memory_space<vmem>>, %arg7: memref<32x64xf32, #tpu.memory_space<vmem>>) attributes {dimension_semantics = [#tpu.dimension_semantics<parallel>, #tpu.dimension_semantics<parallel>, #tpu.dimension_semantics<arbitrary>], iteration_bounds = array<i64: 1, 1, 1>, scalar_prefetch = 0 : i64, scratch_operands = 1 : i64, tpu.core_type = #tpu.core_type<tc>, window_params = [{transform_indices = @transform_0, window_bounds = array<i64: 32, 32>}, {transform_indices = @transform_1, window_bounds = array<i64: 32, 64>}, {transform_indices = @transform_2, window_bounds = array<i64: 1, 64>}, {transform_indices = @transform_3, window_bounds = array<i64: 32, 64>}]} {
    %c0_i32 = arith.constant 0 : i32
    %0 = arith.cmpi eq, %arg2, %c0_i32 : i32
    %1 = arith.extui %0 : i1 to i32
    %c0_i32_0 = arith.constant 0 : i32
    %2 = arith.cmpi ne, %1, %c0_i32_0 : i32
    scf.if %2 {
      %cst_10 = arith.constant 0.000000e+00 : f32
      %12 = vector.broadcast %cst_10 : f32 to vector<32x64xf32>
      %c0_11 = arith.constant 0 : index
      %c0_12 = arith.constant 0 : index
      %13 = vector.load %arg7[%c0_11, %c0_12] : memref<32x64xf32, #tpu.memory_space<vmem>>, vector<32x64xf32>
      tpu.vector_store %arg7[%c0_11, %c0_12], %12 {strides = array<i32>} : memref<32x64xf32, #tpu.memory_space<vmem>>, vector<32x64xf32>,
    } else {
    }
    %c0 = arith.constant 0 : index
    %c0_1 = arith.constant 0 : index
    %3 = vector.load %arg7[%c0, %c0_1] : memref<32x64xf32, #tpu.memory_space<vmem>>, vector<32x64xf32>
    %c0_2 = arith.constant 0 : index
    %c0_3 = arith.constant 0 : index
    %4 = vector.load %arg3[%c0_2, %c0_3] : memref<32x32xf32, #tpu.memory_space<vmem>>, vector<32x32xf32>
    %c0_4 = arith.constant 0 : index
    %c0_5 = arith.constant 0 : index
    %5 = vector.load %arg4[%c0_4, %c0_5] : memref<32x64xf32, #tpu.memory_space<vmem>>, vector<32x64xf32>
    %cst = arith.constant dense<0.000000e+00> : vector<32x64xf32>
    %6 = tpu.matmul %4, %5, %cst {dimension_numbers = #tpu.dot_dimension_numbers<[1], [0], [0], [1], [0, 0, 1, 1], [], []>} : vector<32x32xf32>, vector<32x64xf32>, vector<32x64xf32> -> vector<32x64xf32>
    %7 = arith.addf %3, %6 : vector<32x64xf32>
    %c0_6 = arith.constant 0 : index
    %c0_7 = arith.constant 0 : index
    %8 = vector.load %arg7[%c0_6, %c0_7] : memref<32x64xf32, #tpu.memory_space<vmem>>, vector<32x64xf32>
    tpu.vector_store %arg7[%c0_6, %c0_7], %7 {strides = array<i32>} : memref<32x64xf32, #tpu.memory_space<vmem>>, vector<32x64xf32>,
    %c0_i32_8 = arith.constant 0 : i32
    %9 = arith.cmpi eq, %arg2, %c0_i32_8 : i32
    %10 = arith.extui %9 : i1 to i32
    %c0_i32_9 = arith.constant 0 : i32
    %11 = arith.cmpi ne, %10, %c0_i32_9 : i32
    scf.if %11 {
      %c0_10 = arith.constant 0 : index
      %c0_11 = arith.constant 0 : index
      %12 = vector.load %arg7[%c0_10, %c0_11] : memref<32x64xf32, #tpu.memory_space<vmem>>, vector<32x64xf32>
      %c0_12 = arith.constant 0 : index
      %c0_13 = arith.constant 0 : index
      %13 = vector.load %arg5[%c0_12, %c0_13] : memref<1x64xf32, #tpu.memory_space<vmem>>, vector<1x64xf32>
      %14 = vector.broadcast %13 : vector<1x64xf32> to vector<32x64xf32>
      %15 = arith.addf %12, %14 : vector<32x64xf32>
      %c0_14 = arith.constant 0 : index
      %c0_15 = arith.constant 0 : index
      %16 = vector.load %arg6[%c0_14, %c0_15] : memref<32x64xf32, #tpu.memory_space<vmem>>, vector<32x64xf32>
      tpu.vector_store %arg6[%c0_14, %c0_15], %15 {strides = array<i32>} : memref<32x64xf32, #tpu.memory_space<vmem>>, vector<32x64xf32>,
    } else {
    }
    return
  }
  func.func @transform_0(%arg0: i32, %arg1: i32, %arg2: i32) -> (i32, i32) {
    %c0_i32 = arith.constant 0 : i32
    return %arg0, %arg2 : i32, i32
  }
  func.func @transform_1(%arg0: i32, %arg1: i32, %arg2: i32) -> (i32, i32) {
    %c0_i32 = arith.constant 0 : i32
    return %arg2, %arg1 : i32, i32
  }
  func.func @transform_2(%arg0: i32, %arg1: i32, %arg2: i32) -> (i32, i32) {
    %c0_i32 = arith.constant 0 : i32
    %c0_i32_0 = arith.constant 0 : i32
    return %c0_i32, %arg1 : i32, i32
  }
  func.func @transform_3(%arg0: i32, %arg1: i32, %arg2: i32) -> (i32, i32) {
    %c0_i32 = arith.constant 0 : i32
    return %arg0, %arg1 : i32, i32
  }
}

module attributes {stable_mosaic.version = 11 : i64} {
  func.func @_cross_attn_kernel(%arg0: i32, %arg1: memref<1x8x32xf32, #tpu.memory_space<vmem>>, %arg2: memref<1x16x64xf32, #tpu.memory_space<vmem>>, %arg3: memref<1x1x8x16xf32, #tpu.memory_space<vmem>>, %arg4: memref<1x8x32xf32, #tpu.memory_space<vmem>>) attributes {dimension_semantics = [#tpu.dimension_semantics<parallel>], iteration_bounds = array<i64: 2>, scalar_prefetch = 0 : i64, scratch_operands = 0 : i64, tpu.core_type = #tpu.core_type<tc>, window_params = [{transform_indices = @transform_0, window_bounds = array<i64: 1, 8, 32>}, {transform_indices = @transform_1, window_bounds = array<i64: 1, 16, 64>}, {transform_indices = @transform_2, window_bounds = array<i64: 1, 1, 8, 16>}, {transform_indices = @transform_3, window_bounds = array<i64: 1, 8, 32>}]} {
    %c0 = arith.constant 0 : index
    %c0_0 = arith.constant 0 : index
    %c0_1 = arith.constant 0 : index
    %c0_2 = arith.constant 0 : index
    %0 = vector.load %arg3[%c0, %c0_0, %c0_1, %c0_2] : memref<1x1x8x16xf32, #tpu.memory_space<vmem>>, vector<1x1x8x16xf32>
    %1 = vector.shape_cast %0 : vector<1x1x8x16xf32> to vector<8x16xf32>
    %c0_3 = arith.constant 0 : index
    %c0_4 = arith.constant 0 : index
    %c0_5 = arith.constant 0 : index
    %2 = vector.load %arg1[%c0_3, %c0_4, %c0_5] : memref<1x8x32xf32, #tpu.memory_space<vmem>>, vector<1x8x8xf32>
    %3 = vector.shape_cast %2 : vector<1x8x8xf32> to vector<8x8xf32>
    %c0_6 = arith.constant 0 : index
    %c0_7 = arith.constant 0 : index
    %c0_8 = arith.constant 0 : index
    %4 = vector.load %arg2[%c0_6, %c0_7, %c0_8] : memref<1x16x64xf32, #tpu.memory_space<vmem>>, vector<1x16x8xf32>
    %5 = vector.shape_cast %4 : vector<1x16x8xf32> to vector<16x8xf32>
    %c0_9 = arith.constant 0 : index
    %c0_10 = arith.constant 0 : index
    %c32 = arith.constant 32 : index
    %6 = vector.load %arg2[%c0_9, %c0_10, %c32] : memref<1x16x64xf32, #tpu.memory_space<vmem>>, vector<1x16x8xf32>
    %7 = vector.shape_cast %6 : vector<1x16x8xf32> to vector<16x8xf32>
    %cst = arith.constant 0.353553385 : f32
    %8 = vector.broadcast %cst : f32 to vector<8x8xf32>
    %9 = arith.mulf %3, %8 : vector<8x8xf32>
    %10 = tpu.transpose %5, [1, 0] : vector<16x8xf32> -> vector<8x16xf32>
    %cst_11 = arith.constant dense<0.000000e+00> : vector<8x16xf32>
    %11 = tpu.matmul %9, %10, %cst_11 {dimension_numbers = #tpu.dot_dimension_numbers<[1], [0], [0], [1], [0, 0, 1, 1], [], []>} : vector<8x8xf32>, vector<8x16xf32>, vector<8x16xf32> -> vector<8x16xf32>
    %12 = arith.addf %11, %1 : vector<8x16xf32>
    %cst_12 = arith.constant dense<0xFF800000> : vector<8xf32>
    %13 = vector.multi_reduction <maximumf>, %12, %cst_12 [1] : vector<8x16xf32> to vector<8xf32>
    %14 = vector.shape_cast %13 : vector<8xf32> to vector<8x1xf32>
    %15 = vector.broadcast %14 : vector<8x1xf32> to vector<8x16xf32>
    %16 = arith.subf %12, %15 : vector<8x16xf32>
    %17 = math.exp %16 : vector<8x16xf32>
    %cst_13 = arith.constant dense<0.000000e+00> : vector<8xf32>
    %18 = vector.multi_reduction <add>, %17, %cst_13 [1] : vector<8x16xf32> to vector<8xf32>
    %19 = vector.shape_cast %18 : vector<8xf32> to vector<8x1xf32>
    %20 = tpu.reciprocal %19 {approx = true} : vector<8x1xf32> -> vector<8x1xf32>
    %21 = vector.broadcast %20 : vector<8x1xf32> to vector<8x16xf32>
    %22 = arith.mulf %17, %21 : vector<8x16xf32>
    %cst_14 = arith.constant dense<0.000000e+00> : vector<8x8xf32>
    %23 = tpu.matmul %22, %7, %cst_14 {dimension_numbers = #tpu.dot_dimension_numbers<[1], [0], [0], [1], [0, 0, 1, 1], [], []>} : vector<8x16xf32>, vector<16x8xf32>, vector<8x8xf32> -> vector<8x8xf32>
    %c0_15 = arith.constant 0 : index
    %c0_16 = arith.constant 0 : index
    %c0_17 = arith.constant 0 : index
    %24 = vector.load %arg4[%c0_15, %c0_16, %c0_17] : memref<1x8x32xf32, #tpu.memory_space<vmem>>, vector<1x8x8xf32>
    %25 = vector.shape_cast %24 : vector<1x8x8xf32> to vector<8x8xf32>
    %26 = vector.shape_cast %23 : vector<8x8xf32> to vector<1x8x8xf32>
    tpu.vector_store %arg4[%c0_15, %c0_16, %c0_17], %26 {strides = array<i32>} : memref<1x8x32xf32, #tpu.memory_space<vmem>>, vector<1x8x8xf32>,
    %c0_18 = arith.constant 0 : index
    %c0_19 = arith.constant 0 : index
    %c8 = arith.constant 8 : index
    %27 = vector.load %arg1[%c0_18, %c0_19, %c8] : memref<1x8x32xf32, #tpu.memory_space<vmem>>, vector<1x8x8xf32>
    %28 = vector.shape_cast %27 : vector<1x8x8xf32> to vector<8x8xf32>
    %c0_20 = arith.constant 0 : index
    %c0_21 = arith.constant 0 : index
    %c8_22 = arith.constant 8 : index
    %29 = vector.load %arg2[%c0_20, %c0_21, %c8_22] : memref<1x16x64xf32, #tpu.memory_space<vmem>>, vector<1x16x8xf32>
    %30 = vector.shape_cast %29 : vector<1x16x8xf32> to vector<16x8xf32>
    %c0_23 = arith.constant 0 : index
    %c0_24 = arith.constant 0 : index
    %c40 = arith.constant 40 : index
    %31 = vector.load %arg2[%c0_23, %c0_24, %c40] : memref<1x16x64xf32, #tpu.memory_space<vmem>>, vector<1x16x8xf32>
    %32 = vector.shape_cast %31 : vector<1x16x8xf32> to vector<16x8xf32>
    %cst_25 = arith.constant 0.353553385 : f32
    %33 = vector.broadcast %cst_25 : f32 to vector<8x8xf32>
    %34 = arith.mulf %28, %33 : vector<8x8xf32>
    %35 = tpu.transpose %30, [1, 0] : vector<16x8xf32> -> vector<8x16xf32>
    %cst_26 = arith.constant dense<0.000000e+00> : vector<8x16xf32>
    %36 = tpu.matmul %34, %35, %cst_26 {dimension_numbers = #tpu.dot_dimension_numbers<[1], [0], [0], [1], [0, 0, 1, 1], [], []>} : vector<8x8xf32>, vector<8x16xf32>, vector<8x16xf32> -> vector<8x16xf32>
    %37 = arith.addf %36, %1 : vector<8x16xf32>
    %cst_27 = arith.constant dense<0xFF800000> : vector<8xf32>
    %38 = vector.multi_reduction <maximumf>, %37, %cst_27 [1] : vector<8x16xf32> to vector<8xf32>
    %39 = vector.shape_cast %38 : vector<8xf32> to vector<8x1xf32>
    %40 = vector.broadcast %39 : vector<8x1xf32> to vector<8x16xf32>
    %41 = arith.subf %37, %40 : vector<8x16xf32>
    %42 = math.exp %41 : vector<8x16xf32>
    %cst_28 = arith.constant dense<0.000000e+00> : vector<8xf32>
    %43 = vector.multi_reduction <add>, %42, %cst_28 [1] : vector<8x16xf32> to vector<8xf32>
    %44 = vector.shape_cast %43 : vector<8xf32> to vector<8x1xf32>
    %45 = tpu.reciprocal %44 {approx = true} : vector<8x1xf32> -> vector<8x1xf32>
    %46 = vector.broadcast %45 : vector<8x1xf32> to vector<8x16xf32>
    %47 = arith.mulf %42, %46 : vector<8x16xf32>
    %cst_29 = arith.constant dense<0.000000e+00> : vector<8x8xf32>
    %48 = tpu.matmul %47, %32, %cst_29 {dimension_numbers = #tpu.dot_dimension_numbers<[1], [0], [0], [1], [0, 0, 1, 1], [], []>} : vector<8x16xf32>, vector<16x8xf32>, vector<8x8xf32> -> vector<8x8xf32>
    %c0_30 = arith.constant 0 : index
    %c0_31 = arith.constant 0 : index
    %c8_32 = arith.constant 8 : index
    %49 = vector.load %arg4[%c0_30, %c0_31, %c8_32] : memref<1x8x32xf32, #tpu.memory_space<vmem>>, vector<1x8x8xf32>
    %50 = vector.shape_cast %49 : vector<1x8x8xf32> to vector<8x8xf32>
    %51 = vector.shape_cast %48 : vector<8x8xf32> to vector<1x8x8xf32>
    tpu.vector_store %arg4[%c0_30, %c0_31, %c8_32], %51 {strides = array<i32>} : memref<1x8x32xf32, #tpu.memory_space<vmem>>, vector<1x8x8xf32>,
    %c0_33 = arith.constant 0 : index
    %c0_34 = arith.constant 0 : index
    %c16 = arith.constant 16 : index
    %52 = vector.load %arg1[%c0_33, %c0_34, %c16] : memref<1x8x32xf32, #tpu.memory_space<vmem>>, vector<1x8x8xf32>
    %53 = vector.shape_cast %52 : vector<1x8x8xf32> to vector<8x8xf32>
    %c0_35 = arith.constant 0 : index
    %c0_36 = arith.constant 0 : index
    %c16_37 = arith.constant 16 : index
    %54 = vector.load %arg2[%c0_35, %c0_36, %c16_37] : memref<1x16x64xf32, #tpu.memory_space<vmem>>, vector<1x16x8xf32>
    %55 = vector.shape_cast %54 : vector<1x16x8xf32> to vector<16x8xf32>
    %c0_38 = arith.constant 0 : index
    %c0_39 = arith.constant 0 : index
    %c48 = arith.constant 48 : index
    %56 = vector.load %arg2[%c0_38, %c0_39, %c48] : memref<1x16x64xf32, #tpu.memory_space<vmem>>, vector<1x16x8xf32>
    %57 = vector.shape_cast %56 : vector<1x16x8xf32> to vector<16x8xf32>
    %cst_40 = arith.constant 0.353553385 : f32
    %58 = vector.broadcast %cst_40 : f32 to vector<8x8xf32>
    %59 = arith.mulf %53, %58 : vector<8x8xf32>
    %60 = tpu.transpose %55, [1, 0] : vector<16x8xf32> -> vector<8x16xf32>
    %cst_41 = arith.constant dense<0.000000e+00> : vector<8x16xf32>
    %61 = tpu.matmul %59, %60, %cst_41 {dimension_numbers = #tpu.dot_dimension_numbers<[1], [0], [0], [1], [0, 0, 1, 1], [], []>} : vector<8x8xf32>, vector<8x16xf32>, vector<8x16xf32> -> vector<8x16xf32>
    %62 = arith.addf %61, %1 : vector<8x16xf32>
    %cst_42 = arith.constant dense<0xFF800000> : vector<8xf32>
    %63 = vector.multi_reduction <maximumf>, %62, %cst_42 [1] : vector<8x16xf32> to vector<8xf32>
    %64 = vector.shape_cast %63 : vector<8xf32> to vector<8x1xf32>
    %65 = vector.broadcast %64 : vector<8x1xf32> to vector<8x16xf32>
    %66 = arith.subf %62, %65 : vector<8x16xf32>
    %67 = math.exp %66 : vector<8x16xf32>
    %cst_43 = arith.constant dense<0.000000e+00> : vector<8xf32>
    %68 = vector.multi_reduction <add>, %67, %cst_43 [1] : vector<8x16xf32> to vector<8xf32>
    %69 = vector.shape_cast %68 : vector<8xf32> to vector<8x1xf32>
    %70 = tpu.reciprocal %69 {approx = true} : vector<8x1xf32> -> vector<8x1xf32>
    %71 = vector.broadcast %70 : vector<8x1xf32> to vector<8x16xf32>
    %72 = arith.mulf %67, %71 : vector<8x16xf32>
    %cst_44 = arith.constant dense<0.000000e+00> : vector<8x8xf32>
    %73 = tpu.matmul %72, %57, %cst_44 {dimension_numbers = #tpu.dot_dimension_numbers<[1], [0], [0], [1], [0, 0, 1, 1], [], []>} : vector<8x16xf32>, vector<16x8xf32>, vector<8x8xf32> -> vector<8x8xf32>
    %c0_45 = arith.constant 0 : index
    %c0_46 = arith.constant 0 : index
    %c16_47 = arith.constant 16 : index
    %74 = vector.load %arg4[%c0_45, %c0_46, %c16_47] : memref<1x8x32xf32, #tpu.memory_space<vmem>>, vector<1x8x8xf32>
    %75 = vector.shape_cast %74 : vector<1x8x8xf32> to vector<8x8xf32>
    %76 = vector.shape_cast %73 : vector<8x8xf32> to vector<1x8x8xf32>
    tpu.vector_store %arg4[%c0_45, %c0_46, %c16_47], %76 {strides = array<i32>} : memref<1x8x32xf32, #tpu.memory_space<vmem>>, vector<1x8x8xf32>,
    %c0_48 = arith.constant 0 : index
    %c0_49 = arith.constant 0 : index
    %c24 = arith.constant 24 : index
    %77 = vector.load %arg1[%c0_48, %c0_49, %c24] : memref<1x8x32xf32, #tpu.memory_space<vmem>>, vector<1x8x8xf32>
    %78 = vector.shape_cast %77 : vector<1x8x8xf32> to vector<8x8xf32>
    %c0_50 = arith.constant 0 : index
    %c0_51 = arith.constant 0 : index
    %c24_52 = arith.constant 24 : index
    %79 = vector.load %arg2[%c0_50, %c0_51, %c24_52] : memref<1x16x64xf32, #tpu.memory_space<vmem>>, vector<1x16x8xf32>
    %80 = vector.shape_cast %79 : vector<1x16x8xf32> to vector<16x8xf32>
    %c0_53 = arith.constant 0 : index
    %c0_54 = arith.constant 0 : index
    %c56 = arith.constant 56 : index
    %81 = vector.load %arg2[%c0_53, %c0_54, %c56] : memref<1x16x64xf32, #tpu.memory_space<vmem>>, vector<1x16x8xf32>
    %82 = vector.shape_cast %81 : vector<1x16x8xf32> to vector<16x8xf32>
    %cst_55 = arith.constant 0.353553385 : f32
    %83 = vector.broadcast %cst_55 : f32 to vector<8x8xf32>
    %84 = arith.mulf %78, %83 : vector<8x8xf32>
    %85 = tpu.transpose %80, [1, 0] : vector<16x8xf32> -> vector<8x16xf32>
    %cst_56 = arith.constant dense<0.000000e+00> : vector<8x16xf32>
    %86 = tpu.matmul %84, %85, %cst_56 {dimension_numbers = #tpu.dot_dimension_numbers<[1], [0], [0], [1], [0, 0, 1, 1], [], []>} : vector<8x8xf32>, vector<8x16xf32>, vector<8x16xf32> -> vector<8x16xf32>
    %87 = arith.addf %86, %1 : vector<8x16xf32>
    %cst_57 = arith.constant dense<0xFF800000> : vector<8xf32>
    %88 = vector.multi_reduction <maximumf>, %87, %cst_57 [1] : vector<8x16xf32> to vector<8xf32>
    %89 = vector.shape_cast %88 : vector<8xf32> to vector<8x1xf32>
    %90 = vector.broadcast %89 : vector<8x1xf32> to vector<8x16xf32>
    %91 = arith.subf %87, %90 : vector<8x16xf32>
    %92 = math.exp %91 : vector<8x16xf32>
    %cst_58 = arith.constant dense<0.000000e+00> : vector<8xf32>
    %93 = vector.multi_reduction <add>, %92, %cst_58 [1] : vector<8x16xf32> to vector<8xf32>
    %94 = vector.shape_cast %93 : vector<8xf32> to vector<8x1xf32>
    %95 = tpu.reciprocal %94 {approx = true} : vector<8x1xf32> -> vector<8x1xf32>
    %96 = vector.broadcast %95 : vector<8x1xf32> to vector<8x16xf32>
    %97 = arith.mulf %92, %96 : vector<8x16xf32>
    %cst_59 = arith.constant dense<0.000000e+00> : vector<8x8xf32>
    %98 = tpu.matmul %97, %82, %cst_59 {dimension_numbers = #tpu.dot_dimension_numbers<[1], [0], [0], [1], [0, 0, 1, 1], [], []>} : vector<8x16xf32>, vector<16x8xf32>, vector<8x8xf32> -> vector<8x8xf32>
    %c0_60 = arith.constant 0 : index
    %c0_61 = arith.constant 0 : index
    %c24_62 = arith.constant 24 : index
    %99 = vector.load %arg4[%c0_60, %c0_61, %c24_62] : memref<1x8x32xf32, #tpu.memory_space<vmem>>, vector<1x8x8xf32>
    %100 = vector.shape_cast %99 : vector<1x8x8xf32> to vector<8x8xf32>
    %101 = vector.shape_cast %98 : vector<8x8xf32> to vector<1x8x8xf32>
    tpu.vector_store %arg4[%c0_60, %c0_61, %c24_62], %101 {strides = array<i32>} : memref<1x8x32xf32, #tpu.memory_space<vmem>>, vector<1x8x8xf32>,
    return
  }
  func.func @transform_0(%arg0: i32) -> (i32, i32, i32) {
    %c0_i32 = arith.constant 0 : i32
    %c0_i32_0 = arith.constant 0 : i32
    %c0_i32_1 = arith.constant 0 : i32
    return %arg0, %c0_i32, %c0_i32_0 : i32, i32, i32
  }
  func.func @transform_1(%arg0: i32) -> (i32, i32, i32) {
    %c0_i32 = arith.constant 0 : i32
    %c0_i32_0 = arith.constant 0 : i32
    %c0_i32_1 = arith.constant 0 : i32
    return %arg0, %c0_i32, %c0_i32_0 : i32, i32, i32
  }
  func.func @transform_2(%arg0: i32) -> (i32, i32, i32, i32) {
    %c0_i32 = arith.constant 0 : i32
    %c0_i32_0 = arith.constant 0 : i32
    %c0_i32_1 = arith.constant 0 : i32
    %c0_i32_2 = arith.constant 0 : i32
    return %arg0, %c0_i32, %c0_i32_0, %c0_i32_1 : i32, i32, i32, i32
  }
  func.func @transform_3(%arg0: i32) -> (i32, i32, i32) {
    %c0_i32 = arith.constant 0 : i32
    %c0_i32_0 = arith.constant 0 : i32
    %c0_i32_1 = arith.constant 0 : i32
    return %arg0, %c0_i32, %c0_i32_0 : i32, i32, i32
  }
}

module attributes {stable_mosaic.version = 11 : i64} {
  func.func @_ffn_add_ln_kernel(%arg0: i32, %arg1: memref<16x32xf32, #tpu.memory_space<vmem>>, %arg2: memref<32x64xf32, #tpu.memory_space<vmem>>, %arg3: memref<1x64xf32, #tpu.memory_space<vmem>>, %arg4: memref<64x32xf32, #tpu.memory_space<vmem>>, %arg5: memref<1x32xf32, #tpu.memory_space<vmem>>, %arg6: memref<1x32xf32, #tpu.memory_space<vmem>>, %arg7: memref<1x32xf32, #tpu.memory_space<vmem>>, %arg8: memref<16x32xf32, #tpu.memory_space<vmem>>) attributes {dimension_semantics = [#tpu.dimension_semantics<parallel>], iteration_bounds = array<i64: 1>, scalar_prefetch = 0 : i64, scratch_operands = 0 : i64, tpu.core_type = #tpu.core_type<tc>, window_params = [{transform_indices = @transform_0, window_bounds = array<i64: 16, 32>}, {pipeline_mode = #tpu.pipeline_mode<synchronous>, transform_indices = @transform_1, window_bounds = array<i64: 32, 64>}, {pipeline_mode = #tpu.pipeline_mode<synchronous>, transform_indices = @transform_2, window_bounds = array<i64: 1, 64>}, {pipeline_mode = #tpu.pipeline_mode<synchronous>, transform_indices = @transform_3, window_bounds = array<i64: 64, 32>}, {pipeline_mode = #tpu.pipeline_mode<synchronous>, transform_indices = @transform_4, window_bounds = array<i64: 1, 32>}, {pipeline_mode = #tpu.pipeline_mode<synchronous>, transform_indices = @transform_5, window_bounds = array<i64: 1, 32>}, {pipeline_mode = #tpu.pipeline_mode<synchronous>, transform_indices = @transform_6, window_bounds = array<i64: 1, 32>}, {transform_indices = @transform_7, window_bounds = array<i64: 16, 32>}]} {
    %c0 = arith.constant 0 : index
    %c0_0 = arith.constant 0 : index
    %0 = vector.load %arg1[%c0, %c0_0] : memref<16x32xf32, #tpu.memory_space<vmem>>, vector<16x32xf32>
    %c0_1 = arith.constant 0 : index
    %c0_2 = arith.constant 0 : index
    %1 = vector.load %arg2[%c0_1, %c0_2] : memref<32x64xf32, #tpu.memory_space<vmem>>, vector<32x64xf32>
    %cst = arith.constant dense<0.000000e+00> : vector<16x64xf32>
    %2 = tpu.matmul %0, %1, %cst {dimension_numbers = #tpu.dot_dimension_numbers<[1], [0], [0], [1], [0, 0, 1, 1], [], []>} : vector<16x32xf32>, vector<32x64xf32>, vector<16x64xf32> -> vector<16x64xf32>
    %c0_3 = arith.constant 0 : index
    %c0_4 = arith.constant 0 : index
    %3 = vector.load %arg3[%c0_3, %c0_4] : memref<1x64xf32, #tpu.memory_space<vmem>>, vector<1x64xf32>
    %4 = vector.broadcast %3 : vector<1x64xf32> to vector<16x64xf32>
    %5 = arith.addf %2, %4 : vector<16x64xf32>
    %cst_5 = arith.constant 0.000000e+00 : f32
    %6 = vector.broadcast %cst_5 : f32 to vector<16x64xf32>
    %7 = arith.maximumf %5, %6 : vector<16x64xf32>
    %c0_6 = arith.constant 0 : index
    %c0_7 = arith.constant 0 : index
    %8 = vector.load %arg4[%c0_6, %c0_7] : memref<64x32xf32, #tpu.memory_space<vmem>>, vector<64x32xf32>
    %cst_8 = arith.constant dense<0.000000e+00> : vector<16x32xf32>
    %9 = tpu.matmul %7, %8, %cst_8 {dimension_numbers = #tpu.dot_dimension_numbers<[1], [0], [0], [1], [0, 0, 1, 1], [], []>} : vector<16x64xf32>, vector<64x32xf32>, vector<16x32xf32> -> vector<16x32xf32>
    %c0_9 = arith.constant 0 : index
    %c0_10 = arith.constant 0 : index
    %10 = vector.load %arg5[%c0_9, %c0_10] : memref<1x32xf32, #tpu.memory_space<vmem>>, vector<1x32xf32>
    %11 = vector.broadcast %10 : vector<1x32xf32> to vector<16x32xf32>
    %12 = arith.addf %9, %11 : vector<16x32xf32>
    %13 = arith.addf %0, %12 : vector<16x32xf32>
    %c0_11 = arith.constant 0 : index
    %c0_12 = arith.constant 0 : index
    %14 = vector.load %arg6[%c0_11, %c0_12] : memref<1x32xf32, #tpu.memory_space<vmem>>, vector<1x32xf32>
    %c0_13 = arith.constant 0 : index
    %c0_14 = arith.constant 0 : index
    %15 = vector.load %arg7[%c0_13, %c0_14] : memref<1x32xf32, #tpu.memory_space<vmem>>, vector<1x32xf32>
    %cst_15 = arith.constant dense<0.000000e+00> : vector<16xf32>
    %16 = vector.multi_reduction <add>, %13, %cst_15 [1] : vector<16x32xf32> to vector<16xf32>
    %17 = vector.shape_cast %16 : vector<16xf32> to vector<16x1xf32>
    %cst_16 = arith.constant 3.200000e+01 : f32
    %18 = vector.broadcast %cst_16 : f32 to vector<16x1xf32>
    %19 = arith.divf %17, %18 : vector<16x1xf32>
    %20 = vector.broadcast %19 : vector<16x1xf32> to vector<16x32xf32>
    %21 = arith.subf %13, %20 : vector<16x32xf32>
    %22 = arith.mulf %21, %21 : vector<16x32xf32>
    %cst_17 = arith.constant dense<0.000000e+00> : vector<16xf32>
    %23 = vector.multi_reduction <add>, %22, %cst_17 [1] : vector<16x32xf32> to vector<16xf32>
    %24 = vector.shape_cast %23 : vector<16xf32> to vector<16x1xf32>
    %cst_18 = arith.constant 3.200000e+01 : f32
    %25 = vector.broadcast %cst_18 : f32 to vector<16x1xf32>
    %26 = arith.divf %24, %25 : vector<16x1xf32>
    %27 = vector.broadcast %19 : vector<16x1xf32> to vector<16x32xf32>
    %28 = arith.subf %13, %27 : vector<16x32xf32>
    %cst_19 = arith.constant 9.99999974E-6 : f32
    %29 = vector.broadcast %cst_19 : f32 to vector<16x1xf32>
    %30 = arith.addf %26, %29 : vector<16x1xf32>
    %31 = math.rsqrt %30 : vector<16x1xf32>
    %32 = vector.broadcast %31 : vector<16x1xf32> to vector<16x32xf32>
    %33 = arith.mulf %28, %32 : vector<16x32xf32>
    %34 = vector.broadcast %14 : vector<1x32xf32> to vector<16x32xf32>
    %35 = arith.mulf %33, %34 : vector<16x32xf32>
    %36 = vector.broadcast %15 : vector<1x32xf32> to vector<16x32xf32>
    %37 = arith.addf %35, %36 : vector<16x32xf32>
    %c0_20 = arith.constant 0 : index
    %c0_21 = arith.constant 0 : index
    %38 = vector.load %arg8[%c0_20, %c0_21] : memref<16x32xf32, #tpu.memory_space<vmem>>, vector<16x32xf32>
    tpu.vector_store %arg8[%c0_20, %c0_21], %37 {strides = array<i32>} : memref<16x32xf32, #tpu.memory_space<vmem>>, vector<16x32xf32>,
    return
  }
  func.func @transform_0(%arg0: i32) -> (i32, i32) {
    %c0_i32 = arith.constant 0 : i32
    %c0_i32_0 = arith.constant 0 : i32
    return %arg0, %c0_i32 : i32, i32
  }
  func.func @transform_1(%arg0: i32) -> (i32, i32) {
    %c0_i32 = arith.constant 0 : i32
    %c0_i32_0 = arith.constant 0 : i32
    %c0_i32_1 = arith.constant 0 : i32
    return %c0_i32, %c0_i32_0 : i32, i32
  }
  func.func @transform_2(%arg0: i32) -> (i32, i32) {
    %c0_i32 = arith.constant 0 : i32
    %c0_i32_0 = arith.constant 0 : i32
    %c0_i32_1 = arith.constant 0 : i32
    return %c0_i32, %c0_i32_0 : i32, i32
  }
  func.func @transform_3(%arg0: i32) -> (i32, i32) {
    %c0_i32 = arith.constant 0 : i32
    %c0_i32_0 = arith.constant 0 : i32
    %c0_i32_1 = arith.constant 0 : i32
    return %c0_i32, %c0_i32_0 : i32, i32
  }
  func.func @transform_4(%arg0: i32) -> (i32, i32) {
    %c0_i32 = arith.constant 0 : i32
    %c0_i32_0 = arith.constant 0 : i32
    %c0_i32_1 = arith.constant 0 : i32
    return %c0_i32, %c0_i32_0 : i32, i32
  }
  func.func @transform_5(%arg0: i32) -> (i32, i32) {
    %c0_i32 = arith.constant 0 : i32
    %c0_i32_0 = arith.constant 0 : i32
    %c0_i32_1 = arith.constant 0 : i32
    return %c0_i32, %c0_i32_0 : i32, i32
  }
  func.func @transform_6(%arg0: i32) -> (i32, i32) {
    %c0_i32 = arith.constant 0 : i32
    %c0_i32_0 = arith.constant 0 : i32
    %c0_i32_1 = arith.constant 0 : i32
    return %c0_i32, %c0_i32_0 : i32, i32
  }
  func.func @transform_7(%arg0: i32) -> (i32, i32) {
    %c0_i32 = arith.constant 0 : i32
    %c0_i32_0 = arith.constant 0 : i32
    return %arg0, %c0_i32 : i32, i32
  }
}

module attributes {stable_mosaic.version = 11 : i64} {
  func.func @_cross_attn_kernel_with_probs(%arg0: i32, %arg1: memref<1x8x32xf32, #tpu.memory_space<vmem>>, %arg2: memref<1x16x64xf32, #tpu.memory_space<vmem>>, %arg3: memref<1x1x8x16xf32, #tpu.memory_space<vmem>>, %arg4: memref<1x8x32xf32, #tpu.memory_space<vmem>>, %arg5: memref<1x4x8x16xf32, #tpu.memory_space<vmem>>) attributes {dimension_semantics = [#tpu.dimension_semantics<parallel>], iteration_bounds = array<i64: 2>, scalar_prefetch = 0 : i64, scratch_operands = 0 : i64, tpu.core_type = #tpu.core_type<tc>, window_params = [{transform_indices = @transform_0, window_bounds = array<i64: 1, 8, 32>}, {transform_indices = @transform_1, window_bounds = array<i64: 1, 16, 64>}, {transform_indices = @transform_2, window_bounds = array<i64: 1, 1, 8, 16>}, {transform_indices = @transform_3, window_bounds = array<i64: 1, 8, 32>}, {transform_indices = @transform_4, window_bounds = array<i64: 1, 4, 8, 16>}]} {
    %c0 = arith.constant 0 : index
    %c0_0 = arith.constant 0 : index
    %c0_1 = arith.constant 0 : index
    %c0_2 = arith.constant 0 : index
    %0 = vector.load %arg3[%c0, %c0_0, %c0_1, %c0_2] : memref<1x1x8x16xf32, #tpu.memory_space<vmem>>, vector<1x1x8x16xf32>
    %1 = vector.shape_cast %0 : vector<1x1x8x16xf32> to vector<8x16xf32>
    %c0_3 = arith.constant 0 : index
    %c0_4 = arith.constant 0 : index
    %c0_5 = arith.constant 0 : index
    %2 = vector.load %arg1[%c0_3, %c0_4, %c0_5] : memref<1x8x32xf32, #tpu.memory_space<vmem>>, vector<1x8x8xf32>
    %3 = vector.shape_cast %2 : vector<1x8x8xf32> to vector<8x8xf32>
    %c0_6 = arith.constant 0 : index
    %c0_7 = arith.constant 0 : index
    %c0_8 = arith.constant 0 : index
    %4 = vector.load %arg2[%c0_6, %c0_7, %c0_8] : memref<1x16x64xf32, #tpu.memory_space<vmem>>, vector<1x16x8xf32>
    %5 = vector.shape_cast %4 : vector<1x16x8xf32> to vector<16x8xf32>
    %c0_9 = arith.constant 0 : index
    %c0_10 = arith.constant 0 : index
    %c32 = arith.constant 32 : index
    %6 = vector.load %arg2[%c0_9, %c0_10, %c32] : memref<1x16x64xf32, #tpu.memory_space<vmem>>, vector<1x16x8xf32>
    %7 = vector.shape_cast %6 : vector<1x16x8xf32> to vector<16x8xf32>
    %cst = arith.constant 0.353553385 : f32
    %8 = vector.broadcast %cst : f32 to vector<8x8xf32>
    %9 = arith.mulf %3, %8 : vector<8x8xf32>
    %10 = tpu.transpose %5, [1, 0] : vector<16x8xf32> -> vector<8x16xf32>
    %cst_11 = arith.constant dense<0.000000e+00> : vector<8x16xf32>
    %11 = tpu.matmul %9, %10, %cst_11 {dimension_numbers = #tpu.dot_dimension_numbers<[1], [0], [0], [1], [0, 0, 1, 1], [], []>} : vector<8x8xf32>, vector<8x16xf32>, vector<8x16xf32> -> vector<8x16xf32>
    %12 = arith.addf %11, %1 : vector<8x16xf32>
    %cst_12 = arith.constant dense<0xFF800000> : vector<8xf32>
    %13 = vector.multi_reduction <maximumf>, %12, %cst_12 [1] : vector<8x16xf32> to vector<8xf32>
    %14 = vector.shape_cast %13 : vector<8xf32> to vector<8x1xf32>
    %15 = vector.broadcast %14 : vector<8x1xf32> to vector<8x16xf32>
    %16 = arith.subf %12, %15 : vector<8x16xf32>
    %17 = math.exp %16 : vector<8x16xf32>
    %cst_13 = arith.constant dense<0.000000e+00> : vector<8xf32>
    %18 = vector.multi_reduction <add>, %17, %cst_13 [1] : vector<8x16xf32> to vector<8xf32>
    %19 = vector.shape_cast %18 : vector<8xf32> to vector<8x1xf32>
    %20 = tpu.reciprocal %19 {approx = true} : vector<8x1xf32> -> vector<8x1xf32>
    %21 = vector.broadcast %20 : vector<8x1xf32> to vector<8x16xf32>
    %22 = arith.mulf %17, %21 : vector<8x16xf32>
    %cst_14 = arith.constant dense<0.000000e+00> : vector<8x8xf32>
    %23 = tpu.matmul %22, %7, %cst_14 {dimension_numbers = #tpu.dot_dimension_numbers<[1], [0], [0], [1], [0, 0, 1, 1], [], []>} : vector<8x16xf32>, vector<16x8xf32>, vector<8x8xf32> -> vector<8x8xf32>
    %c0_15 = arith.constant 0 : index
    %c0_16 = arith.constant 0 : index
    %c0_17 = arith.constant 0 : index
    %24 = vector.load %arg4[%c0_15, %c0_16, %c0_17] : memref<1x8x32xf32, #tpu.memory_space<vmem>>, vector<1x8x8xf32>
    %25 = vector.shape_cast %24 : vector<1x8x8xf32> to vector<8x8xf32>
    %26 = vector.shape_cast %23 : vector<8x8xf32> to vector<1x8x8xf32>
    tpu.vector_store %arg4[%c0_15, %c0_16, %c0_17], %26 {strides = array<i32>} : memref<1x8x32xf32, #tpu.memory_space<vmem>>, vector<1x8x8xf32>,
    %c0_18 = arith.constant 0 : index
    %c0_19 = arith.constant 0 : index
    %c0_20 = arith.constant 0 : index
    %c0_21 = arith.constant 0 : index
    %27 = vector.load %arg5[%c0_18, %c0_19, %c0_20, %c0_21] : memref<1x4x8x16xf32, #tpu.memory_space<vmem>>, vector<1x1x8x16xf32>
    %28 = vector.shape_cast %27 : vector<1x1x8x16xf32> to vector<8x16xf32>
    %29 = vector.shape_cast %22 : vector<8x16xf32> to vector<1x1x8x16xf32>
    tpu.vector_store %arg5[%c0_18, %c0_19, %c0_20, %c0_21], %29 {strides = array<i32>} : memref<1x4x8x16xf32, #tpu.memory_space<vmem>>, vector<1x1x8x16xf32>,
    %c0_22 = arith.constant 0 : index
    %c0_23 = arith.constant 0 : index
    %c8 = arith.constant 8 : index
    %30 = vector.load %arg1[%c0_22, %c0_23, %c8] : memref<1x8x32xf32, #tpu.memory_space<vmem>>, vector<1x8x8xf32>
    %31 = vector.shape_cast %30 : vector<1x8x8xf32> to vector<8x8xf32>
    %c0_24 = arith.constant 0 : index
    %c0_25 = arith.constant 0 : index
    %c8_26 = arith.constant 8 : index
    %32 = vector.load %arg2[%c0_24, %c0_25, %c8_26] : memref<1x16x64xf32, #tpu.memory_space<vmem>>, vector<1x16x8xf32>
    %33 = vector.shape_cast %32 : vector<1x16x8xf32> to vector<16x8xf32>
    %c0_27 = arith.constant 0 : index
    %c0_28 = arith.constant 0 : index
    %c40 = arith.constant 40 : index
    %34 = vector.load %arg2[%c0_27, %c0_28, %c40] : memref<1x16x64xf32, #tpu.memory_space<vmem>>, vector<1x16x8xf32>
    %35 = vector.shape_cast %34 : vector<1x16x8xf32> to vector<16x8xf32>
    %cst_29 = arith.constant 0.353553385 : f32
    %36 = vector.broadcast %cst_29 : f32 to vector<8x8xf32>
    %37 = arith.mulf %31, %36 : vector<8x8xf32>
    %38 = tpu.transpose %33, [1, 0] : vector<16x8xf32> -> vector<8x16xf32>
    %cst_30 = arith.constant dense<0.000000e+00> : vector<8x16xf32>
    %39 = tpu.matmul %37, %38, %cst_30 {dimension_numbers = #tpu.dot_dimension_numbers<[1], [0], [0], [1], [0, 0, 1, 1], [], []>} : vector<8x8xf32>, vector<8x16xf32>, vector<8x16xf32> -> vector<8x16xf32>
    %40 = arith.addf %39, %1 : vector<8x16xf32>
    %cst_31 = arith.constant dense<0xFF800000> : vector<8xf32>
    %41 = vector.multi_reduction <maximumf>, %40, %cst_31 [1] : vector<8x16xf32> to vector<8xf32>
    %42 = vector.shape_cast %41 : vector<8xf32> to vector<8x1xf32>
    %43 = vector.broadcast %42 : vector<8x1xf32> to vector<8x16xf32>
    %44 = arith.subf %40, %43 : vector<8x16xf32>
    %45 = math.exp %44 : vector<8x16xf32>
    %cst_32 = arith.constant dense<0.000000e+00> : vector<8xf32>
    %46 = vector.multi_reduction <add>, %45, %cst_32 [1] : vector<8x16xf32> to vector<8xf32>
    %47 = vector.shape_cast %46 : vector<8xf32> to vector<8x1xf32>
    %48 = tpu.reciprocal %47 {approx = true} : vector<8x1xf32> -> vector<8x1xf32>
    %49 = vector.broadcast %48 : vector<8x1xf32> to vector<8x16xf32>
    %50 = arith.mulf %45, %49 : vector<8x16xf32>
    %cst_33 = arith.constant dense<0.000000e+00> : vector<8x8xf32>
    %51 = tpu.matmul %50, %35, %cst_33 {dimension_numbers = #tpu.dot_dimension_numbers<[1], [0], [0], [1], [0, 0, 1, 1], [], []>} : vector<8x16xf32>, vector<16x8xf32>, vector<8x8xf32> -> vector<8x8xf32>
    %c0_34 = arith.constant 0 : index
    %c0_35 = arith.constant 0 : index
    %c8_36 = arith.constant 8 : index
    %52 = vector.load %arg4[%c0_34, %c0_35, %c8_36] : memref<1x8x32xf32, #tpu.memory_space<vmem>>, vector<1x8x8xf32>
    %53 = vector.shape_cast %52 : vector<1x8x8xf32> to vector<8x8xf32>
    %54 = vector.shape_cast %51 : vector<8x8xf32> to vector<1x8x8xf32>
    tpu.vector_store %arg4[%c0_34, %c0_35, %c8_36], %54 {strides = array<i32>} : memref<1x8x32xf32, #tpu.memory_space<vmem>>, vector<1x8x8xf32>,
    %c0_37 = arith.constant 0 : index
    %c1 = arith.constant 1 : index
    %c0_38 = arith.constant 0 : index
    %c0_39 = arith.constant 0 : index
    %55 = vector.load %arg5[%c0_37, %c1, %c0_38, %c0_39] : memref<1x4x8x16xf32, #tpu.memory_space<vmem>>, vector<1x1x8x16xf32>
    %56 = vector.shape_cast %55 : vector<1x1x8x16xf32> to vector<8x16xf32>
    %57 = vector.shape_cast %50 : vector<8x16xf32> to vector<1x1x8x16xf32>
    tpu.vector_store %arg5[%c0_37, %c1, %c0_38, %c0_39], %57 {strides = array<i32>} : memref<1x4x8x16xf32, #tpu.memory_space<vmem>>, vector<1x1x8x16xf32>,
    %c0_40 = arith.constant 0 : index
    %c0_41 = arith.constant 0 : index
    %c16 = arith.constant 16 : index
    %58 = vector.load %arg1[%c0_40, %c0_41, %c16] : memref<1x8x32xf32, #tpu.memory_space<vmem>>, vector<1x8x8xf32>
    %59 = vector.shape_cast %58 : vector<1x8x8xf32> to vector<8x8xf32>
    %c0_42 = arith.constant 0 : index
    %c0_43 = arith.constant 0 : index
    %c16_44 = arith.constant 16 : index
    %60 = vector.load %arg2[%c0_42, %c0_43, %c16_44] : memref<1x16x64xf32, #tpu.memory_space<vmem>>, vector<1x16x8xf32>
    %61 = vector.shape_cast %60 : vector<1x16x8xf32> to vector<16x8xf32>
    %c0_45 = arith.constant 0 : index
    %c0_46 = arith.constant 0 : index
    %c48 = arith.constant 48 : index
    %62 = vector.load %arg2[%c0_45, %c0_46, %c48] : memref<1x16x64xf32, #tpu.memory_space<vmem>>, vector<1x16x8xf32>
    %63 = vector.shape_cast %62 : vector<1x16x8xf32> to vector<16x8xf32>
    %cst_47 = arith.constant 0.353553385 : f32
    %64 = vector.broadcast %cst_47 : f32 to vector<8x8xf32>
    %65 = arith.mulf %59, %64 : vector<8x8xf32>
    %66 = tpu.transpose %61, [1, 0] : vector<16x8xf32> -> vector<8x16xf32>
    %cst_48 = arith.constant dense<0.000000e+00> : vector<8x16xf32>
    %67 = tpu.matmul %65, %66, %cst_48 {dimension_numbers = #tpu.dot_dimension_numbers<[1], [0], [0], [1], [0, 0, 1, 1], [], []>} : vector<8x8xf32>, vector<8x16xf32>, vector<8x16xf32> -> vector<8x16xf32>
    %68 = arith.addf %67, %1 : vector<8x16xf32>
    %cst_49 = arith.constant dense<0xFF800000> : vector<8xf32>
    %69 = vector.multi_reduction <maximumf>, %68, %cst_49 [1] : vector<8x16xf32> to vector<8xf32>
    %70 = vector.shape_cast %69 : vector<8xf32> to vector<8x1xf32>
    %71 = vector.broadcast %70 : vector<8x1xf32> to vector<8x16xf32>
    %72 = arith.subf %68, %71 : vector<8x16xf32>
    %73 = math.exp %72 : vector<8x16xf32>
    %cst_50 = arith.constant dense<0.000000e+00> : vector<8xf32>
    %74 = vector.multi_reduction <add>, %73, %cst_50 [1] : vector<8x16xf32> to vector<8xf32>
    %75 = vector.shape_cast %74 : vector<8xf32> to vector<8x1xf32>
    %76 = tpu.reciprocal %75 {approx = true} : vector<8x1xf32> -> vector<8x1xf32>
    %77 = vector.broadcast %76 : vector<8x1xf32> to vector<8x16xf32>
    %78 = arith.mulf %73, %77 : vector<8x16xf32>
    %cst_51 = arith.constant dense<0.000000e+00> : vector<8x8xf32>
    %79 = tpu.matmul %78, %63, %cst_51 {dimension_numbers = #tpu.dot_dimension_numbers<[1], [0], [0], [1], [0, 0, 1, 1], [], []>} : vector<8x16xf32>, vector<16x8xf32>, vector<8x8xf32> -> vector<8x8xf32>
    %c0_52 = arith.constant 0 : index
    %c0_53 = arith.constant 0 : index
    %c16_54 = arith.constant 16 : index
    %80 = vector.load %arg4[%c0_52, %c0_53, %c16_54] : memref<1x8x32xf32, #tpu.memory_space<vmem>>, vector<1x8x8xf32>
    %81 = vector.shape_cast %80 : vector<1x8x8xf32> to vector<8x8xf32>
    %82 = vector.shape_cast %79 : vector<8x8xf32> to vector<1x8x8xf32>
    tpu.vector_store %arg4[%c0_52, %c0_53, %c16_54], %82 {strides = array<i32>} : memref<1x8x32xf32, #tpu.memory_space<vmem>>, vector<1x8x8xf32>,
    %c0_55 = arith.constant 0 : index
    %c2 = arith.constant 2 : index
    %c0_56 = arith.constant 0 : index
    %c0_57 = arith.constant 0 : index
    %83 = vector.load %arg5[%c0_55, %c2, %c0_56, %c0_57] : memref<1x4x8x16xf32, #tpu.memory_space<vmem>>, vector<1x1x8x16xf32>
    %84 = vector.shape_cast %83 : vector<1x1x8x16xf32> to vector<8x16xf32>
    %85 = vector.shape_cast %78 : vector<8x16xf32> to vector<1x1x8x16xf32>
    tpu.vector_store %arg5[%c0_55, %c2, %c0_56, %c0_57], %85 {strides = array<i32>} : memref<1x4x8x16xf32, #tpu.memory_space<vmem>>, vector<1x1x8x16xf32>,
    %c0_58 = arith.constant 0 : index
    %c0_59 = arith.constant 0 : index
    %c24 = arith.constant 24 : index
    %86 = vector.load %arg1[%c0_58, %c0_59, %c24] : memref<1x8x32xf32, #tpu.memory_space<vmem>>, vector<1x8x8xf32>
    %87 = vector.shape_cast %86 : vector<1x8x8xf32> to vector<8x8xf32>
    %c0_60 = arith.constant 0 : index
    %c0_61 = arith.constant 0 : index
    %c24_62 = arith.constant 24 : index
    %88 = vector.load %arg2[%c0_60, %c0_61, %c24_62] : memref<1x16x64xf32, #tpu.memory_space<vmem>>, vector<1x16x8xf32>
    %89 = vector.shape_cast %88 : vector<1x16x8xf32> to vector<16x8xf32>
    %c0_63 = arith.constant 0 : index
    %c0_64 = arith.constant 0 : index
    %c56 = arith.constant 56 : index
    %90 = vector.load %arg2[%c0_63, %c0_64, %c56] : memref<1x16x64xf32, #tpu.memory_space<vmem>>, vector<1x16x8xf32>
    %91 = vector.shape_cast %90 : vector<1x16x8xf32> to vector<16x8xf32>
    %cst_65 = arith.constant 0.353553385 : f32
    %92 = vector.broadcast %cst_65 : f32 to vector<8x8xf32>
    %93 = arith.mulf %87, %92 : vector<8x8xf32>
    %94 = tpu.transpose %89, [1, 0] : vector<16x8xf32> -> vector<8x16xf32>
    %cst_66 = arith.constant dense<0.000000e+00> : vector<8x16xf32>
    %95 = tpu.matmul %93, %94, %cst_66 {dimension_numbers = #tpu.dot_dimension_numbers<[1], [0], [0], [1], [0, 0, 1, 1], [], []>} : vector<8x8xf32>, vector<8x16xf32>, vector<8x16xf32> -> vector<8x16xf32>
    %96 = arith.addf %95, %1 : vector<8x16xf32>
    %cst_67 = arith.constant dense<0xFF800000> : vector<8xf32>
    %97 = vector.multi_reduction <maximumf>, %96, %cst_67 [1] : vector<8x16xf32> to vector<8xf32>
    %98 = vector.shape_cast %97 : vector<8xf32> to vector<8x1xf32>
    %99 = vector.broadcast %98 : vector<8x1xf32> to vector<8x16xf32>
    %100 = arith.subf %96, %99 : vector<8x16xf32>
    %101 = math.exp %100 : vector<8x16xf32>
    %cst_68 = arith.constant dense<0.000000e+00> : vector<8xf32>
    %102 = vector.multi_reduction <add>, %101, %cst_68 [1] : vector<8x16xf32> to vector<8xf32>
    %103 = vector.shape_cast %102 : vector<8xf32> to vector<8x1xf32>
    %104 = tpu.reciprocal %103 {approx = true} : vector<8x1xf32> -> vector<8x1xf32>
    %105 = vector.broadcast %104 : vector<8x1xf32> to vector<8x16xf32>
    %106 = arith.mulf %101, %105 : vector<8x16xf32>
    %cst_69 = arith.constant dense<0.000000e+00> : vector<8x8xf32>
    %107 = tpu.matmul %106, %91, %cst_69 {dimension_numbers = #tpu.dot_dimension_numbers<[1], [0], [0], [1], [0, 0, 1, 1], [], []>} : vector<8x16xf32>, vector<16x8xf32>, vector<8x8xf32> -> vector<8x8xf32>
    %c0_70 = arith.constant 0 : index
    %c0_71 = arith.constant 0 : index
    %c24_72 = arith.constant 24 : index
    %108 = vector.load %arg4[%c0_70, %c0_71, %c24_72] : memref<1x8x32xf32, #tpu.memory_space<vmem>>, vector<1x8x8xf32>
    %109 = vector.shape_cast %108 : vector<1x8x8xf32> to vector<8x8xf32>
    %110 = vector.shape_cast %107 : vector<8x8xf32> to vector<1x8x8xf32>
    tpu.vector_store %arg4[%c0_70, %c0_71, %c24_72], %110 {strides = array<i32>} : memref<1x8x32xf32, #tpu.memory_space<vmem>>, vector<1x8x8xf32>,
    %c0_73 = arith.constant 0 : index
    %c3 = arith.constant 3 : index
    %c0_74 = arith.constant 0 : index
    %c0_75 = arith.constant 0 : index
    %111 = vector.load %arg5[%c0_73, %c3, %c0_74, %c0_75] : memref<1x4x8x16xf32, #tpu.memory_space<vmem>>, vector<1x1x8x16xf32>
    %112 = vector.shape_cast %111 : vector<1x1x8x16xf32> to vector<8x16xf32>
    %113 = vector.shape_cast %106 : vector<8x16xf32> to vector<1x1x8x16xf32>
    tpu.vector_store %arg5[%c0_73, %c3, %c0_74, %c0_75], %113 {strides = array<i32>} : memref<1x4x8x16xf32, #tpu.memory_space<vmem>>, vector<1x1x8x16xf32>,
    return
  }
  func.func @transform_0(%arg0: i32) -> (i32, i32, i32) {
    %c0_i32 = arith.constant 0 : i32
    %c0_i32_0 = arith.constant 0 : i32
    %c0_i32_1 = arith.constant 0 : i32
    return %arg0, %c0_i32, %c0_i32_0 : i32, i32, i32
  }
  func.func @transform_1(%arg0: i32) -> (i32, i32, i32) {
    %c0_i32 = arith.constant 0 : i32
    %c0_i32_0 = arith.constant 0 : i32
    %c0_i32_1 = arith.constant 0 : i32
    return %arg0, %c0_i32, %c0_i32_0 : i32, i32, i32
  }
  func.func @transform_2(%arg0: i32) -> (i32, i32, i32, i32) {
    %c0_i32 = arith.constant 0 : i32
    %c0_i32_0 = arith.constant 0 : i32
    %c0_i32_1 = arith.constant 0 : i32
    %c0_i32_2 = arith.constant 0 : i32
    return %arg0, %c0_i32, %c0_i32_0, %c0_i32_1 : i32, i32, i32, i32
  }
  func.func @transform_3(%arg0: i32) -> (i32, i32, i32) {
    %c0_i32 = arith.constant 0 : i32
    %c0_i32_0 = arith.constant 0 : i32
    %c0_i32_1 = arith.constant 0 : i32
    return %arg0, %c0_i32, %c0_i32_0 : i32, i32, i32
  }
  func.func @transform_4(%arg0: i32) -> (i32, i32, i32, i32) {
    %c0_i32 = arith.constant 0 : i32
    %c0_i32_0 = arith.constant 0 : i32
    %c0_i32_1 = arith.constant 0 : i32
    %c0_i32_2 = arith.constant 0 : i32
    return %arg0, %c0_i32, %c0_i32_0, %c0_i32_1 : i32, i32, i32, i32
  }
}

module attributes {stable_mosaic.version = 11 : i64} {
  func.func @_matmul_kernel(%arg0: i32, %arg1: i32, %arg2: i32, %arg3: memref<16x32xf32, #tpu.memory_space<vmem>>, %arg4: memref<32x12xf32, #tpu.memory_space<vmem>>, %arg5: memref<1x12xf32, #tpu.memory_space<vmem>>, %arg6: memref<16x12xf32, #tpu.memory_space<vmem>>, %arg7: memref<16x12xf32, #tpu.memory_space<vmem>>) attributes {dimension_semantics = [#tpu.dimension_semantics<parallel>, #tpu.dimension_semantics<parallel>, #tpu.dimension_semantics<arbitrary>], iteration_bounds = array<i64: 1, 1, 1>, scalar_prefetch = 0 : i64, scratch_operands = 1 : i64, tpu.core_type = #tpu.core_type<tc>, window_params = [{transform_indices = @transform_0, window_bounds = array<i64: 16, 32>}, {transform_indices = @transform_1, window_bounds = array<i64: 32, 12>}, {transform_indices = @transform_2, window_bounds = array<i64: 1, 12>}, {transform_indices = @transform_3, window_bounds = array<i64: 16, 12>}]} {
    %c0_i32 = arith.constant 0 : i32
    %0 = arith.cmpi eq, %arg2, %c0_i32 : i32
    %1 = arith.extui %0 : i1 to i32
    %c0_i32_0 = arith.constant 0 : i32
    %2 = arith.cmpi ne, %1, %c0_i32_0 : i32
    scf.if %2 {
      %cst_10 = arith.constant 0.000000e+00 : f32
      %12 = vector.broadcast %cst_10 : f32 to vector<16x12xf32>
      %c0_11 = arith.constant 0 : index
      %c0_12 = arith.constant 0 : index
      %13 = vector.load %arg7[%c0_11, %c0_12] : memref<16x12xf32, #tpu.memory_space<vmem>>, vector<16x12xf32>
      tpu.vector_store %arg7[%c0_11, %c0_12], %12 {strides = array<i32>} : memref<16x12xf32, #tpu.memory_space<vmem>>, vector<16x12xf32>,
    } else {
    }
    %c0 = arith.constant 0 : index
    %c0_1 = arith.constant 0 : index
    %3 = vector.load %arg7[%c0, %c0_1] : memref<16x12xf32, #tpu.memory_space<vmem>>, vector<16x12xf32>
    %c0_2 = arith.constant 0 : index
    %c0_3 = arith.constant 0 : index
    %4 = vector.load %arg3[%c0_2, %c0_3] : memref<16x32xf32, #tpu.memory_space<vmem>>, vector<16x32xf32>
    %c0_4 = arith.constant 0 : index
    %c0_5 = arith.constant 0 : index
    %5 = vector.load %arg4[%c0_4, %c0_5] : memref<32x12xf32, #tpu.memory_space<vmem>>, vector<32x12xf32>
    %cst = arith.constant dense<0.000000e+00> : vector<16x12xf32>
    %6 = tpu.matmul %4, %5, %cst {dimension_numbers = #tpu.dot_dimension_numbers<[1], [0], [0], [1], [0, 0, 1, 1], [], []>} : vector<16x32xf32>, vector<32x12xf32>, vector<16x12xf32> -> vector<16x12xf32>
    %7 = arith.addf %3, %6 : vector<16x12xf32>
    %c0_6 = arith.constant 0 : index
    %c0_7 = arith.constant 0 : index
    %8 = vector.load %arg7[%c0_6, %c0_7] : memref<16x12xf32, #tpu.memory_space<vmem>>, vector<16x12xf32>
    tpu.vector_store %arg7[%c0_6, %c0_7], %7 {strides = array<i32>} : memref<16x12xf32, #tpu.memory_space<vmem>>, vector<16x12xf32>,
    %c0_i32_8 = arith.constant 0 : i32
    %9 = arith.cmpi eq, %arg2, %c0_i32_8 : i32
    %10 = arith.extui %9 : i1 to i32
    %c0_i32_9 = arith.constant 0 : i32
    %11 = arith.cmpi ne, %10, %c0_i32_9 : i32
    scf.if %11 {
      %c0_10 = arith.constant 0 : index
      %c0_11 = arith.constant 0 : index
      %12 = vector.load %arg7[%c0_10, %c0_11] : memref<16x12xf32, #tpu.memory_space<vmem>>, vector<16x12xf32>
      %c0_12 = arith.constant 0 : index
      %c0_13 = arith.constant 0 : index
      %13 = vector.load %arg5[%c0_12, %c0_13] : memref<1x12xf32, #tpu.memory_space<vmem>>, vector<1x12xf32>
      %14 = vector.broadcast %13 : vector<1x12xf32> to vector<16x12xf32>
      %15 = arith.addf %12, %14 : vector<16x12xf32>
      %c0_14 = arith.constant 0 : index
      %c0_15 = arith.constant 0 : index
      %16 = vector.load %arg6[%c0_14, %c0_15] : memref<16x12xf32, #tpu.memory_space<vmem>>, vector<16x12xf32>
      tpu.vector_store %arg6[%c0_14, %c0_15], %15 {strides = array<i32>} : memref<16x12xf32, #tpu.memory_space<vmem>>, vector<16x12xf32>,
    } else {
    }
    return
  }
  func.func @transform_0(%arg0: i32, %arg1: i32, %arg2: i32) -> (i32, i32) {
    %c0_i32 = arith.constant 0 : i32
    return %arg0, %arg2 : i32, i32
  }
  func.func @transform_1(%arg0: i32, %arg1: i32, %arg2: i32) -> (i32, i32) {
    %c0_i32 = arith.constant 0 : i32
    return %arg2, %arg1 : i32, i32
  }
  func.func @transform_2(%arg0: i32, %arg1: i32, %arg2: i32) -> (i32, i32) {
    %c0_i32 = arith.constant 0 : i32
    %c0_i32_0 = arith.constant 0 : i32
    return %c0_i32, %arg1 : i32, i32
  }
  func.func @transform_3(%arg0: i32, %arg1: i32, %arg2: i32) -> (i32, i32) {
    %c0_i32 = arith.constant 0 : i32
    return %arg0, %arg1 : i32, i32
  }
}

</mosaic_0001>

<bundles_post_ra>
// kernel: decoder_forward.19
= control target key start
LH: loop header
LB: loop body
LE: loop exit
PB: predicated region body
PF: predicated region fallthrough
CT: control target
= control target key end

     0   :  { %vm29_vm0 = vcmask 261120   ;;  %vm18_vm1 = vcmask 785408   ;;  %v165_v3 = vmov 0.0   ;;  %s221_s1 = inlined_call_operand.vmem [shape: f32[32,96], index: 1, kind: input, shape index: {}]   ;;  %s222_s0 = inlined_call_operand.vmem [shape: f32[16,32], index: 0, kind: input, shape index: {}]   ;;  %s223_s2 = inlined_call_operand.vmem [shape: f32[1,96], index: 2, kind: input, shape index: {}]   ;;  %s224_s3 = inlined_call_operand.vmem [shape: f32[16,96], index: 3, kind: output, shape index: {}]  }
   0x1   :  { %v25_v0 = vld [vmem:[%s221_s1] sm:$0xff]  ;;  %v26_v1 = vld [vmem:[%s221_s1 + $0x8] sm:$0xff]  ;;  %v27_v2 = vld [vmem:[%s221_s1 + $0x10] sm:$0xff]  ;;  %20 = vst.msk [vmem:[#allocation2 + $0x8] sm:$0xff] %vm18_vm1, %v165_v3 }
   0x2   :  { %19 = vst.msk [vmem:[#allocation2] sm:$0xff] %vm18_vm1, %v165_v3  ;;  %v156_v4 = vpack.c.bf16 %v26_v1, %v25_v0  ;;  %v28_v5 = vld [vmem:[%s221_s1 + $0x18] sm:$0xff]  ;;  %v23_v6 = vld [vmem:[%s222_s0] sm:$0xff]  ;;  %v24_v8 = vld [vmem:[%s222_s0 + $0x8] sm:$0xff] }
   0x3   :  { %v160_v7 = vpack.c.bf16 %v28_v5, %v27_v2  ;;  %153 = vmatprep.mubr.msk.f32.mxu0 %vm29_vm0, %v23_v6  ;;  %v138_v15 = vld [vmem:[%s223_s2] ss:$0 sm:$0xff] }
   0x4   :  { %157 = vmatprep.subr.bf16.mxu0 %v156_v4 }
   0x5   :  { %159 = vmatpush3.bf16.msra.mxu0 %v156_v4 }
   0x6   :  { %161 = vmatprep.subr.bf16.mxu0 %v160_v7 }
   0x8   :  { %v22_v9 = vld [vmem:[#allocation2 + $0x8] sm:$0xff] }
   0x9   :  { %163 = vmatpush3.bf16.msra.mxu0 %v160_v7  ;;  %v21_v10 = vld [vmem:[#allocation2] sm:$0xff] }
   0xc   :  { %154 = vmatmul.mubr.msk.f32.vlgmr.msra.gmra.mrb[0].mxu0 %vm29_vm0, %v24_v8 }
  0xdf   :  { %v155_v11 = vpop.f32.mrb[0].mxu0 }
  0xe0   :  { %v112_v12 = vadd.f32 %v155_v11, %v22_v9  ;;  %v102_v13 = vpop.f32.mrb[1].mxu0 }
  0xe1   :  { %v111_v14 = vadd.f32 %v102_v13, %v21_v10 }
  0xe2   :  { %115 = vst.msk [vmem:[#allocation2 + $0x8] sm:$0xff] %vm18_vm1, %v112_v12 }
  0xe3   :  { %114 = vst.msk [vmem:[#allocation2] sm:$0xff] %vm18_vm1, %v111_v14 }
  0xe9   :  { %v120_v16 = vld [vmem:[#allocation2 + $0x8] sm:$0xff] }
  0xea   :  { %v129_v17 = vadd.f32 %v138_v15, %v120_v16  ;;  %v119_v18 = vld [vmem:[#allocation2] sm:$0xff] }
  0xeb   :  { %v128_v19 = vadd.f32 %v138_v15, %v119_v18 }
  0xec   :  { %131 = vst.msk [vmem:[%s224_s3 + $0x8] sm:$0xff] %vm18_vm1, %v129_v17 }
  0xed   :  { %130 = vst.msk [vmem:[%s224_s3] sm:$0xff] %vm18_vm1, %v128_v19 }

// kernel: decoder_forward.18
= control target key start
LH: loop header
LB: loop body
LE: loop exit
PB: predicated region body
PF: predicated region fallthrough
CT: control target
= control target key end

     0   :  { %vm27_vm0 = vcmask 130048   ;;  %vm18_vm1 = vcmask 261120   ;;  %v153_v3 = vmov 0.0   ;;  %s201_s1 = inlined_call_operand.vmem [shape: f32[16,32], index: 1, kind: input, shape index: {}]   ;;  %s202_s0 = inlined_call_operand.vmem [shape: f32[16,16], index: 0, kind: input, shape index: {}]   ;;  %s203_s2 = inlined_call_operand.vmem [shape: f32[1,32], index: 2, kind: input, shape index: {}]   ;;  %s204_s3 = inlined_call_operand.vmem [shape: f32[16,32], index: 3, kind: output, shape index: {}]  }
   0x1   :  { %v25_v0 = vld [vmem:[%s201_s1] sm:$0xff]  ;;  %v26_v1 = vld [vmem:[%s201_s1 + $0x8] sm:$0xff]  ;;  %20 = vst.msk [vmem:[#allocation2 + $0x8] sm:$0xff] %vm18_vm1, %v153_v3  ;;  %19 = vst.msk [vmem:[#allocation2] sm:$0xff] %vm18_vm1, %v153_v3 }
   0x2   :  { %v23_v2 = vld [vmem:[%s202_s0] sm:$0xff]  ;;  %v148_v4 = vpack.c.bf16 %v26_v1, %v25_v0  ;;  %v24_v5 = vld [vmem:[%s202_s0 + $0x8] sm:$0xff] }
   0x3   :  { %145 = vmatprep.mubr.msk.f32.mxu0 %vm27_vm0, %v23_v2  ;;  %v136_v12 = vld [vmem:[%s203_s2] ss:$0 sm:$0xff] }
   0x4   :  { %149 = vmatprep.subr.bf16.mxu0 %v148_v4 }
   0x5   :  { %151 = vmatpush3.bf16.msra.mxu0 %v148_v4 }
   0x8   :  { %146 = vmatmul.mubr.msk.f32.vlgmr.msra.gmra.mrb[0].mxu0 %vm27_vm0, %v24_v5  ;;  %v22_v6 = vld [vmem:[#allocation2 + $0x8] sm:$0xff]  ;;  %v21_v7 = vld [vmem:[#allocation2] sm:$0xff] }
  0xdb   :  { %v147_v8 = vpop.f32.mrb[0].mxu0 }
  0xdc   :  { %v110_v9 = vadd.f32 %v147_v8, %v22_v6  ;;  %v100_v10 = vpop.f32.mrb[1].mxu0 }
  0xdd   :  { %v109_v11 = vadd.f32 %v100_v10, %v21_v7 }
  0xde   :  { %113 = vst.msk [vmem:[#allocation2 + $0x8] sm:$0xff] %vm18_vm1, %v110_v9 }
  0xdf   :  { %112 = vst.msk [vmem:[#allocation2] sm:$0xff] %vm18_vm1, %v109_v11 }
  0xe5   :  { %v118_v13 = vld [vmem:[#allocation2 + $0x8] sm:$0xff] }
  0xe6   :  { %v127_v14 = vadd.f32 %v136_v12, %v118_v13  ;;  %v117_v15 = vld [vmem:[#allocation2] sm:$0xff] }
  0xe7   :  { %v126_v16 = vadd.f32 %v136_v12, %v117_v15 }
  0xe8   :  { %129 = vst.msk [vmem:[%s204_s3 + $0x8] sm:$0xff] %vm18_vm1, %v127_v14 }
  0xe9   :  { %128 = vst.msk [vmem:[%s204_s3] sm:$0xff] %vm18_vm1, %v126_v16 }

// kernel: decoder_forward.21
= control target key start
LH: loop header
LB: loop body
LE: loop exit
PB: predicated region body
PF: predicated region fallthrough
CT: control target
= control target key end

     0   :  { %vm36_vm0 = vcmask 261120   ;;  %s289_s1 = inlined_call_operand.vmem [shape: f32[32,32], index: 1, kind: input, shape index: {}]   ;;  %s290_s0 = inlined_call_operand.vmem [shape: f32[16,32], index: 0, kind: input, shape index: {}]   ;;  %s291_s2 = inlined_call_operand.vmem [shape: f32[1,32], index: 2, kind: input, shape index: {}]   ;;  %s292_s3 = inlined_call_operand.vmem [shape: f32[16,32], index: 3, kind: input, shape index: {}]   ;;  %s293_s4 = inlined_call_operand.vmem [shape: f32[1,32], index: 4, kind: input, shape index: {}]   ;;  %s294_s5 = inlined_call_operand.vmem [shape: f32[1,32], index: 5, kind: input, shape index: {}]   ;;  %s295_s6 = inlined_call_operand.vmem [shape: f32[16,32], index: 6, kind: output, shape index: {}]  }
   0x1   :  { %v25_v0 = vld [vmem:[%s289_s1] sm:$0xff]  ;;  %v26_v1 = vld [vmem:[%s289_s1 + $0x8] sm:$0xff]  ;;  %v27_v2 = vld [vmem:[%s289_s1 + $0x10] sm:$0xff] }
   0x2   :  { %v195_v3 = vpack.c.bf16 %v26_v1, %v25_v0  ;;  %v28_v4 = vld [vmem:[%s289_s1 + $0x18] sm:$0xff]  ;;  %v23_v5 = vld [vmem:[%s290_s0] sm:$0xff]  ;;  %v24_v7 = vld [vmem:[%s290_s0 + $0x8] sm:$0xff] }
   0x3   :  { %v199_v6 = vpack.c.bf16 %v28_v4, %v27_v2  ;;  %192 = vmatprep.mubr.msk.f32.mxu0 %vm36_vm0, %v23_v5  ;;  %v173_v8 = vld [vmem:[%s291_s2] ss:$0 sm:$0xff]  ;;  %v119_v14 = vld [vmem:[%s292_s3 + $0x8] sm:$0xff] }
   0x4   :  { %196 = vmatprep.subr.bf16.mxu0 %v195_v3  ;;  %v118_v11 = vld [vmem:[%s292_s3] sm:$0xff] }
   0x5   :  { %198 = vmatpush3.bf16.msra.mxu0 %v195_v3  ;;  %v176_v36 = vld [vmem:[%s293_s4] ss:$0 sm:$0xff] }
   0x6   :  { %200 = vmatprep.subr.bf16.mxu0 %v199_v6  ;;  %v177_v38 = vld [vmem:[%s294_s5] ss:$0 sm:$0xff] }
   0x9   :  { %202 = vmatpush3.bf16.msra.mxu0 %v199_v6 }
   0xc   :  { %193 = vmatmul.mubr.msk.f32.vlgmr.msra.gmra.mrb[0].mxu0 %vm36_vm0, %v24_v7 }
  0xdf   :  { %v194_v9 = vpop.f32.mrb[0].mxu0 }
  0xe0   :  { %v109_v10 = vpop.f32.mrb[1].mxu0  ;;  %v115_v12 = vadd.f32 %v194_v9, %v173_v8 }
  0xe1   :  { %v110_v13 = vadd.f32 %v173_v8, %v109_v10 }
  0xe2   :  { %v121_v17 = vadd.f32 %v119_v14, %v115_v12 }
  0xe3   :  { %v120_v15 = vadd.f32 %v118_v11, %v110_v13 }
  0xe4   :  { %v127_v18 = vsel %vm36_vm0, %v121_v17, 0.0 }
  0xe5   :  { %v124_v16 = vsel %vm36_vm0, %v120_v15, 0.0 }
  0xe6   :  { %125 = vadd.xlane.f32.xlu0 %v124_v16 }
  0xea   :  { %128 = vadd.xlane.f32.xlu0 %v127_v18 }
 0x173   :  { %v126_v19 = vpop.xlane.xlu0 %125 }
 0x174   :  { %v131_v20 = vmul.f32 0.03125, %v126_v19 }
 0x176   :  { %v133_v21 = vsub.f32 %v120_v15, %v131_v20 }
 0x177   :  { %v129_v22 = vpop.xlane.xlu0 %128 }
 0x178   :  { %v132_v23 = vmul.f32 0.03125, %v129_v22  ;;  %v135_v24 = vmul.f32 %v133_v21, %v133_v21 }
 0x17a   :  { %v134_v25 = vsub.f32 %v121_v17, %v132_v23  ;;  %v137_v26 = vsel %vm36_vm0, %v135_v24, 0.0 }
 0x17b   :  { %138 = vadd.xlane.f32.xlu1 %v137_v26 }
 0x17c   :  { %v136_v27 = vmul.f32 %v134_v25, %v134_v25 }
 0x17e   :  { %v140_v28 = vsel %vm36_vm0, %v136_v27, 0.0 }
 0x17f   :  { %141 = vadd.xlane.f32.xlu1 %v140_v28 }
 0x208   :  { %v139_v29 = vpop.xlane.xlu1 %138 }
 0x209   :  { %v143_v30 = vmul.f32 0.03125, %v139_v29 }
 0x20b   :  { %v145_v31 = vadd.f32 1e-05, %v143_v30 }
 0x20c   :  { %v142_v32 = vpop.xlane.xlu1 %141 }
 0x20d   :  { %203 = vrsqrt.f32 %v145_v31  ;;  %v144_v33 = vmul.f32 0.03125, %v142_v32 }
 0x20f   :  { %v146_v34 = vadd.f32 1e-05, %v144_v33 }
 0x211   :  { %205 = vrsqrt.f32 %v146_v34 }
 0x217   :  { %v204_v35 = vpop.eup %203 }
 0x218   :  { %v149_v37 = vmul.f32 %v204_v35, %v133_v21 }
 0x21a   :  { %v157_v39 = vmul.f32 %v176_v36, %v149_v37 }
 0x21b   :  { %v206_v40 = vpop.eup %205 }
 0x21c   :  { %v165_v41 = vadd.f32 %v177_v38, %v157_v39  ;;  %v150_v42 = vmul.f32 %v206_v40, %v134_v25 }
 0x21e   :  { %167 = vst.msk [vmem:[%s295_s6] sm:$0xff] %vm36_vm0, %v165_v41  ;;  %v158_v43 = vmul.f32 %v176_v36, %v150_v42 }
 0x220   :  { %v166_v44 = vadd.f32 %v177_v38, %v158_v43 }
 0x222   :  { %168 = vst.msk [vmem:[%s295_s6 + $0x8] sm:$0xff] %vm36_vm0, %v166_v44 }

// kernel: decoder_forward.20
= control target key start
LH: loop header
LB: loop body
LE: loop exit
PB: predicated region body
PF: predicated region fallthrough
CT: control target
= control target key end

     0   :  { %s1073_s9 = smov 0   ;;  %s1160_s0 = inlined_call_operand.vmem [shape: f32[2,8,96], index: 0, kind: input, shape index: {}]   ;;  %s1161_s1 = inlined_call_operand.vmem [shape: f32[2,1,8,8], index: 1, kind: input, shape index: {}]   ;;  %s1162_s2 = inlined_call_operand.vmem [shape: f32[2,8,32], index: 2, kind: output, shape index: {}]  }
   0x1 LB: > { %s916_s10 = sadd.s32 4294967295, %s1040_s9   ;;  %p920_p0 = scmp.ge.s32.totalorder %s1040_s9, 1  ;;  %s1040_s9 = sphi %s1073_s9, %s12_s9  }
   0x2   : > { %p120_p1 = scmp.lt.s32.totalorder %s1040_s9, 3 }
   0x4   : > { %p121_p2 = pnand %p920_p0, %p120_p1 }
   0x5   : > { %p144_p3 = scmp.lt.s32.totalorder (!%p121_p2), %s916_s10, 1  ;;  %v1042_v0 = vmov (!%p121_p2), 0.0   ;;  %vm1043_vm0 = vmmov (!%p121_p2), 0   ;;  %s1044_s15 = smov (!%p121_p2), 96   ;;  %vm162_vm1 = vcmask (!%p121_p2), 64512   ;;  %vm499_vm2 = vcmask (!%p121_p2), 130112  }
   0x6   : > { %124 = sbr.rel (%p121_p2) target bundleno = 1531 (0x5fb), region = 28  ;;  %954 = vmatprep.subr.mxu0 (!%p121_p2), %v1042_v0  ;;  %956 = vmatprep.mubr.msk.f32.mxu0 (!%p121_p2), %vm1043_vm0, %v1042_v0  ;;  %s1045_s16 = smov (!%p121_p2), 64   ;;  %vm674_vm3 = vcmask (!%p121_p2), 195712   ;;  %vm849_vm4 = vcmask (!%p121_p2), 261312  }
   0x7   : > { %959 = vmatprep.subr.mxu1 (!%p121_p2), %v1042_v0  ;;  %961 = vmatprep.mubr.msk.f32.mxu1 (!%p121_p2), %vm1043_vm0, %v1042_v0  ;;  %s1046_s17 = smov (!%p121_p2), 88   ;;  %s1047_s18 = smov (!%p121_p2), 120  }
   0x8   : > { %s1048_s19 = smov (!%p121_p2), 80   ;;  %s1049_s23 = smov (!%p121_p2), 72  }
   0x9   : > { %s1050_s24 = smov (!%p121_p2), 112   ;;  %s1051_s25 = smov (!%p121_p2), 104  }
   0xa   : > { %s1052_s29 = smov (!%p121_p2), 56   ;;  %s1053_s30 = smov (!%p121_p2), 40  }
   0xb   : > { %s1054_s3 = smov (!%p121_p2), 48   ;;  %s1055_s4 = smov (!%p121_p2), 8  }
   0xc   : > { %s1056_s5 = smov (!%p121_p2), 16   ;;  %s1057_s6 = smov (!%p121_p2), 24  }
   0xd   : > { %s1164_s10 = smov (!%p144_p3, %s916_s10), 1 }
   0xe   : > { %s1087_s11 = sshll.u32 %s1164_s10, 3 }
   0xf   : > { %s147_s14 = scalar_lea.vmem %s1160_s0, %s1087_s11  ;;  %s151_s22 = scalar_lea.vmem %s1161_s1, %s1087_s11 }
  0x10   : > { %v1093_v1 = vld [vmem:[%s147_s14] sm:$0xff]  ;;  %s1132_s28 = scalar_lea.vmem %s1162_s2, %s1087_s11 }
  0x11   : > { %160 = vrot.lane.b32.xlu0 %v1093_v1, %s1044_s15  ;;  %v158_v2 = vmul.f32 0.35355338, %v1093_v1  ;;  %249 = vrot.lane.b32.xlu1 %v1093_v1, %s1045_s16  ;;  %v156_v4 = vld [vmem:[%s151_s22] sm:$0xff] }
  0x15   : > { %332 = vrot.lane.b32.xlu1 %v1093_v1, %s1046_s17 }
  0x19   : > { %329 = vrot.lane.b32.xlu1 %v158_v2, %s1047_s18 }
  0x1d   : > { %507 = vrot.lane.b32.xlu1 %v1093_v1, %s1048_s19 }
  0x83   : > { %v161_v3 = vpop.permute.xlu0 %160  ;;  %v250_v9 = vpop.permute.xlu1 %249 }
  0x84   : > { %955 = vmatpush3.xpose.msk.msra.mxu0 %vm162_vm1, %v161_v3  ;;  %960 = vmatpush3.msra.mxu1 %v250_v9 }
  0x85   : > { %969 = vmatprep.subr.mxu0 %v1042_v0  ;;  %964 = vmatprep.subr.mxu1 %v1042_v0 }
  0x87   : > { %957 = vmatmul.mubr.msk.f32.vlgmr.msra.gmra.mrb[0].mxu0 %vm162_vm1, %v158_v2  ;;  %v333_v15 = vpop.permute.xlu1 %332 }
  0x88   : > { %971 = vmatprep.mubr.msk.f32.mxu0 %vm1043_vm0, %v1042_v0 }
  0x8b   : > { %v330_v16 = vpop.permute.xlu1 %329 }
  0x8f   : > { %v508_v17 = vpop.permute.xlu1 %507 }
 0x15a   : > { %v234_v5 = vpop.f32.mrb[0].mxu0 }
 0x15b   : > { %v235_v6 = vadd.f32 %v234_v5, %v156_v4  ;;  %v958_v7 = vpop.f32.mrb[1].mxu0 }
 0x15d   : > { %v238_v8 = vsel %vm162_vm1, %v235_v6, -inf }
 0x15e   : > { %239 = vmax.xlane.f32.xlu0 %v238_v8 }
 0x174   : > { %682 = vrot.lane.b32.xlu0 %v1093_v1, %s1049_s23 }
 0x1eb   : > { %v240_v10 = vpop.xlane.xlu0 %239 }
 0x1ec   : > { %v241_v11 = vsub.f32 %v235_v6, %v240_v10 }
 0x1ee   : > { %v242_v12 = vmul.f32 1.442695, %v241_v11 }
 0x1ef   : > { %v683_v22 = vpop.permute.xlu0 %682 }
 0x1f0   : > { %1018 = vpow2.f32 %v242_v12 }
 0x1fa   : > { %v1019_v13 = vpop.eup %1018 }
 0x1fb   : > { %v244_v14 = vsel %vm162_vm1, %v1019_v13, 0.0 }
 0x1fc   : > { %245 = vadd.xlane.f32.xlu1 %v244_v14 }
 0x20d   : > { %504 = vrot.lane.b32.xlu1 %v158_v2, %s1050_s24 }
 0x211   : > { %679 = vrot.lane.b32.xlu1 %v158_v2, %s1051_s25 }
 0x289   : > { %v246_v18 = vpop.xlane.xlu1 %245 }
 0x28a   : > { %1020 = vrcp.f32 %v246_v18 }
 0x28d   : > { %v505_v21 = vpop.permute.xlu1 %504 }
 0x291   : > { %v680_v23 = vpop.permute.xlu1 %679 }
 0x294   : > { %v1021_v19 = vpop.eup %1020 }
 0x295   : > { %v248_v20 = vmul.f32 %v1021_v19, %v1019_v13 }
 0x297   : > { %962 = vmatmul.mubr.msk.f32.vlgmr.msra.gmra.mrb[0].mxu1 %vm162_vm1, %v248_v20 }
 0x298   : > { %965 = vmatpush3.xpose.msk.msra.mxu1 %vm162_vm1, %v333_v15  ;;  %966 = vmatprep.mubr.msk.f32.mxu1 %vm1043_vm0, %v1042_v0 }
 0x299   : > { %974 = vmatprep.subr.mxu1 %v1042_v0 }
 0x29b   : > { %967 = vmatmul.mubr.msk.f32.vlgmr.msra.gmra.mrb[2].mxu1 %vm162_vm1, %v330_v16 }
 0x29c   : > { %975 = vmatpush3.xpose.msk.msra.mxu1 %vm162_vm1, %v508_v17  ;;  %976 = vmatprep.mubr.msk.f32.mxu1 %vm1043_vm0, %v1042_v0 }
 0x29d   : > { %984 = vmatprep.subr.mxu1 %v1042_v0 }
 0x29f   : > { %977 = vmatmul.mubr.msk.f32.vlgmr.msra.gmra.mrb[4].mxu1 %vm162_vm1, %v505_v21 }
 0x2a0   : > { %985 = vmatpush3.xpose.msk.msra.mxu1 %vm162_vm1, %v683_v22  ;;  %986 = vmatprep.mubr.msk.f32.mxu1 %vm1043_vm0, %v1042_v0 }
 0x2a3   : > { %987 = vmatmul.mubr.msk.f32.vlgmr.msra.gmra.mrb[6].mxu1 %vm162_vm1, %v680_v23 }
 0x36a   : > { %v321_v24 = vpop.f32.mrb[0].mxu1 }
 0x36b   : > { %325 = vst.msk [vmem:[%s1132_s28] sm:$0xff] %vm162_vm1, %v321_v24  ;;  %v963_v25 = vpop.f32.mrb[1].mxu1 }
 0x36e   : > { %v404_v26 = vpop.f32.mrb[2].mxu1 }
 0x36f   : > { %v405_v27 = vadd.f32 %v404_v26, %v156_v4  ;;  %v968_v28 = vpop.f32.mrb[3].mxu1 }
 0x371   : > { %v408_v29 = vsel %vm162_vm1, %v405_v27, -inf }
 0x372   : > { %409 = vmax.xlane.f32.xlu1 %v408_v29  ;;  %v579_v30 = vpop.f32.mrb[4].mxu1 }
 0x373   : > { %v580_v31 = vadd.f32 %v579_v30, %v156_v4  ;;  %v978_v32 = vpop.f32.mrb[5].mxu1 }
 0x375   : > { %v583_v33 = vsel %vm162_vm1, %v580_v31, -inf }
 0x376   : > { %584 = vmax.xlane.f32.xlu0 %v583_v33  ;;  %v754_v34 = vpop.f32.mrb[6].mxu1 }
 0x377   : > { %v755_v35 = vadd.f32 %v754_v34, %v156_v4  ;;  %v988_v36 = vpop.f32.mrb[7].mxu1 }
 0x379   : > { %v758_v37 = vsel %vm162_vm1, %v755_v35, -inf }
 0x37a   : > { %759 = vmax.xlane.f32.xlu1 %v758_v37 }
 0x38b   : > { %419 = vrot.lane.b32.xlu1 %v1093_v1, %s1052_s29 }
 0x3ff   : > { %v410_v38 = vpop.xlane.xlu1 %409 }
 0x400   : > { %v411_v39 = vsub.f32 %v405_v27, %v410_v38 }
 0x402   : > { %v412_v40 = vmul.f32 1.442695, %v411_v39 }
 0x403   : > { %v585_v41 = vpop.xlane.xlu0 %584 }
 0x404   : > { %1022 = vpow2.f32 %v412_v40  ;;  %v586_v42 = vsub.f32 %v580_v31, %v585_v41 }
 0x406   : > { %v587_v43 = vmul.f32 1.442695, %v586_v42 }
 0x407   : > { %v760_v44 = vpop.xlane.xlu1 %759 }
 0x408   : > { %1024 = vpow2.f32 %v587_v43  ;;  %v761_v45 = vsub.f32 %v755_v35, %v760_v44 }
 0x40a   : > { %v762_v46 = vmul.f32 1.442695, %v761_v45 }
 0x40b   : > { %v420_v47 = vpop.permute.xlu1 %419 }
 0x40c   : > { %1026 = vpow2.f32 %v762_v46  ;;  %970 = vmatpush3.msra.mxu0 %v420_v47 }
 0x40d   : > { %979 = vmatprep.subr.mxu0 %v1042_v0 }
 0x40e   : > { %v1023_v48 = vpop.eup %1022 }
 0x40f   : > { %v414_v49 = vsel %vm162_vm1, %v1023_v48, 0.0 }
 0x410   : > { %415 = vadd.xlane.f32.xlu1 %v414_v49 }
 0x412   : > { %v1025_v50 = vpop.eup %1024 }
 0x413   : > { %v589_v51 = vsel %vm162_vm1, %v1025_v50, 0.0 }
 0x414   : > { %590 = vadd.xlane.f32.xlu1 %v589_v51 }
 0x416   : > { %v1027_v52 = vpop.eup %1026 }
 0x417   : > { %v764_v53 = vsel %vm162_vm1, %v1027_v52, 0.0 }
 0x418   : > { %765 = vadd.xlane.f32.xlu0 %v764_v53 }
 0x425   : > { %769 = vrot.lane.b32.xlu1 %v1093_v1, %s1053_s30 }
 0x42e   : > { %594 = vrot.lane.b32.xlu0 %v1093_v1, %s1054_s3 }
 0x49d   : > { %v416_v54 = vpop.xlane.xlu1 %415 }
 0x49e   : > { %1028 = vrcp.f32 %v416_v54 }
 0x4a1   : > { %v591_v55 = vpop.xlane.xlu1 %590 }
 0x4a2   : > { %1030 = vrcp.f32 %v591_v55 }
 0x4a5   : > { %v766_v56 = vpop.xlane.xlu0 %765  ;;  %v770_v62 = vpop.permute.xlu1 %769 }
 0x4a6   : > { %1032 = vrcp.f32 %v766_v56 }
 0x4a8   : > { %v1029_v57 = vpop.eup %1028 }
 0x4a9   : > { %v418_v58 = vmul.f32 %v1029_v57, %v1023_v48  ;;  %v595_v59 = vpop.permute.xlu0 %594 }
 0x4ab   : > { %972 = vmatmul.mubr.msk.f32.vlgmr.msra.gmra.mrb[2].mxu0 %vm162_vm1, %v418_v58 }
 0x4ac   : > { %v1031_v60 = vpop.eup %1030  ;;  %980 = vmatpush3.msra.mxu0 %v595_v59  ;;  %981 = vmatprep.mubr.msk.f32.mxu0 %vm1043_vm0, %v1042_v0 }
 0x4ad   : > { %v593_v61 = vmul.f32 %v1031_v60, %v1025_v50  ;;  %989 = vmatprep.subr.mxu0 %v1042_v0 }
 0x4af   : > { %982 = vmatmul.mubr.msk.f32.vlgmr.msra.gmra.mrb[4].mxu0 %vm162_vm1, %v593_v61 }
 0x4b0   : > { %v1033_v63 = vpop.eup %1032  ;;  %990 = vmatpush3.msra.mxu0 %v770_v62  ;;  %991 = vmatprep.mubr.msk.f32.mxu0 %vm1043_vm0, %v1042_v0 }
 0x4b1   : > { %v768_v1 = vmul.f32 %v1033_v63, %v1027_v52 }
 0x4b3   : > { %992 = vmatmul.mubr.msk.f32.vlgmr.msra.gmra.mrb[6].mxu0 %vm162_vm1, %v768_v1 }
 0x57e   : > { %v491_v2 = vpop.f32.mrb[2].mxu0 }
 0x57f   : > { %496 = vrot.lane.b32.xlu1 %v491_v2, %s1055_s4  ;;  %v973_v3 = vpop.f32.mrb[3].mxu0 }
 0x582   : > { %v666_v4 = vpop.f32.mrb[4].mxu0 }
 0x583   : > { %671 = vrot.lane.b32.xlu0 %v666_v4, %s1056_s5  ;;  %v983_v5 = vpop.f32.mrb[5].mxu0 }
 0x586   : > { %v841_v6 = vpop.f32.mrb[6].mxu0 }
 0x587   : > { %846 = vrot.lane.b32.xlu1 %v841_v6, %s1057_s6  ;;  %v993_v7 = vpop.f32.mrb[7].mxu0 }
 0x5f1   : > { %v497_v0 = vpop.permute.xlu1 %496 }
 0x5f2   : > { %500 = vst.msk [vmem:[%s1132_s28] sm:$0xff] %vm499_vm2, %v497_v0 }
 0x5f5   : > { %v672_v8 = vpop.permute.xlu0 %671 }
 0x5f6   : > { %675 = vst.msk [vmem:[%s1132_s28] sm:$0xff] %vm674_vm3, %v672_v8 }
 0x5f9   : > { %v847_v9 = vpop.permute.xlu1 %846 }
 0x5fa   : > { %850 = vst.msk [vmem:[%s1132_s28] sm:$0xff] %vm849_vm4, %v847_v9 }
 0x5fb PF: > { %s12_s9 = sadd.s32 1, %s1040_s9  }
 0x5fc   : > { %p9_p4 = scmp.ge.s32.totalorder %s12_s9, 4  }
 0x5fe   :  { %11 = sbr.rel (!%p9_p4) target bundleno = 1 (0x1), region = 61 }

// kernel: decoder_forward.22
= control target key start
LH: loop header
LB: loop body
LE: loop exit
PB: predicated region body
PF: predicated region fallthrough
CT: control target
= control target key end

     0   :  { %vm18_vm0 = vcmask 261120   ;;  %v164_v3 = vmov 0.0   ;;  %s220_s1 = inlined_call_operand.vmem [shape: f32[32,32], index: 1, kind: input, shape index: {}]   ;;  %s221_s0 = inlined_call_operand.vmem [shape: f32[16,32], index: 0, kind: input, shape index: {}]   ;;  %s222_s2 = inlined_call_operand.vmem [shape: f32[1,32], index: 2, kind: input, shape index: {}]   ;;  %s223_s3 = inlined_call_operand.vmem [shape: f32[16,32], index: 3, kind: output, shape index: {}]  }
   0x1   :  { %v25_v0 = vld [vmem:[%s220_s1] sm:$0xff]  ;;  %v26_v1 = vld [vmem:[%s220_s1 + $0x8] sm:$0xff]  ;;  %v27_v2 = vld [vmem:[%s220_s1 + $0x10] sm:$0xff]  ;;  %20 = vst.msk [vmem:[#allocation2 + $0x8] sm:$0xff] %vm18_vm0, %v164_v3 }
   0x2   :  { %19 = vst.msk [vmem:[#allocation2] sm:$0xff] %vm18_vm0, %v164_v3  ;;  %v155_v4 = vpack.c.bf16 %v26_v1, %v25_v0  ;;  %v28_v5 = vld [vmem:[%s220_s1 + $0x18] sm:$0xff]  ;;  %v23_v6 = vld [vmem:[%s221_s0] sm:$0xff]  ;;  %v24_v8 = vld [vmem:[%s221_s0 + $0x8] sm:$0xff] }
   0x3   :  { %v159_v7 = vpack.c.bf16 %v28_v5, %v27_v2  ;;  %152 = vmatprep.mubr.msk.f32.mxu0 %vm18_vm0, %v23_v6  ;;  %v137_v15 = vld [vmem:[%s222_s2] ss:$0 sm:$0xff] }
   0x4   :  { %156 = vmatprep.subr.bf16.mxu0 %v155_v4 }
   0x5   :  { %158 = vmatpush3.bf16.msra.mxu0 %v155_v4 }
   0x6   :  { %160 = vmatprep.subr.bf16.mxu0 %v159_v7 }
   0x8   :  { %v22_v9 = vld [vmem:[#allocation2 + $0x8] sm:$0xff] }
   0x9   :  { %162 = vmatpush3.bf16.msra.mxu0 %v159_v7  ;;  %v21_v10 = vld [vmem:[#allocation2] sm:$0xff] }
   0xc   :  { %153 = vmatmul.mubr.msk.f32.vlgmr.msra.gmra.mrb[0].mxu0 %vm18_vm0, %v24_v8 }
  0xdf   :  { %v154_v11 = vpop.f32.mrb[0].mxu0 }
  0xe0   :  { %v112_v12 = vadd.f32 %v154_v11, %v22_v9  ;;  %v102_v13 = vpop.f32.mrb[1].mxu0 }
  0xe1   :  { %v111_v14 = vadd.f32 %v102_v13, %v21_v10 }
  0xe2   :  { %114 = vst.msk [vmem:[#allocation2 + $0x8] sm:$0xff] %vm18_vm0, %v112_v12 }
  0xe3   :  { %113 = vst.msk [vmem:[#allocation2] sm:$0xff] %vm18_vm0, %v111_v14 }
  0xe9   :  { %v119_v16 = vld [vmem:[#allocation2 + $0x8] sm:$0xff] }
  0xea   :  { %v128_v17 = vadd.f32 %v137_v15, %v119_v16  ;;  %v118_v18 = vld [vmem:[#allocation2] sm:$0xff] }
  0xeb   :  { %v127_v19 = vadd.f32 %v137_v15, %v118_v18 }
  0xec   :  { %130 = vst.msk [vmem:[%s223_s3 + $0x8] sm:$0xff] %vm18_vm0, %v128_v17 }
  0xed   :  { %129 = vst.msk [vmem:[%s223_s3] sm:$0xff] %vm18_vm0, %v127_v19 }

// kernel: decoder_forward.23
= control target key start
LH: loop header
LB: loop body
LE: loop exit
PB: predicated region body
PF: predicated region fallthrough
CT: control target
= control target key end

     0   :  { %vm35_vm0 = vcmask 261120   ;;  %vm18_vm1 = vcmask 523264   ;;  %v208_v3 = vmov 0.0   ;;  %s284_s1 = inlined_call_operand.vmem [shape: f32[32,64], index: 1, kind: input, shape index: {}]   ;;  %s285_s0 = inlined_call_operand.vmem [shape: f32[32,32], index: 0, kind: input, shape index: {}]   ;;  %s286_s2 = inlined_call_operand.vmem [shape: f32[1,64], index: 2, kind: input, shape index: {}]   ;;  %s287_s3 = inlined_call_operand.vmem [shape: f32[32,64], index: 3, kind: output, shape index: {}]  }
   0x1   :  { %v31_v0 = vld [vmem:[%s284_s1] sm:$0xff]  ;;  %v32_v1 = vld [vmem:[%s284_s1 + $0x8] sm:$0xff]  ;;  %v33_v2 = vld [vmem:[%s284_s1 + $0x10] sm:$0xff]  ;;  %20 = vst.msk [vmem:[#allocation2 + $0x8] sm:$0xff] %vm18_vm1, %v208_v3 }
   0x2   :  { %19 = vst.msk [vmem:[#allocation2] sm:$0xff] %vm18_vm1, %v208_v3  ;;  %21 = vst.msk [vmem:[#allocation2 + $0x10] sm:$0xff] %vm18_vm1, %v208_v3  ;;  %v195_v4 = vpack.c.bf16 %v32_v1, %v31_v0  ;;  %v34_v5 = vld [vmem:[%s284_s1 + $0x18] sm:$0xff]  ;;  %v27_v6 = vld [vmem:[%s285_s0] sm:$0xff] }
   0x3   :  { %22 = vst.msk [vmem:[#allocation2 + $0x18] sm:$0xff] %vm18_vm1, %v208_v3  ;;  %v29_v7 = vld [vmem:[%s285_s0 + $0x10] sm:$0xff]  ;;  %v199_v8 = vpack.c.bf16 %v34_v5, %v33_v2  ;;  %189 = vmatprep.mubr.msk.f32.mxu0 %vm35_vm0, %v27_v6  ;;  %v28_v9 = vld [vmem:[%s285_s0 + $0x8] sm:$0xff]  ;;  %v30_v10 = vld [vmem:[%s285_s0 + $0x18] sm:$0xff] }
   0x4   :  { %192 = vmatprep.mubr.msk.f32.mxu1 %vm35_vm0, %v29_v7  ;;  %196 = vmatprep.subr.bf16.mxu0 %v195_v4  ;;  %v172_v23 = vld [vmem:[%s286_s2] ss:$0 sm:$0xff] }
   0x5   :  { %203 = vmatprep.subr.bf16.mxu1 %v195_v4  ;;  %198 = vmatpush3.bf16.msra.mxu0 %v195_v4 }
   0x6   :  { %205 = vmatpush3.bf16.msra.mxu1 %v195_v4  ;;  %200 = vmatprep.subr.bf16.mxu0 %v199_v8 }
   0x7   :  { %204 = vmatprep.subr.bf16.mxu1 %v199_v8 }
   0x8   :  { %v24_v11 = vld [vmem:[#allocation2 + $0x8] sm:$0xff] }
   0x9   :  { %202 = vmatpush3.bf16.msra.mxu0 %v199_v8  ;;  %v23_v13 = vld [vmem:[#allocation2] sm:$0xff]  ;;  %v25_v14 = vld [vmem:[#allocation2 + $0x10] sm:$0xff] }
   0xa   :  { %206 = vmatpush3.bf16.msra.mxu1 %v199_v8  ;;  %v26_v12 = vld [vmem:[#allocation2 + $0x18] sm:$0xff] }
   0xc   :  { %190 = vmatmul.mubr.msk.f32.vlgmr.msra.gmra.mrb[0].mxu0 %vm35_vm0, %v28_v9 }
   0xd   :  { %193 = vmatmul.mubr.msk.f32.vlgmr.msra.gmra.mrb[0].mxu1 %vm35_vm0, %v30_v10 }
  0xdf   :  { %v191_v15 = vpop.f32.mrb[0].mxu0 }
  0xe0   :  { %v194_v16 = vpop.f32.mrb[0].mxu1  ;;  %v134_v17 = vadd.f32 %v191_v15, %v24_v11  ;;  %v114_v19 = vpop.f32.mrb[1].mxu0 }
  0xe1   :  { %v136_v18 = vadd.f32 %v194_v16, %v26_v12  ;;  %v124_v20 = vpop.f32.mrb[1].mxu1  ;;  %v133_v21 = vadd.f32 %v114_v19, %v23_v13 }
  0xe2   :  { %v135_v22 = vadd.f32 %v124_v20, %v25_v14  ;;  %139 = vst.msk [vmem:[#allocation2 + $0x8] sm:$0xff] %vm18_vm1, %v134_v17 }
  0xe3   :  { %141 = vst.msk [vmem:[#allocation2 + $0x18] sm:$0xff] %vm18_vm1, %v136_v18  ;;  %138 = vst.msk [vmem:[#allocation2] sm:$0xff] %vm18_vm1, %v133_v21 }
  0xe4   :  { %140 = vst.msk [vmem:[#allocation2 + $0x10] sm:$0xff] %vm18_vm1, %v135_v22 }
  0xe9   :  { %v146_v24 = vld [vmem:[#allocation2 + $0x8] sm:$0xff] }
  0xea   :  { %v148_v25 = vld [vmem:[#allocation2 + $0x18] sm:$0xff]  ;;  %v157_v26 = vadd.f32 %v172_v23, %v146_v24  ;;  %v145_v28 = vld [vmem:[#allocation2] sm:$0xff] }
  0xeb   :  { %v159_v27 = vadd.f32 %v172_v23, %v148_v25  ;;  %v147_v29 = vld [vmem:[#allocation2 + $0x10] sm:$0xff]  ;;  %v156_v30 = vadd.f32 %v172_v23, %v145_v28 }
  0xec   :  { %v158_v31 = vadd.f32 %v172_v23, %v147_v29  ;;  %161 = vst.msk [vmem:[%s287_s3 + $0x8] sm:$0xff] %vm18_vm1, %v157_v26 }
  0xed   :  { %163 = vst.msk [vmem:[%s287_s3 + $0x18] sm:$0xff] %vm18_vm1, %v159_v27  ;;  %160 = vst.msk [vmem:[%s287_s3] sm:$0xff] %vm18_vm1, %v156_v30 }
  0xee   :  { %162 = vst.msk [vmem:[%s287_s3 + $0x10] sm:$0xff] %vm18_vm1, %v158_v31 }

// kernel: decoder_forward.24
= control target key start
LH: loop header
LB: loop body
LE: loop exit
PB: predicated region body
PF: predicated region fallthrough
CT: control target
= control target key end

     0   :  { %s1262_s12 = smov 0   ;;  %s1372_s0 = inlined_call_operand.vmem [shape: f32[2,8,32], index: 0, kind: input, shape index: {}]   ;;  %s1373_s1 = inlined_call_operand.vmem [shape: f32[2,16,64], index: 1, kind: input, shape index: {}]   ;;  %s1374_s2 = inlined_call_operand.vmem [shape: f32[2,1,8,16], index: 2, kind: input, shape index: {}]   ;;  %s1375_s3 = inlined_call_operand.vmem [shape: f32[2,8,32], index: 3, kind: output, shape index: {}]  }
   0x1 LB: > { %s1012_s13 = sadd.s32 4294967295, %s1227_s12   ;;  %p1016_p0 = scmp.ge.s32.totalorder %s1227_s12, 1  ;;  %s1227_s12 = sphi %s1262_s12, %s13_s12  }
   0x2   : > { %p155_p1 = scmp.lt.s32.totalorder %s1227_s12, 3 }
   0x4   : > { %p156_p2 = pnand %p1016_p0, %p155_p1 }
   0x5   : > { %p186_p3 = scmp.lt.s32.totalorder (!%p156_p2), %s1012_s13, 1  ;;  %v1229_v0 = vmov (!%p156_p2), 0.0|0.0   ;;  %vm1230_vm0 = vmmov (!%p156_p2), 0   ;;  %v1231_v1 = vmov (!%p156_p2), 0.0   ;;  %vm208_vm1 = vcmask (!%p156_p2), 64512   ;;  %s1232_s25 = smov (!%p156_p2), 96  }
   0x6   : > { %159 = sbr.rel (%p156_p2) target bundleno = 2490 (0x9ba), region = 32  ;;  %1121 = vmatprep.subr.bf16.mxu0 (!%p156_p2), %v1229_v0  ;;  %1069 = vmatprep.mubr.msk.f32.mxu0 (!%p156_p2), %vm1230_vm0, %v1231_v1  ;;  %vm1283_vm2 = vmpackc.low (!%p156_p2), %vm208_vm1, %vm208_vm1  ;;  %vm288_vm3 = vcmask (!%p156_p2), 130048   ;;  %s1233_s26 = smov (!%p156_p2), 120   ;;  %vm563_vm4 = vcmask (!%p156_p2), 130112   ;;  %vm748_vm5 = vcmask (!%p156_p2), 195712   ;;  %vm933_vm6 = vcmask (!%p156_p2), 261312  }
   0x7   : > { %1125 = vmatprep.subr.bf16.mxu1 (!%p156_p2), %v1229_v0  ;;  %1076 = vmatprep.mubr.msk.f32.mxu1 (!%p156_p2), %vm1230_vm0, %v1231_v1  ;;  %s1234_s30 = smov (!%p156_p2), 88   ;;  %s1235_s4 = smov (!%p156_p2), 112  }
   0x8   : > { %s1236_s5 = smov (!%p156_p2), 80   ;;  %s1237_s6 = smov (!%p156_p2), 104  }
   0x9   : > { %s1238_s7 = smov (!%p156_p2), 72   ;;  %s1239_s8 = smov (!%p156_p2), 16  }
   0xa   : > { %s1240_s9 = smov (!%p156_p2), 8   ;;  %s1241_s10 = smov (!%p156_p2), 24  }
   0xd   : > { %s1379_s13 = smov (!%p186_p3, %s1012_s13), 1 }
   0xe   : > { %s1040_s14 = sshll.u32 %s1379_s13, 4  ;;  %s1276_s15 = sshll.u32 %s1379_s13, 3 }
   0xf   : > { %s194_s18 = scalar_lea.vmem %s1373_s1, %s1040_s14  ;;  %s189_s21 = scalar_lea.vmem %s1372_s0, %s1276_s15 }
  0x10   : > { %v205_v2 = vld [vmem:[%s194_s18] sm:$0xff]  ;;  %v206_v3 = vld [vmem:[%s194_s18 + $0x8] sm:$0xff]  ;;  %s198_s24 = scalar_lea.vmem %s1374_s2, %s1276_s15  ;;  %s1328_s29 = scalar_lea.vmem %s1375_s3, %s1276_s15 }
  0x11   : > { %v1122_v5 = vpack.c.bf16 %v206_v3, %v205_v2  ;;  %v204_v6 = vld [vmem:[%s189_s21] sm:$0xff]  ;;  %v1308_v13 = vpack.i.bf16 %v206_v3, %v205_v2 }
  0x12   : > { %v1294_v7 = vmul.f32 0.35355338, %v204_v6  ;;  %v1304_v8 = vld [vmem:[%s198_s24] sm:$0xff] }
  0x13   : > { %1124 = vmatpush3.bf16.xpose.msk.msra.mxu0 %vm1283_vm2, %v1122_v5  ;;  %1171 = vrot.lane.b32.xlu1 %v1308_v13, %s1232_s25 }
  0x14   : > { %1132 = vmatprep.subr.bf16.mxu0 %v1229_v0 }
  0x17   : > { %1176 = vrot.lane.b32.xlu1 %v1308_v13, %s1233_s26 }
  0x1a   : > { %1070 = vmatmul.mubr.msk.f32.vlgmr.msra.gmra.mrb[0].mxu0 %vm208_vm1, %v1294_v7 }
  0x1b   : > { %1090 = vmatprep.mubr.msk.f32.mxu0 %vm1230_vm0, %v1231_v1 }
  0x85   : > { %v1172_v19 = vpop.permute.xlu1 %1171 }
  0x86   : > { %v1174_v20 = vunpack.i.h.bf16 %v1172_v19  ;;  %v1173_v21 = vunpack.i.l.bf16 %v1172_v19 }
  0x88   : > { %v1126_v22 = vpack.c.bf16 %v1174_v20, %v1173_v21 }
  0x89   : > { %v1177_v24 = vpop.permute.xlu1 %1176 }
  0x8a   : > { %1127 = vmatpush3.bf16.msra.mxu1 %v1126_v22  ;;  %v1179_v25 = vunpack.i.h.bf16 %v1177_v24  ;;  %v1178_v26 = vunpack.i.l.bf16 %v1177_v24 }
  0x8b   : > { %1128 = vmatprep.subr.bf16.mxu1 %v1229_v0 }
  0x8c   : > { %v1129_v28 = vpack.c.bf16 %v1179_v25, %v1178_v26 }
  0xed   : > { %v284_v9 = vpop.f32.mrb[0].mxu0 }
  0xee   : > { %v285_v10 = vadd.f32 %v284_v9, %v1304_v8  ;;  %v1071_v11 = vpop.f32.mrb[1].mxu0 }
  0xf0   : > { %v289_v12 = vsel %vm288_vm3, %v285_v10, -inf }
  0xf1   : > { %290 = vmax.xlane.f32.xlu0 %v289_v12 }
 0x17e   : > { %v291_v14 = vpop.xlane.xlu0 %290 }
 0x17f   : > { %v292_v15 = vsub.f32 %v285_v10, %v291_v14 }
 0x181   : > { %v293_v16 = vmul.f32 1.442695, %v292_v15 }
 0x183   : > { %1205 = vpow2.f32 %v293_v16 }
 0x18d   : > { %v1206_v17 = vpop.eup %1205 }
 0x18e   : > { %v295_v18 = vsel %vm288_vm3, %v1206_v17, 0.0 }
 0x18f   : > { %296 = vadd.xlane.f32.xlu0 %v295_v18 }
 0x1a5   : > { %385 = vrot.lane.b32.xlu0 %v1294_v7, %s1233_s26 }
 0x21c   : > { %v297_v23 = vpop.xlane.xlu0 %296 }
 0x21d   : > { %1207 = vrcp.f32 %v297_v23 }
 0x220   : > { %v386_v30 = vpop.permute.xlu0 %385 }
 0x227   : > { %v1208_v27 = vpop.eup %1207 }
 0x228   : > { %v299_v29 = vmul.f32 %v1208_v27, %v1206_v17 }
 0x22a   : > { %1077 = vmatmul.mubr.msk.f32.vlgmr.msra.gmra.mrb[0].mxu1 %vm288_vm3, %v299_v29 }
 0x22b   : > { %1131 = vmatpush3.bf16.xpose.msk.msra.mxu1 %vm1283_vm2, %v1129_v28  ;;  %1083 = vmatprep.mubr.msk.f32.mxu1 %vm1230_vm0, %v1231_v1 }
 0x22c   : > { %1139 = vmatprep.subr.bf16.mxu1 %v1229_v0 }
 0x232   : > { %1084 = vmatmul.mubr.msk.f32.vlgmr.msra.gmra.mrb[2].mxu1 %vm208_vm1, %v386_v30 }
 0x233   : > { %1104 = vmatprep.mubr.msk.f32.mxu1 %vm1230_vm0, %v1231_v1 }
 0x2fd   : > { %v375_v31 = vpop.f32.mrb[0].mxu1 }
 0x2fe   : > { %379 = vst.msk [vmem:[%s1328_s29] sm:$0xff] %vm208_vm1, %v375_v31  ;;  %v1078_v32 = vpop.f32.mrb[1].mxu1 }
 0x305   : > { %v465_v33 = vpop.f32.mrb[2].mxu1 }
 0x306   : > { %v466_v34 = vadd.f32 %v465_v33, %v1304_v8  ;;  %v1085_v35 = vpop.f32.mrb[3].mxu1 }
 0x308   : > { %v469_v36 = vsel %vm288_vm3, %v466_v34, -inf }
 0x309   : > { %470 = vmax.xlane.f32.xlu1 %v469_v36 }
 0x31a   : > { %1181 = vrot.lane.b32.xlu1 %v1308_v13, %s1234_s30 }
 0x31e   : > { %570 = vrot.lane.b32.xlu1 %v1294_v7, %s1235_s4 }
 0x396   : > { %v471_v37 = vpop.xlane.xlu1 %470 }
 0x397   : > { %v472_v38 = vsub.f32 %v466_v34, %v471_v37 }
 0x399   : > { %v473_v39 = vmul.f32 1.442695, %v472_v38 }
 0x39a   : > { %v1182_v42 = vpop.permute.xlu1 %1181 }
 0x39b   : > { %1209 = vpow2.f32 %v473_v39  ;;  %v1184_v43 = vunpack.i.h.bf16 %v1182_v42  ;;  %v1183_v44 = vunpack.i.l.bf16 %v1182_v42 }
 0x39d   : > { %v1133_v45 = vpack.c.bf16 %v1184_v43, %v1183_v44 }
 0x39e   : > { %v571_v53 = vpop.permute.xlu1 %570 }
 0x39f   : > { %1134 = vmatpush3.bf16.msra.mxu0 %v1133_v45 }
 0x3a0   : > { %1135 = vmatprep.subr.bf16.mxu0 %v1229_v0 }
 0x3a5   : > { %v1210_v40 = vpop.eup %1209 }
 0x3a6   : > { %v475_v41 = vsel %vm288_vm3, %v1210_v40, 0.0 }
 0x3a7   : > { %476 = vadd.xlane.f32.xlu0 %v475_v41 }
 0x3bd   : > { %1186 = vrot.lane.b32.xlu0 %v1308_v13, %s1235_s4 }
 0x434   : > { %v477_v46 = vpop.xlane.xlu0 %476 }
 0x435   : > { %1211 = vrcp.f32 %v477_v46 }
 0x438   : > { %v1187_v47 = vpop.permute.xlu0 %1186 }
 0x439   : > { %v1189_v48 = vunpack.i.h.bf16 %v1187_v47  ;;  %v1188_v49 = vunpack.i.l.bf16 %v1187_v47 }
 0x43b   : > { %v1136_v51 = vpack.c.bf16 %v1189_v48, %v1188_v49 }
 0x43f   : > { %v1212_v50 = vpop.eup %1211 }
 0x440   : > { %v479_v52 = vmul.f32 %v1212_v50, %v1210_v40 }
 0x442   : > { %1091 = vmatmul.mubr.msk.f32.vlgmr.msra.gmra.mrb[2].mxu0 %vm288_vm3, %v479_v52 }
 0x443   : > { %1138 = vmatpush3.bf16.xpose.msk.msra.mxu0 %vm1283_vm2, %v1136_v51  ;;  %1097 = vmatprep.mubr.msk.f32.mxu0 %vm1230_vm0, %v1231_v1 }
 0x444   : > { %1146 = vmatprep.subr.bf16.mxu0 %v1229_v0 }
 0x44a   : > { %1098 = vmatmul.mubr.msk.f32.vlgmr.msra.gmra.mrb[4].mxu0 %vm208_vm1, %v571_v53 }
 0x44b   : > { %1118 = vmatprep.mubr.msk.f32.mxu0 %vm1230_vm0, %v1231_v1 }
 0x515   : > { %v555_v54 = vpop.f32.mrb[2].mxu0 }
 0x516   : > { %v1092_v55 = vpop.f32.mrb[3].mxu0 }
 0x51d   : > { %v650_v56 = vpop.f32.mrb[4].mxu0 }
 0x51e   : > { %v651_v57 = vadd.f32 %v650_v56, %v1304_v8  ;;  %v1099_v58 = vpop.f32.mrb[5].mxu0 }
 0x520   : > { %v654_v59 = vsel %vm288_vm3, %v651_v57, -inf }
 0x521   : > { %655 = vmax.xlane.f32.xlu1 %v654_v59 }
 0x532   : > { %1191 = vrot.lane.b32.xlu1 %v1308_v13, %s1236_s5 }
 0x536   : > { %755 = vrot.lane.b32.xlu1 %v1294_v7, %s1237_s6 }
 0x5ae   : > { %v656_v60 = vpop.xlane.xlu1 %655 }
 0x5af   : > { %v657_v61 = vsub.f32 %v651_v57, %v656_v60 }
 0x5b1   : > { %v658_v62 = vmul.f32 1.442695, %v657_v61 }
 0x5b2   : > { %v1192_v3 = vpop.permute.xlu1 %1191 }
 0x5b3   : > { %1213 = vpow2.f32 %v658_v62  ;;  %v1194_v5 = vunpack.i.h.bf16 %v1192_v3  ;;  %v1193_v6 = vunpack.i.l.bf16 %v1192_v3 }
 0x5b5   : > { %v1140_v9 = vpack.c.bf16 %v1194_v5, %v1193_v6 }
 0x5b6   : > { %v756_v17 = vpop.permute.xlu1 %755 }
 0x5b7   : > { %1141 = vmatpush3.bf16.msra.mxu1 %v1140_v9 }
 0x5b8   : > { %1142 = vmatprep.subr.bf16.mxu1 %v1229_v0 }
 0x5bd   : > { %v1214_v63 = vpop.eup %1213 }
 0x5be   : > { %v660_v2 = vsel %vm288_vm3, %v1214_v63, 0.0 }
 0x5bf   : > { %661 = vadd.xlane.f32.xlu0 %v660_v2 }
 0x5d5   : > { %1196 = vrot.lane.b32.xlu0 %v1308_v13, %s1237_s6 }
 0x64c   : > { %v662_v10 = vpop.xlane.xlu0 %661 }
 0x64d   : > { %1215 = vrcp.f32 %v662_v10 }
 0x650   : > { %v1197_v7 = vpop.permute.xlu0 %1196 }
 0x651   : > { %v1199_v11 = vunpack.i.h.bf16 %v1197_v7  ;;  %v1198_v12 = vunpack.i.l.bf16 %v1197_v7 }
 0x653   : > { %v1143_v15 = vpack.c.bf16 %v1199_v11, %v1198_v12 }
 0x657   : > { %v1216_v14 = vpop.eup %1215 }
 0x658   : > { %v664_v16 = vmul.f32 %v1216_v14, %v1214_v63 }
 0x65a   : > { %1105 = vmatmul.mubr.msk.f32.vlgmr.msra.gmra.mrb[4].mxu1 %vm288_vm3, %v664_v16 }
 0x65b   : > { %1145 = vmatpush3.bf16.xpose.msk.msra.mxu1 %vm1283_vm2, %v1143_v15  ;;  %1111 = vmatprep.mubr.msk.f32.mxu1 %vm1230_vm0, %v1231_v1 }
 0x662   : > { %1112 = vmatmul.mubr.msk.f32.vlgmr.msra.gmra.mrb[6].mxu1 %vm208_vm1, %v756_v17 }
 0x72d   : > { %v740_v0 = vpop.f32.mrb[4].mxu1 }
 0x72e   : > { %v1106_v18 = vpop.f32.mrb[5].mxu1 }
 0x735   : > { %v835_v19 = vpop.f32.mrb[6].mxu1 }
 0x736   : > { %v836_v20 = vadd.f32 %v835_v19, %v1304_v8  ;;  %v1113_v21 = vpop.f32.mrb[7].mxu1 }
 0x738   : > { %v839_v22 = vsel %vm288_vm3, %v836_v20, -inf }
 0x739   : > { %840 = vmax.xlane.f32.xlu1 %v839_v22 }
 0x74a   : > { %1201 = vrot.lane.b32.xlu1 %v1308_v13, %s1238_s7 }
 0x74e   : > { %745 = vrot.lane.b32.xlu1 %v740_v0, %s1239_s8 }
 0x7c6   : > { %v841_v4 = vpop.xlane.xlu1 %840 }
 0x7c7   : > { %v842_v23 = vsub.f32 %v836_v20, %v841_v4 }
 0x7c9   : > { %v843_v1 = vmul.f32 1.442695, %v842_v23 }
 0x7ca   : > { %v1202_v24 = vpop.permute.xlu1 %1201 }
 0x7cb   : > { %1217 = vpow2.f32 %v843_v1  ;;  %v1204_v25 = vunpack.i.h.bf16 %v1202_v24  ;;  %v1203_v26 = vunpack.i.l.bf16 %v1202_v24 }
 0x7cd   : > { %v1147_v27 = vpack.c.bf16 %v1204_v25, %v1203_v26 }
 0x7ce   : > { %v746_v30 = vpop.permute.xlu1 %745 }
 0x7cf   : > { %1148 = vmatpush3.bf16.msra.mxu0 %v1147_v27 }
 0x7d5   : > { %v1218_v8 = vpop.eup %1217 }
 0x7d6   : > { %v845_v28 = vsel %vm288_vm3, %v1218_v8, 0.0 }
 0x7d7   : > { %846 = vadd.xlane.f32.xlu0 %v845_v28 }
 0x7ed   : > { %560 = vrot.lane.b32.xlu0 %v555_v54, %s1240_s9 }
 0x864   : > { %v847_v13 = vpop.xlane.xlu0 %846 }
 0x865   : > { %1219 = vrcp.f32 %v847_v13 }
 0x868   : > { %v561_v29 = vpop.permute.xlu0 %560 }
 0x869   : > { %564 = vst.msk [vmem:[%s1328_s29] sm:$0xff] %vm563_vm4, %v561_v29 }
 0x86a   : > { %749 = vst.msk [vmem:[%s1328_s29] sm:$0xff] %vm748_vm5, %v746_v30 }
 0x86f   : > { %v1220_v31 = vpop.eup %1219 }
 0x870   : > { %v849_v32 = vmul.f32 %v1220_v31, %v1218_v8 }
 0x872   : > { %1119 = vmatmul.mubr.msk.f32.vlgmr.msra.gmra.mrb[6].mxu0 %vm288_vm3, %v849_v32 }
 0x945   : > { %v925_v33 = vpop.f32.mrb[6].mxu0 }
 0x946   : > { %930 = vrot.lane.b32.xlu1 %v925_v33, %s1241_s10  ;;  %v1120_v34 = vpop.f32.mrb[7].mxu0 }
 0x9b8   : > { %v931_v35 = vpop.permute.xlu1 %930 }
 0x9b9   : > { %934 = vst.msk [vmem:[%s1328_s29] sm:$0xff] %vm933_vm6, %v931_v35 }
 0x9ba PF: > { %s13_s12 = sadd.s32 1, %s1227_s12  }
 0x9bb   : > { %p10_p4 = scmp.ge.s32.totalorder %s13_s12, 4  }
 0x9bd   :  { %12 = sbr.rel (!%p10_p4) target bundleno = 1 (0x1), region = 68 }

// kernel: decoder_forward.26
= control target key start
LH: loop header
LB: loop body
LE: loop exit
PB: predicated region body
PF: predicated region fallthrough
CT: control target
= control target key end

     0   :  { %vm39_vm0 = vcmask 261120   ;;  %vm138_vm1 = vcmask 523264   ;;  %s463_s1 = inlined_call_operand.vmem [shape: f32[32,64], index: 1, kind: input, shape index: {}]   ;;  %s464_s0 = inlined_call_operand.vmem [shape: f32[16,32], index: 0, kind: input, shape index: {}]   ;;  %s465_s3 = inlined_call_operand.vmem [shape: f32[64,32], index: 3, kind: input, shape index: {}]   ;;  %s466_s2 = inlined_call_operand.vmem [shape: f32[1,64], index: 2, kind: input, shape index: {}]   ;;  %s467_s4 = inlined_call_operand.vmem [shape: f32[1,32], index: 4, kind: input, shape index: {}]   ;;  %s468_s5 = inlined_call_operand.vmem [shape: f32[1,32], index: 5, kind: input, shape index: {}]   ;;  %s469_s6 = inlined_call_operand.vmem [shape: f32[1,32], index: 6, kind: input, shape index: {}]   ;;  %s470_s7 = inlined_call_operand.vmem [shape: f32[16,32], index: 7, kind: output, shape index: {}]  }
   0x1   :  { %v28_v0 = vld [vmem:[%s463_s1] sm:$0xff]  ;;  %v29_v1 = vld [vmem:[%s463_s1 + $0x8] sm:$0xff]  ;;  %v30_v2 = vld [vmem:[%s463_s1 + $0x10] sm:$0xff] }
   0x2   :  { %v327_v3 = vpack.c.bf16 %v29_v1, %v28_v0  ;;  %v31_v4 = vld [vmem:[%s463_s1 + $0x18] sm:$0xff]  ;;  %v26_v5 = vld [vmem:[%s464_s0] sm:$0xff]  ;;  %v124_v8 = vld [vmem:[%s465_s3 + $0x8] sm:$0xff] }
   0x3   :  { %v331_v6 = vpack.c.bf16 %v31_v4, %v30_v2  ;;  %305 = vmatprep.mubr.msk.f32.mxu0 %vm39_vm0, %v26_v5  ;;  %v123_v7 = vld [vmem:[%s465_s3] sm:$0xff]  ;;  %v125_v9 = vld [vmem:[%s465_s3 + $0x10] sm:$0xff]  ;;  %v126_v11 = vld [vmem:[%s465_s3 + $0x18] sm:$0xff] }
   0x4   :  { %328 = vmatprep.subr.bf16.mxu0 %v327_v3  ;;  %v335_v10 = vpack.c.bf16 %v124_v8, %v123_v7  ;;  %v339_v12 = vpack.c.bf16 %v126_v11, %v125_v9  ;;  %v127_v13 = vld [vmem:[%s465_s3 + $0x20] sm:$0xff]  ;;  %v128_v14 = vld [vmem:[%s465_s3 + $0x28] sm:$0xff]  ;;  %v129_v17 = vld [vmem:[%s465_s3 + $0x30] sm:$0xff] }
   0x5   :  { %330 = vmatpush3.bf16.msra.mxu0 %v327_v3  ;;  %v343_v15 = vpack.c.bf16 %v128_v14, %v127_v13  ;;  %v27_v16 = vld [vmem:[%s464_s0 + $0x8] sm:$0xff]  ;;  %v130_v18 = vld [vmem:[%s465_s3 + $0x38] sm:$0xff]  ;;  %v273_v20 = vld [vmem:[%s466_s2] ss:$0 sm:$0xff] }
   0x6   :  { %332 = vmatprep.subr.bf16.mxu0 %v331_v6  ;;  %336 = vmatprep.subr.bf16.mxu1 %v335_v10  ;;  %v347_v19 = vpack.c.bf16 %v130_v18, %v129_v17  ;;  %v276_v27 = vld [vmem:[%s467_s4] ss:$0 sm:$0xff] }
   0x7   :  { %338 = vmatpush3.bf16.msra.mxu1 %v335_v10  ;;  %v279_v53 = vld [vmem:[%s468_s5] ss:$0 sm:$0xff] }
   0x8   :  { %340 = vmatprep.subr.bf16.mxu1 %v339_v12  ;;  %v280_v55 = vld [vmem:[%s469_s6] ss:$0 sm:$0xff] }
   0x9   :  { %334 = vmatpush3.bf16.msra.mxu0 %v331_v6 }
   0xb   :  { %342 = vmatpush3.bf16.msra.mxu1 %v339_v12 }
   0xc   :  { %306 = vmatmul.mubr.msk.f32.vlgmr.msra.gmra.mrb[0].mxu0 %vm39_vm0, %v27_v16  ;;  %344 = vmatprep.subr.bf16.mxu1 %v343_v15 }
   0xf   :  { %346 = vmatpush3.bf16.msra.mxu1 %v343_v15 }
  0x10   :  { %348 = vmatprep.subr.bf16.mxu1 %v347_v19 }
  0x13   :  { %350 = vmatpush3.bf16.msra.mxu1 %v347_v19 }
  0xdf   :  { %v307_v21 = vpop.f32.mrb[0].mxu0 }
  0xe0   :  { %v118_v22 = vadd.f32 %v307_v21, %v273_v20  ;;  %v112_v23 = vpop.f32.mrb[1].mxu0 }
  0xe1   :  { %v113_v24 = vadd.f32 %v273_v20, %v112_v23 }
  0xe2   :  { %v122_v26 = vmax.f32 %v118_v22, 0.0 }
  0xe3   :  { %v121_v25 = vmax.f32 %v113_v24, 0.0 }
  0xe5   :  { %324 = vmatprep.mubr.msk.f32.mxu1 %vm138_vm1, %v121_v25 }
  0xe6   :  { %325 = vmatmul.mubr.msk.f32.vlgmr.msra.gmra.mrb[0].mxu1 %vm138_vm1, %v122_v26 }
 0x1b9   :  { %v326_v28 = vpop.f32.mrb[0].mxu1 }
 0x1ba   :  { %v211_v29 = vpop.f32.mrb[1].mxu1  ;;  %v217_v30 = vadd.f32 %v326_v28, %v276_v27 }
 0x1bb   :  { %v212_v31 = vadd.f32 %v276_v27, %v211_v29 }
 0x1bc   :  { %v221_v34 = vadd.f32 %v217_v30, %v27_v16 }
 0x1bd   :  { %v220_v32 = vadd.f32 %v212_v31, %v26_v5 }
 0x1be   :  { %v227_v35 = vsel %vm39_vm0, %v221_v34, 0.0 }
 0x1bf   :  { %v224_v33 = vsel %vm39_vm0, %v220_v32, 0.0 }
 0x1c0   :  { %225 = vadd.xlane.f32.xlu0 %v224_v33 }
 0x1c4   :  { %228 = vadd.xlane.f32.xlu0 %v227_v35 }
 0x24d   :  { %v226_v36 = vpop.xlane.xlu0 %225 }
 0x24e   :  { %v231_v37 = vmul.f32 0.03125, %v226_v36 }
 0x250   :  { %v233_v38 = vsub.f32 %v220_v32, %v231_v37 }
 0x251   :  { %v229_v39 = vpop.xlane.xlu0 %228 }
 0x252   :  { %v232_v40 = vmul.f32 0.03125, %v229_v39  ;;  %v235_v41 = vmul.f32 %v233_v38, %v233_v38 }
 0x254   :  { %v234_v42 = vsub.f32 %v221_v34, %v232_v40  ;;  %v237_v43 = vsel %vm39_vm0, %v235_v41, 0.0 }
 0x255   :  { %238 = vadd.xlane.f32.xlu1 %v237_v43 }
 0x256   :  { %v236_v44 = vmul.f32 %v234_v42, %v234_v42 }
 0x258   :  { %v240_v45 = vsel %vm39_vm0, %v236_v44, 0.0 }
 0x259   :  { %241 = vadd.xlane.f32.xlu1 %v240_v45 }
 0x2e2   :  { %v239_v46 = vpop.xlane.xlu1 %238 }
 0x2e3   :  { %v243_v47 = vmul.f32 0.03125, %v239_v46 }
 0x2e5   :  { %v245_v48 = vadd.f32 1e-05, %v243_v47 }
 0x2e6   :  { %v242_v49 = vpop.xlane.xlu1 %241 }
 0x2e7   :  { %351 = vrsqrt.f32 %v245_v48  ;;  %v244_v50 = vmul.f32 0.03125, %v242_v49 }
 0x2e9   :  { %v246_v51 = vadd.f32 1e-05, %v244_v50 }
 0x2eb   :  { %353 = vrsqrt.f32 %v246_v51 }
 0x2f1   :  { %v352_v52 = vpop.eup %351 }
 0x2f2   :  { %v249_v54 = vmul.f32 %v352_v52, %v233_v38 }
 0x2f4   :  { %v257_v56 = vmul.f32 %v279_v53, %v249_v54 }
 0x2f5   :  { %v354_v57 = vpop.eup %353 }
 0x2f6   :  { %v265_v58 = vadd.f32 %v280_v55, %v257_v56  ;;  %v250_v59 = vmul.f32 %v354_v57, %v234_v42 }
 0x2f8   :  { %267 = vst.msk [vmem:[%s470_s7] sm:$0xff] %vm39_vm0, %v265_v58  ;;  %v258_v60 = vmul.f32 %v279_v53, %v250_v59 }
 0x2fa   :  { %v266_v61 = vadd.f32 %v280_v55, %v258_v60 }
 0x2fc   :  { %268 = vst.msk [vmem:[%s470_s7 + $0x8] sm:$0xff] %vm39_vm0, %v266_v61 }

// kernel: decoder_forward.35
= control target key start
LH: loop header
LB: loop body
LE: loop exit
PB: predicated region body
PF: predicated region fallthrough
CT: control target
= control target key end

     0   :  { %vm30_vm0 = vcmask 261120   ;;  %vm19_vm1 = vcmask 97280   ;;  %v205_v6 = vmov 0.0   ;;  %s270_s0 = inlined_call_operand.vmem [shape: f32[16,32], index: 0, kind: input, shape index: {}]   ;;  %s271_s1 = inlined_call_operand.vmem [shape: f32[32,12], index: 1, kind: input, shape index: {}]   ;;  %s272_s2 = inlined_call_operand.vmem [shape: f32[1,12], index: 2, kind: input, shape index: {}]   ;;  %s273_s3 = inlined_call_operand.hbm [shape: f32[16,12], index: 3, kind: output, shape index: {}]  }
   0x1   :  { %v26_v0 = vld [vmem:[%s271_s1] sm:$0xff]  ;;  %v27_v1 = vld [vmem:[%s271_s1 + $0x8] sm:$0xff]  ;;  %v28_v2 = vld [vmem:[%s271_s1 + $0x10] sm:$0xff]  ;;  %21 = vst.msk [vmem:[#allocation2 + $0x8] sm:$0xff] %vm19_vm1, %v205_v6 }
   0x2   :  { %v169_v3 = vpack.c.bf16 %v27_v1, %v26_v0  ;;  %v29_v4 = vld [vmem:[%s271_s1 + $0x18] sm:$0xff]  ;;  %v24_v5 = vld [vmem:[%s270_s0] sm:$0xff]  ;;  %20 = vst.msk [vmem:[#allocation2] sm:$0xff] %vm19_vm1, %v205_v6 }
   0x3   :  { %v173_v7 = vpack.c.bf16 %v29_v4, %v28_v2  ;;  %166 = vmatprep.mubr.msk.f32.mxu0 %vm30_vm0, %v24_v5 }
   0x4   :  { %8 = vsyncpa [#allocation4], 0  ;;  %170 = vmatprep.subr.bf16.mxu0 %v169_v3  ;;  %v25_v8 = vld [vmem:[%s270_s0 + $0x8] sm:$0xff]  ;;  %v151_v15 = vld [vmem:[%s272_s2] ss:$0 sm:$0xff]  ;;  %s206_s25 = smov [#allocation3]  }
   0x5   :  { %172 = vmatpush3.bf16.msra.mxu0 %v169_v3  ;;  %s138_s26 = sshll.u32 %s206_s25, 4  ;;  %s139_s26 = int_to_ptr.vmem [resolvable:$true] %s138_s26 }
   0x6   :  { %174 = vmatprep.subr.bf16.mxu0 %v173_v7  ;;  %s181_s0 = scalar_lea.vmem %s139_s26, 256  ;;  %p186_p1 = scmp.lt.s32.totalorder %s139_s26, %s139_s26 }
   0x7   :  { %p182_p0 = scmp.ne.s32.totalorder %s139_s26, %s181_s0  ;;  %p187_p2 = scmp.lt.s32.totalorder %s181_s0, %s181_s0 }
   0x8   :  { %v23_v9 = vld [vmem:[#allocation2 + $0x8] sm:$0xff] }
   0x9   :  { %176 = vmatpush3.bf16.msra.mxu0 %v173_v7  ;;  %v22_v10 = vld [vmem:[#allocation2] sm:$0xff]  ;;  %p188_p3 = por %p187_p2, %p186_p1 }
   0xb   :  { %p189_p4 = pnand %p188_p3, %p182_p0 }
   0xc   :  { %167 = vmatmul.mubr.msk.f32.vlgmr.msra.gmra.mrb[0].mxu0 %vm30_vm0, %v25_v8 }
  0xdf   :  { %v168_v11 = vpop.f32.mrb[0].mxu0 }
  0xe0   :  { %v113_v12 = vadd.f32 %v168_v11, %v23_v9  ;;  %v103_v13 = vpop.f32.mrb[1].mxu0 }
  0xe1   :  { %v112_v14 = vadd.f32 %v103_v13, %v22_v10 }
  0xe2   :  { %116 = vst.msk [vmem:[#allocation2 + $0x8] sm:$0xff] %vm19_vm1, %v113_v12 }
  0xe3   :  { %115 = vst.msk [vmem:[#allocation2] sm:$0xff] %vm19_vm1, %v112_v14 }
  0xe9   :  { %v121_v16 = vld [vmem:[#allocation2 + $0x8] sm:$0xff] }
  0xea   :  { %v120_v17 = vld [vmem:[#allocation2] sm:$0xff]  ;;  %v130_v18 = vadd.f32 %v151_v15, %v121_v16 }
  0xeb   :  { %v129_v19 = vadd.f32 %v151_v15, %v120_v17 }
  0xec   :  { %132 = vst.msk [vmem:[#allocation3 + $0x8] sm:$0xff] %vm19_vm1, %v130_v18 }
  0xed   :  { %131 = vst.msk [vmem:[#allocation3] sm:$0xff] %vm19_vm1, %v129_v19 }
  0xee   :  { %192 = shalt.err (!%p189_p4)
}
  0xef   :  { %s193_s28 = scalar_lea.hbm %s273_s3, 256 }
  0xf0   :  { %p194_p5 = scmp.ne.s32.totalorder %s273_s3, %s193_s28  ;;  %p197_p6 = scmp.lt.u32.totalorder %s193_s28, %s273_s3 }
  0xf2   :  { %p199_p7 = pnand %p197_p6, %p194_p5 }
  0xf4   :  { %202 = shalt.err (!%p199_p7)
}
  0xf5   :  { %s207_s6 = smov 128   ;;  %s208_s7 = smov 8  }
  0xf6   :  { %144 = dma.vmem_to_hbm [thread:$0]  %s139_s26, 256, %s273_s3, [#allocation4], %s207_s6, %s207_s6, %s208_s7  }
  0xf7   :  { %203 = dma.done.wait [#allocation4], 256  }
  0xf8   :  { %204 = vsyncadd [#allocation4], 4294967040 }
  0xf9   :  { %148 = vsyncpa [#allocation4], 1 }

// kernel: decoder_forward.32
= control target key start
LH: loop header
LB: loop body
LE: loop exit
PB: predicated region body
PF: predicated region fallthrough
CT: control target
= control target key end

     0   :  { %10 = vsyncpa [#allocation3], 0  ;;  %s1679_s0 = inlined_call_operand.vmem [shape: f32[2,8,32], index: 0, kind: input, shape index: {}]   ;;  %s1680_s1 = inlined_call_operand.vmem [shape: f32[2,16,64], index: 1, kind: input, shape index: {}]   ;;  %s1681_s2 = inlined_call_operand.vmem [shape: f32[2,1,8,16], index: 2, kind: input, shape index: {}]   ;;  %s1682_s3 = inlined_call_operand.vmem [shape: f32[2,8,32], index: 3, kind: output, shape index: {0}]   ;;  %s1683_s4 = inlined_call_operand.hbm [shape: f32[2,4,8,16], index: 4, kind: output, shape index: {1}]  }
   0x1   :  { %12 = vsyncpa [#allocation3 + $0x1], 0  ;;  %s1463_s15 = smov 0   ;;  %s1465_s16 = smov 0  }
   0x2   :  { %s1467_s17 = smov 0   ;;  %s1469_s18 = smov 0  }
   0x3 LB: > { %s1484_s19 = sadd.s32 4294967295, %s1421_s18   ;;  %s1111_s20 = sadd.s32 4294967294, %s1421_s18   ;;  %s1421_s18 = sphi %s1469_s18, %s1691_s18   ;;  %s1417_s17 = sphi %s1467_s17, %s1690_s17   ;;  %s1413_s16 = sphi %s1465_s16, %s1689_s16   ;;  %s1409_s15 = sphi %s1463_s15, %s1688_s15  }
   0x4   : > { %s1488_s21 = sadd.s32 1, %s1421_s18   ;;  %s129_s22 = sadd.s32 1, %s1417_s17 }
   0x5   : > { %s126_s23 = ssub.s32 %s1421_s18, %s1488_s21  ;;  %p139_p0 = scmp.ne.s32.totalorder %s1417_s17, %s1413_s16 }
   0x6   : > { %p127_p1 = scmp.eq.s32.totalorder %s126_s23, 0  ;;  %p140_p2 = scmp.eq.s32.totalorder %s1484_s19, 1 }
   0x7   : > { %p145_p3 = scmp.ne.s32.totalorder %s1413_s16, %s1409_s15  ;;  %p146_p4 = scmp.eq.s32.totalorder %s1111_s20, 1 }
   0x8   : > { %s1499_s24 = scalar_select %p127_p1, %s1417_s17, %s129_s22  }
   0x9   : > { %p1501_p5 = por %p140_p2, %p139_p0  ;;  %p1505_p6 = por %p146_p4, %p145_p3 }
   0xa   : > { %p1114_p7 = scmp.ge.s32.totalorder %s1421_s18, 1  ;;  %p186_p8 = scmp.lt.s32.totalorder %s1421_s18, 3 }
   0xc   : > { %p187_p9 = pnand %p1114_p7, %p186_p8 }
   0xd   : > { %p224_p10 = scmp.lt.s32.totalorder (!%p187_p9), %s1484_s19, 1  ;;  %v1423_v0 = vmov (!%p187_p9), 0.0|0.0   ;;  %vm1424_vm0 = vmmov (!%p187_p9), 0   ;;  %v1425_v1 = vmov (!%p187_p9), 0.0   ;;  %vm246_vm1 = vcmask (!%p187_p9), 64512   ;;  %s1426_s13 = smov (!%p187_p9), 96  }
   0xe   : > { %190 = sbr.rel (%p187_p9) target bundleno = 2499 (0x9c3), region = 32  ;;  %1227 = vmatprep.subr.bf16.mxu0 (!%p187_p9), %v1423_v0  ;;  %1175 = vmatprep.mubr.msk.f32.mxu0 (!%p187_p9), %vm1424_vm0, %v1425_v1  ;;  %vm1526_vm2 = vmpackc.low (!%p187_p9), %vm246_vm1, %vm246_vm1  ;;  %vm326_vm3 = vcmask (!%p187_p9), 130048   ;;  %s1427_s14 = smov (!%p187_p9), 120   ;;  %vm602_vm4 = vcmask (!%p187_p9), 130112   ;;  %vm789_vm5 = vcmask (!%p187_p9), 195712  }
   0xf   : > { %1231 = vmatprep.subr.bf16.mxu1 (!%p187_p9), %v1423_v0  ;;  %1182 = vmatprep.mubr.msk.f32.mxu1 (!%p187_p9), %vm1424_vm0, %v1425_v1  ;;  %s221_s20 = sand.u32 (!%p187_p9), 1, %s1413_s16   ;;  %s1428_s5 = smov (!%p187_p9), 88  }
  0x10   : > { %s1115_s22 = sshll.u32 (!%p187_p9), %s221_s20, 5  ;;  %s1431_s7 = smov (!%p187_p9), 104  }
  0x11   : > { %s1562_s23 = scalar_lea.vmem (!%p187_p9), [#allocation2], %s1115_s22  ;;  %s1432_s8 = smov (!%p187_p9), 72  }
  0x12   : > { %s1434_s10 = smov (!%p187_p9), 8   ;;  %s1146_s11 = sshll.u32 (!%p187_p9), %s1484_s19, 9 }
  0x13   : > { %s1630_s22 = scalar_lea.hbm (!%p187_p9), %s1683_s4, %s1146_s11 }
  0x15   : > { %s225_s27 = scalar_select %p224_p10, %s1484_s19, 1 }
  0x16   : > { %s1435_s19 = smov [#allocation2]  }
  0x17   : > { %s1145_s28 = sshll.u32 %s225_s27, 4  ;;  %s1519_s29 = sshll.u32 %s225_s27, 3 }
  0x18   : > { %s232_s6 = scalar_lea.vmem %s1680_s1, %s1145_s28  ;;  %s227_s9 = scalar_lea.vmem %s1679_s0, %s1519_s29 }
  0x19   : > { %v243_v2 = vld [vmem:[%s232_s6] sm:$0xff]  ;;  %v244_v3 = vld [vmem:[%s232_s6 + $0x8] sm:$0xff]  ;;  %s236_s12 = scalar_lea.vmem %s1681_s2, %s1519_s29  ;;  %s1578_s30 = scalar_lea.vmem %s1682_s3, %s1519_s29 }
  0x1a   : > { %v1228_v5 = vpack.c.bf16 %v244_v3, %v243_v2  ;;  %v242_v6 = vld [vmem:[%s227_s9] sm:$0xff]  ;;  %v1551_v13 = vpack.i.bf16 %v244_v3, %v243_v2  ;;  %s1429_s6 = smov 112   ;;  %s1430_s29 = smov 80  }
  0x1b   : > { %v1537_v7 = vmul.f32 0.35355338, %v242_v6  ;;  %v1547_v8 = vld [vmem:[%s236_s12] sm:$0xff]  ;;  %s1433_s9 = smov 16   ;;  %s1001_s12 = sshll.u32 %s1562_s23, 4  ;;  %s1632_s12 = int_to_ptr.vmem [resolvable:$true] %s1001_s12 }
  0x1c   : > { %1230 = vmatpush3.bf16.xpose.msk.msra.mxu0 %vm1526_vm2, %v1228_v5  ;;  %1309 = vrot.lane.b32.xlu1 %v1551_v13, %s1426_s13  ;;  %s1636_s27 = scalar_lea.sflag [#allocation3], %s221_s20  ;;  %s1359_s28 = scalar_lea.vmem %s1632_s12, 512 }
  0x1d   : > { %1238 = vmatprep.subr.bf16.mxu0 %v1423_v0  ;;  %p1360_p11 = scmp.ne.s32.totalorder %s1632_s12, %s1359_s28 }
  0x1f   : > { %p1361_p12 = pnand %p1360_p11, %p1501_p5 }
  0x20   : > { %1314 = vrot.lane.b32.xlu1 %v1551_v13, %s1427_s14 }
  0x21   : > { %p1362_p13 = pneg %p1361_p12 }
  0x23   : > { %1176 = vmatmul.mubr.msk.f32.vlgmr.msra.gmra.mrb[0].mxu0 %vm246_vm1, %v1537_v7 }
  0x24   : > { %1196 = vmatprep.mubr.msk.f32.mxu0 %vm1424_vm0, %v1425_v1 }
  0x8e   : > { %v1310_v19 = vpop.permute.xlu1 %1309 }
  0x8f   : > { %v1312_v20 = vunpack.i.h.bf16 %v1310_v19  ;;  %v1311_v21 = vunpack.i.l.bf16 %v1310_v19 }
  0x91   : > { %v1232_v22 = vpack.c.bf16 %v1312_v20, %v1311_v21 }
  0x92   : > { %v1315_v24 = vpop.permute.xlu1 %1314 }
  0x93   : > { %1233 = vmatpush3.bf16.msra.mxu1 %v1232_v22  ;;  %v1317_v25 = vunpack.i.h.bf16 %v1315_v24  ;;  %v1316_v26 = vunpack.i.l.bf16 %v1315_v24 }
  0x94   : > { %1234 = vmatprep.subr.bf16.mxu1 %v1423_v0 }
  0x95   : > { %v1235_v28 = vpack.c.bf16 %v1317_v25, %v1316_v26 }
  0xf6   : > { %v322_v9 = vpop.f32.mrb[0].mxu0 }
  0xf7   : > { %v323_v10 = vadd.f32 %v322_v9, %v1547_v8  ;;  %v1177_v11 = vpop.f32.mrb[1].mxu0 }
  0xf9   : > { %v327_v12 = vsel %vm326_vm3, %v323_v10, -inf }
  0xfa   : > { %328 = vmax.xlane.f32.xlu0 %v327_v12 }
 0x187   : > { %v329_v14 = vpop.xlane.xlu0 %328 }
 0x188   : > { %v330_v15 = vsub.f32 %v323_v10, %v329_v14 }
 0x18a   : > { %v331_v16 = vmul.f32 1.442695, %v330_v15 }
 0x18c   : > { %1343 = vpow2.f32 %v331_v16 }
 0x196   : > { %v1344_v17 = vpop.eup %1343 }
 0x197   : > { %v333_v18 = vsel %vm326_vm3, %v1344_v17, 0.0 }
 0x198   : > { %334 = vadd.xlane.f32.xlu0 %v333_v18 }
 0x1ae   : > { %424 = vrot.lane.b32.xlu0 %v1537_v7, %s1427_s14 }
 0x225   : > { %v335_v23 = vpop.xlane.xlu0 %334 }
 0x226   : > { %1345 = vrcp.f32 %v335_v23 }
 0x229   : > { %v425_v30 = vpop.permute.xlu0 %424 }
 0x230   : > { %v1346_v27 = vpop.eup %1345 }
 0x231   : > { %v337_v29 = vmul.f32 %v1346_v27, %v1344_v17 }
 0x233   : > { %1183 = vmatmul.mubr.msk.f32.vlgmr.msra.gmra.mrb[0].mxu1 %vm326_vm3, %v337_v29  ;;  %418 = vst.msk [vmem:[%s1562_s23] sm:$0xff] %vm326_vm3, %v337_v29 }
 0x234   : > { %1237 = vmatpush3.bf16.xpose.msk.msra.mxu1 %vm1526_vm2, %v1235_v28  ;;  %1189 = vmatprep.mubr.msk.f32.mxu1 %vm1424_vm0, %v1425_v1 }
 0x235   : > { %1245 = vmatprep.subr.bf16.mxu1 %v1423_v0 }
 0x23b   : > { %1190 = vmatmul.mubr.msk.f32.vlgmr.msra.gmra.mrb[2].mxu1 %vm246_vm1, %v425_v30 }
 0x23c   : > { %1210 = vmatprep.mubr.msk.f32.mxu1 %vm1424_vm0, %v1425_v1 }
 0x306   : > { %v413_v31 = vpop.f32.mrb[0].mxu1 }
 0x307   : > { %417 = vst.msk [vmem:[%s1578_s30] sm:$0xff] %vm246_vm1, %v413_v31  ;;  %v1184_v32 = vpop.f32.mrb[1].mxu1 }
 0x30e   : > { %v504_v33 = vpop.f32.mrb[2].mxu1 }
 0x30f   : > { %v505_v34 = vadd.f32 %v504_v33, %v1547_v8  ;;  %v1191_v35 = vpop.f32.mrb[3].mxu1 }
 0x311   : > { %v508_v36 = vsel %vm326_vm3, %v505_v34, -inf }
 0x312   : > { %509 = vmax.xlane.f32.xlu1 %v508_v36 }
 0x323   : > { %1319 = vrot.lane.b32.xlu1 %v1551_v13, %s1428_s5 }
 0x327   : > { %611 = vrot.lane.b32.xlu1 %v1537_v7, %s1429_s6 }
 0x39f   : > { %v510_v37 = vpop.xlane.xlu1 %509 }
 0x3a0   : > { %v511_v38 = vsub.f32 %v505_v34, %v510_v37 }
 0x3a2   : > { %v512_v39 = vmul.f32 1.442695, %v511_v38 }
 0x3a3   : > { %v1320_v42 = vpop.permute.xlu1 %1319 }
 0x3a4   : > { %1347 = vpow2.f32 %v512_v39  ;;  %v1322_v43 = vunpack.i.h.bf16 %v1320_v42  ;;  %v1321_v44 = vunpack.i.l.bf16 %v1320_v42 }
 0x3a6   : > { %v1239_v45 = vpack.c.bf16 %v1322_v43, %v1321_v44 }
 0x3a7   : > { %v612_v53 = vpop.permute.xlu1 %611 }
 0x3a8   : > { %1240 = vmatpush3.bf16.msra.mxu0 %v1239_v45 }
 0x3a9   : > { %1241 = vmatprep.subr.bf16.mxu0 %v1423_v0 }
 0x3ae   : > { %v1348_v40 = vpop.eup %1347 }
 0x3af   : > { %v514_v41 = vsel %vm326_vm3, %v1348_v40, 0.0 }
 0x3b0   : > { %515 = vadd.xlane.f32.xlu0 %v514_v41 }
 0x3c6   : > { %1324 = vrot.lane.b32.xlu0 %v1551_v13, %s1429_s6 }
 0x43d   : > { %v516_v46 = vpop.xlane.xlu0 %515 }
 0x43e   : > { %1349 = vrcp.f32 %v516_v46 }
 0x441   : > { %v1325_v47 = vpop.permute.xlu0 %1324 }
 0x442   : > { %v1327_v48 = vunpack.i.h.bf16 %v1325_v47  ;;  %v1326_v49 = vunpack.i.l.bf16 %v1325_v47 }
 0x444   : > { %v1242_v51 = vpack.c.bf16 %v1327_v48, %v1326_v49 }
 0x448   : > { %v1350_v50 = vpop.eup %1349 }
 0x449   : > { %v518_v52 = vmul.f32 %v1350_v50, %v1348_v40 }
 0x44b   : > { %1129 = vst.msk [vmem:[%s1562_s23 + $0x8] sm:$0xff] %vm326_vm3, %v518_v52  ;;  %1197 = vmatmul.mubr.msk.f32.vlgmr.msra.gmra.mrb[2].mxu0 %vm326_vm3, %v518_v52 }
 0x44c   : > { %1244 = vmatpush3.bf16.xpose.msk.msra.mxu0 %vm1526_vm2, %v1242_v51  ;;  %1203 = vmatprep.mubr.msk.f32.mxu0 %vm1424_vm0, %v1425_v1 }
 0x44d   : > { %1252 = vmatprep.subr.bf16.mxu0 %v1423_v0 }
 0x453   : > { %1204 = vmatmul.mubr.msk.f32.vlgmr.msra.gmra.mrb[4].mxu0 %vm246_vm1, %v612_v53 }
 0x454   : > { %1224 = vmatprep.mubr.msk.f32.mxu0 %vm1424_vm0, %v1425_v1 }
 0x51e   : > { %v594_v54 = vpop.f32.mrb[2].mxu0 }
 0x51f   : > { %v1198_v55 = vpop.f32.mrb[3].mxu0 }
 0x526   : > { %v691_v56 = vpop.f32.mrb[4].mxu0 }
 0x527   : > { %v692_v57 = vadd.f32 %v691_v56, %v1547_v8  ;;  %v1205_v58 = vpop.f32.mrb[5].mxu0 }
 0x529   : > { %v695_v59 = vsel %vm326_vm3, %v692_v57, -inf }
 0x52a   : > { %696 = vmax.xlane.f32.xlu1 %v695_v59 }
 0x53b   : > { %1329 = vrot.lane.b32.xlu1 %v1551_v13, %s1430_s29 }
 0x53f   : > { %798 = vrot.lane.b32.xlu1 %v1537_v7, %s1431_s7 }
 0x5b7   : > { %v697_v60 = vpop.xlane.xlu1 %696 }
 0x5b8   : > { %v698_v61 = vsub.f32 %v692_v57, %v697_v60 }
 0x5ba   : > { %v699_v62 = vmul.f32 1.442695, %v698_v61 }
 0x5bb   : > { %v1330_v3 = vpop.permute.xlu1 %1329 }
 0x5bc   : > { %1351 = vpow2.f32 %v699_v62  ;;  %v1332_v5 = vunpack.i.h.bf16 %v1330_v3  ;;  %v1331_v6 = vunpack.i.l.bf16 %v1330_v3 }
 0x5be   : > { %v1246_v9 = vpack.c.bf16 %v1332_v5, %v1331_v6 }
 0x5c0   : > { %1247 = vmatpush3.bf16.msra.mxu1 %v1246_v9 }
 0x5c1   : > { %1248 = vmatprep.subr.bf16.mxu1 %v1423_v0  ;;  %v799_v0 = vpop.permute.xlu1 %798 }
 0x5c6   : > { %v1352_v63 = vpop.eup %1351 }
 0x5c7   : > { %v701_v2 = vsel %vm326_vm3, %v1352_v63, 0.0 }
 0x5c8   : > { %702 = vadd.xlane.f32.xlu0 %v701_v2 }
 0x5de   : > { %1334 = vrot.lane.b32.xlu0 %v1551_v13, %s1431_s7 }
 0x655   : > { %v703_v10 = vpop.xlane.xlu0 %702 }
 0x656   : > { %1353 = vrcp.f32 %v703_v10 }
 0x659   : > { %v1335_v7 = vpop.permute.xlu0 %1334 }
 0x65a   : > { %v1337_v11 = vunpack.i.h.bf16 %v1335_v7  ;;  %v1336_v12 = vunpack.i.l.bf16 %v1335_v7 }
 0x65c   : > { %v1249_v15 = vpack.c.bf16 %v1337_v11, %v1336_v12 }
 0x660   : > { %v1354_v14 = vpop.eup %1353 }
 0x661   : > { %v705_v16 = vmul.f32 %v1354_v14, %v1352_v63 }
 0x663   : > { %1134 = vst.msk [vmem:[%s1562_s23 + $0x10] sm:$0xff] %vm326_vm3, %v705_v16  ;;  %1211 = vmatmul.mubr.msk.f32.vlgmr.msra.gmra.mrb[4].mxu1 %vm326_vm3, %v705_v16 }
 0x664   : > { %1251 = vmatpush3.bf16.xpose.msk.msra.mxu1 %vm1526_vm2, %v1249_v15  ;;  %1217 = vmatprep.mubr.msk.f32.mxu1 %vm1424_vm0, %v1425_v1 }
 0x66b   : > { %1218 = vmatmul.mubr.msk.f32.vlgmr.msra.gmra.mrb[6].mxu1 %vm246_vm1, %v799_v0 }
 0x736   : > { %v781_v17 = vpop.f32.mrb[4].mxu1 }
 0x737   : > { %v1212_v18 = vpop.f32.mrb[5].mxu1 }
 0x73e   : > { %v878_v19 = vpop.f32.mrb[6].mxu1 }
 0x73f   : > { %v879_v20 = vadd.f32 %v878_v19, %v1547_v8  ;;  %v1219_v21 = vpop.f32.mrb[7].mxu1 }
 0x741   : > { %v882_v22 = vsel %vm326_vm3, %v879_v20, -inf }
 0x742   : > { %883 = vmax.xlane.f32.xlu1 %v882_v22 }
 0x753   : > { %1339 = vrot.lane.b32.xlu1 %v1551_v13, %s1432_s8 }
 0x757   : > { %786 = vrot.lane.b32.xlu1 %v781_v17, %s1433_s9 }
 0x7cf   : > { %v884_v4 = vpop.xlane.xlu1 %883 }
 0x7d0   : > { %v885_v23 = vsub.f32 %v879_v20, %v884_v4 }
 0x7d2   : > { %v886_v1 = vmul.f32 1.442695, %v885_v23 }
 0x7d3   : > { %v1340_v24 = vpop.permute.xlu1 %1339 }
 0x7d4   : > { %1355 = vpow2.f32 %v886_v1  ;;  %v1342_v25 = vunpack.i.h.bf16 %v1340_v24  ;;  %v1341_v26 = vunpack.i.l.bf16 %v1340_v24 }
 0x7d6   : > { %v1253_v27 = vpack.c.bf16 %v1342_v25, %v1341_v26 }
 0x7d7   : > { %v787_v30 = vpop.permute.xlu1 %786 }
 0x7d8   : > { %1254 = vmatpush3.bf16.msra.mxu0 %v1253_v27 }
 0x7de   : > { %v1356_v8 = vpop.eup %1355 }
 0x7df   : > { %v888_v28 = vsel %vm326_vm3, %v1356_v8, 0.0 }
 0x7e0   : > { %889 = vadd.xlane.f32.xlu0 %v888_v28 }
 0x7f6   : > { %599 = vrot.lane.b32.xlu0 %v594_v54, %s1434_s10 }
 0x86d   : > { %v890_v13 = vpop.xlane.xlu0 %889 }
 0x86e   : > { %1357 = vrcp.f32 %v890_v13 }
 0x871   : > { %v600_v29 = vpop.permute.xlu0 %599 }
 0x872   : > { %603 = vst.msk [vmem:[%s1578_s30] sm:$0xff] %vm602_vm4, %v600_v29 }
 0x873   : > { %790 = vst.msk [vmem:[%s1578_s30] sm:$0xff] %vm789_vm5, %v787_v30 }
 0x878   : > { %v1358_v31 = vpop.eup %1357 }
 0x879   : > { %v892_v32 = vmul.f32 %v1358_v31, %v1356_v8 }
 0x87b   : > { %1139 = vst.msk [vmem:[%s1562_s23 + $0x18] sm:$0xff] %vm326_vm3, %v892_v32  ;;  %1225 = vmatmul.mubr.msk.f32.vlgmr.msra.gmra.mrb[6].mxu0 %vm326_vm3, %v892_v32  ;;  %s1363_s23 = sshll.u32 %s1435_s19, 4  ;;  %s1364_s23 = int_to_ptr.vmem [resolvable:$false] %s1363_s23 }
 0x87c   : > { %s1365_s5 = scalar_lea.vmem %s1364_s23, 1024  ;;  %p1366_p0 = scmp.lt.s32.totalorder %s1632_s12, %s1364_s23 }
 0x87d   : > { %p1367_p1 = scmp.lt.s32.totalorder %s1365_s5, %s1359_s28 }
 0x87f   : > { %p1368_p2 = por %p1367_p1, %p1366_p0 }
 0x881   : > { %p1369_p3 = pnand %p1368_p2, %p1362_p13 }
 0x883   : > { %1372 = shalt.err (!%p1369_p3)
}
 0x884   : > { %s1373_s20 = scalar_lea.hbm %s1630_s22, 512  ;;  %s1377_s7 = scalar_lea.hbm %s1683_s4, 1024 }
 0x885   : > { %p1374_p4 = scmp.ne.s32.totalorder %s1630_s22, %s1373_s20  ;;  %p1378_p9 = scmp.lt.u32.totalorder %s1630_s22, %s1683_s4 }
 0x886   : > { %p1379_p10 = scmp.lt.u32.totalorder %s1377_s7, %s1373_s20  ;;  %p1381_p12 = scmp.lt.u32.totalorder %s1373_s20, %s1630_s22 }
 0x887   : > { %p1375_p7 = pnand %p1374_p4, %p1501_p5 }
 0x888   : > { %p1380_p11 = por %p1379_p10, %p1378_p9 }
 0x889   : > { %p1376_p8 = pneg %p1375_p7 }
 0x88a   : > { %p1382_p13 = por %p1381_p12, %p1380_p11 }
 0x88c   : > { %p1383_p0 = pnand %p1382_p13, %p1376_p8 }
 0x88e   : > { %1386 = shalt.err (!%p1383_p0)
}
 0x88f   : > { %s1436_s11 = smov 128   ;;  %s1437_s13 = smov 24   ;;  %vm976_vm6 = vcmask 261312  }
 0x890   : > { %1255 = dma.vmem_to_hbm [thread:$0]  (%p1501_p5), %s1632_s12, 512, %s1630_s22, %s1636_s27, %s1436_s11, %s1436_s11, %s1434_s10  }
 0x94e   : > { %v968_v33 = vpop.f32.mrb[6].mxu0 }
 0x94f   : > { %973 = vrot.lane.b32.xlu1 %v968_v33, %s1437_s13  ;;  %v1226_v34 = vpop.f32.mrb[7].mxu0 }
 0x9c1   : > { %v974_v35 = vpop.permute.xlu1 %973 }
 0x9c2   : > { %977 = vst.msk [vmem:[%s1578_s30] sm:$0xff] %vm976_vm6, %v974_v35 }
 0x9c3 PF: > { %p1261_p1 = scmp.ge.s32.totalorder %s1421_s18, 2  ;;  %s1023_s14 = sand.u32 1, %s1409_s15  }
 0x9c4   : > { %s1024_s25 = scalar_lea.sflag [#allocation3], %s1023_s14 }
 0x9c5   : > { %p1258_p2 = pnand %p1261_p1, %p1505_p6 }
 0x9c7   : > { %1404 = dma.done.wait (!%p1258_p2), %s1024_s25, 512  }
 0x9c8   : > { %1406 = vsyncadd (!%p1258_p2), %s1024_s25, 4294966784  ;;  %p15_p5 = scmp.ge.s32.totalorder %s1488_s21, 4   ;;  %s1688_s15 = smov %s1413_s16 }
 0x9c9   : > { %s1689_s16 = smov %s1417_s17  ;;  %s1690_s17 = smov %s1499_s24 }
 0x9ca   : > { %s1691_s18 = smov %s1488_s21  ;;  %17 = sbr.rel (!%p15_p5) target bundleno = 3 (0x3), region = 88 }
 0x9d1   :  { %1029 = vsyncpa [#allocation3], 1 }
 0x9d2   :  { %1031 = vsyncpa [#allocation3 + $0x1], 1 }

</bundles_post_ra>
